<compile_context>
chip_gen: v6e
topology: v6e:2x2x1
jax: 0.10.0
libtpu: 0.0.40
codegen_flags: <defaults>
</compile_context>

<pallas_src>
import functools

import jax
import jax.numpy as jnp
from jax.experimental import pallas as pl
from jax.experimental.pallas import tpu as pltpu


# (Cin, Cout, K, stride, padding, output_padding) for the 5 layers of Decoder.
_LAYER_CFG = [
    (64, 64, 3, 2, 0, 1),
    (64, 64, 3, 2, 1, 1),
    (64, 32, 3, 2, 1, 1),
    (32, 16, 3, 2, 1, 1),
    (16, 1, 64, 32, 24, 16),
]
_WEIGHT_SHAPES = [(ci, co, k) for (ci, co, k, _s, _p, _op) in _LAYER_CFG]
_EPS = 1e-5
_MM_DTYPE = jnp.bfloat16   # matmul operand dtype (accumulation is f32)


def _decoder_kernel(x_ref,
                    w1, g1, b1,
                    w2, g2, b2,
                    w3, g3, b3,
                    w4, g4, b4,
                    w5, g5, b5,
                    main_ref, tail_ref,
                    s1, s2, s3, s4,
                    *, n, r, eps):
    """Whole decoder.  Activations are kept phase-major:
    an array of shape (P*n*r, C) holds, in row  phi*(n*r) + b*r + m,
    the value of position  i = P*m + phi  of batch b (channels on lanes).
    """
    B = n * r  # rows per phase block (= batch * rows-per-batch)

    def mm(h, w_ref):
        return jnp.dot(h.astype(_MM_DTYPE), w_ref[...],
                       preferred_element_type=jnp.float32)

    def bn_relu(y, g_ref, bt_ref):
        # BatchNorm1d train mode (batch stats, biased var) + ReLU as one
        # per-channel FMA; sum and sum-of-squares in a single axis-0 reduce.
        cnt = float(y.shape[0])
        c = y.shape[1]
        both = jnp.concatenate([y, y * y], axis=1)            # (rows, 2C)
        tot = jnp.sum(both, axis=0, keepdims=True)            # (1, 2C)
        mean = tot[:, 0:c] / cnt
        msq = tot[:, c:2 * c] / cnt
        var = jnp.maximum(msq - mean * mean, 0.0)
        scale = g_ref[...] * jax.lax.rsqrt(var + eps)
        shift = bt_ref[...] - mean * scale
        return jnp.maximum(y * scale + shift, 0.0)

    # ---- Layer 1: ConvTranspose1d(64,64,3,2,p=0,op=1) ----------------------
    # out[2m]   = Z0[m] + Z2[m-1]          (Z*[r-1] == 0 via the padded row)
    # out[2m+1] = Z1[m]
    def deconv_first(h, w_ref, cout, scr):
        z = mm(h, w_ref)                                      # (B, 3*cout)
        z0 = z[:, 0:cout]
        z1 = z[:, cout:2 * cout]
        z2 = z[:, 2 * cout:3 * cout]
        for bb in range(n):
            rb = bb * r
            scr[rb:rb + 1, :] = z0[rb:rb + 1, :]
            scr[rb + 1:rb + r, :] = z0[rb + 1:rb + r, :] + z2[rb:rb + r - 1, :]
        scr[B:2 * B, :] = z1
        return scr[...]

    # ---- Layers 2-4: ConvTranspose1d(*,*,3,2,p=1,op=1) ---------------------
    # input phase phi (i = P*m + phi):
    #   out[2i]   = Z1[i]                      -> output phase 2*phi
    #   out[2i+1] = Z2[i] + Z0[i+1]            -> output phase 2*phi+1
    # i+1 is phase phi+1 (same row) except for the last phase, where it is
    # phase 0 of the next row (zero past the last row of each batch block).
    def deconv_s2_p1(h, w_ref, p_in, cout, scr):
        z = mm(h, w_ref)                                      # (p_in*B, 3*cout)
        z0 = z[:, 0:cout]
        z1 = z[:, cout:2 * cout]
        z2 = z[:, 2 * cout:3 * cout]
        for phi in range(p_in):
            lo = phi * B
            scr[2 * phi * B:(2 * phi + 1) * B, :] = z1[lo:lo + B, :]
            base = (2 * phi + 1) * B
            if phi + 1 < p_in:
                scr[base:base + B, :] = (z2[lo:lo + B, :]
                                         + z0[lo + B:lo + 2 * B, :])
            else:
                for bb in range(n):
                    rb = bb * r
                    scr[base + rb:base + rb + r - 1, :] = (
                        z2[lo + rb:lo + rb + r - 1, :]
                        + z0[rb + 1:rb + r, :])
                    scr[base + rb + r - 1:base + rb + r, :] = (
                        z2[lo + rb + r - 1:lo + rb + r, :])
        return scr[...]

    h = x_ref[...]                                            # (B, 64), padded
    h = bn_relu(deconv_first(h, w1, 64, s1), g1, b1)          # (2B, 64)
    h = bn_relu(deconv_s2_p1(h, w2, 2, 64, s2), g2, b2)       # (4B, 64)
    h = bn_relu(deconv_s2_p1(h, w3, 4, 32, s3), g3, b3)       # (8B, 32)
    h = bn_relu(deconv_s2_p1(h, w4, 8, 16, s4), g4, b4)       # (16B, 16)

    # ---- Layer 5: ConvTranspose1d(16,1,64,32,p=24,op=16) -------------------
    # A[i, k] = x[i] . W5[:, 0, k].  With t = j + 24 = 32*q + p:
    #   oa[q, p] = A[q, p] + A[q-1, p+32],   q in [0, 16r], p in [0, 32)
    # main_ref holds q = 16m + phi at (row b*r+m, lanes 32*phi+p) -> lane-dense
    # (B, 512); tail_ref holds the one extra overlap row q = 16r per batch.
    a = mm(h, w5)                                             # (16B, 64)
    a_lo = a[:, 0:32]
    a_hi = a[:, 32:64]
    for phi in range(16):
        lo = phi * B
        if phi == 0:
            for bb in range(n):
                rb = bb * r
                main_ref[rb:rb + 1, 0:32] = a_lo[rb:rb + 1, :]
                main_ref[rb + 1:rb + r, 0:32] = (
                    a_lo[rb + 1:rb + r, :]
                    + a_hi[15 * B + rb:15 * B + rb + r - 1, :])
        else:
            main_ref[:, phi * 32:(phi + 1) * 32] = (
                a_lo[lo:lo + B, :] + a_hi[lo - B:lo, :])
    for bb in range(n):
        src = 15 * B + bb * r + r - 1
        tail_ref[bb:bb + 1, :] = a_hi[src:src + 1, :]

    # BatchNorm over the single output channel: stats over the n*4608 real
    # output positions only (exclude the p<24 head of q=0, include the p<24
    # valid slice of the tail), then scale/shift + ReLU in place.
    def fsum(v):
        return jnp.sum(jnp.sum(v, axis=0, keepdims=True), axis=1, keepdims=True)

    main = main_ref[...]
    tail = tail_ref[...]
    tot = fsum(main)
    totsq = fsum(main * main)
    for bb in range(n):
        bad = main[bb * r:bb * r + 1, 0:24]                   # cropped head
        tot = tot - fsum(bad)
        totsq = totsq - fsum(bad * bad)
    tv = tail[:, 0:24]                                        # valid tail part
    tot = tot + fsum(tv)
    totsq = totsq + fsum(tv * tv)
    cnt5 = float(n * 512 * r)
    mean = tot / cnt5
    var = jnp.maximum(totsq / cnt5 - mean * mean, 0.0)
    scale = g5[...] * jax.lax.rsqrt(var + eps)                # (1, 1)
    shift = b5[...] - mean * scale
    main_ref[...] = jnp.maximum(main * scale + shift, 0.0)
    tail_ref[...] = jnp.maximum(tail * scale + shift, 0.0)


def decoder_forward(x_ncl, params):
    """x_ncl: (N, 64, L) float32, PyTorch NCL layout.  Returns (N, 1, 512*(L+1))."""
    N, c_in, L = x_ncl.shape
    assert c_in == _LAYER_CFG[0][0]
    R = L + 1                      # rows per batch per phase (one zero pad row)
    B = N * R
    L5 = 512 * R                   # final output length (4608 for L=8)
    p5 = _LAYER_CFG[4][4]          # 24

    # Channels-last + one zero row per batch: the pad row's matmul output is
    # exactly 0, which realizes layer-1's p=0/op=1 boundary behaviour for free.
    x_cl = jnp.transpose(x_ncl, (0, 2, 1)).astype(jnp.float32)       # (N, L, 64)
    x_pad = jnp.concatenate(
        [x_cl, jnp.zeros((N, 1, c_in), jnp.float32)], axis=1)        # (N, R, 64)
    x2d = x_pad.reshape(B, c_in)

    # NOTE: conv bias from params is intentionally unused -- a constant
    # per-channel bias is exactly cancelled by train-mode BN mean subtraction.
    inputs = [x2d]
    for li in range(4):
        _ci, co, k, _s, _p, _op = _LAYER_CFG[li]
        W = params[li]['W']                                           # (Cin,Cout,3)
        wcat = jnp.concatenate([W[:, :, kk] for kk in range(k)], axis=1)
        inputs.append(wcat.astype(_MM_DTYPE))                         # (Cin,3*Cout)
        inputs.append(params[li]['gamma'].reshape(1, co).astype(jnp.float32))
        inputs.append(params[li]['beta'].reshape(1, co).astype(jnp.float32))
    inputs.append(params[4]['W'][:, 0, :].astype(_MM_DTYPE))          # (16, 64)
    inputs.append(params[4]['gamma'].reshape(1, 1).astype(jnp.float32))
    inputs.append(params[4]['beta'].reshape(1, 1).astype(jnp.float32))

    out_shapes = (jax.ShapeDtypeStruct((B, 512), jnp.float32),   # lane-dense main
                  jax.ShapeDtypeStruct((N, 32), jnp.float32))    # overlap tail

    def _spec(a):
        nd = a.ndim
        return pl.BlockSpec(a.shape, lambda i, _nd=nd: (0,) * _nd)

    kern = functools.partial(_decoder_kernel, n=N, r=R, eps=_EPS)
    main, tail = pl.pallas_call(
        kern,
        out_shape=out_shapes,
        grid=(1,),
        in_specs=[_spec(a) for a in inputs],
        out_specs=(pl.BlockSpec((B, 512), lambda i: (0, 0)),
                   pl.BlockSpec((N, 32), lambda i: (0, 0))),
        scratch_shapes=[
            pltpu.VMEM((2 * B, 64), jnp.float32),
            pltpu.VMEM((4 * B, 64), jnp.float32),
            pltpu.VMEM((8 * B, 32), jnp.float32),
            pltpu.VMEM((16 * B, 16), jnp.float32),
        ],
        compiler_params=pltpu.CompilerParams(
            dimension_semantics=("arbitrary",)),
    )(*inputs)

    # De-phase (row m, lane 32*phi+p  <->  t = 512*m + 32*phi + p) and crop the
    # ConvTranspose padding: valid output j = t - 24, j in [0, L5).
    full = jnp.concatenate([main.reshape(N, R * 512), tail], axis=1)  # (N, 512R+32)
    y = full[:, p5:p5 + L5]
    return y.reshape(N, 1, L5)                                        # NCL, C_out=1


def init_params(key):
    params = []
    for (cin, cout, k) in _WEIGHT_SHAPES:
        key, k1, k2 = jax.random.split(key, 3)
        bound = 1.0 / float(cout * k) ** 0.5    # PyTorch ConvTranspose fan_in
        W = jax.random.uniform(k1, (cin, cout, k), jnp.float32, -bound, bound)
        b = jax.random.uniform(k2, (cout,), jnp.float32, -bound, bound)
        params.append(dict(
            W=W, b=b,                            # b unused: cancelled by train-BN
            gamma=jnp.ones((cout,), jnp.float32),
            beta=jnp.zeros((cout,), jnp.float32)))
    return params


if __name__ == "__main__":
    key = jax.random.PRNGKey(0)
    kx, kp = jax.random.split(key)

    # small deterministic input: batch=2, in_channels=64, length=8 (NCL)
    x = jax.random.normal(kx, (2, 64, 8), jnp.float32)
    params = init_params(kp)

    fwd = jax.jit(decoder_forward)
    out = jax.block_until_ready(fwd(x, params))

    # 8 -> 18 -> 36 -> 72 -> 144 -> (144-1)*32 - 48 + 64 + 16 = 4608
    assert out.shape == (2, 1, 4608), out.shape
    assert out.dtype == jnp.float32
    assert bool(jnp.all(jnp.isfinite(out)))
    assert bool(jnp.all(out >= 0.0))  # ReLU output
    print("KERNEL_OK")
</pallas_src>

<mosaic_0001>
module attributes {stable_mosaic.version = 11 : i64} {
  func.func @_decoder_kernel(%arg0: i32, %arg1: memref<18x64xf32, #tpu.memory_space<vmem>>, %arg2: memref<64x192xbf16, #tpu.memory_space<vmem>>, %arg3: memref<1x64xf32, #tpu.memory_space<vmem>>, %arg4: memref<1x64xf32, #tpu.memory_space<vmem>>, %arg5: memref<64x192xbf16, #tpu.memory_space<vmem>>, %arg6: memref<1x64xf32, #tpu.memory_space<vmem>>, %arg7: memref<1x64xf32, #tpu.memory_space<vmem>>, %arg8: memref<64x96xbf16, #tpu.memory_space<vmem>>, %arg9: memref<1x32xf32, #tpu.memory_space<vmem>>, %arg10: memref<1x32xf32, #tpu.memory_space<vmem>>, %arg11: memref<32x48xbf16, #tpu.memory_space<vmem>>, %arg12: memref<1x16xf32, #tpu.memory_space<vmem>>, %arg13: memref<1x16xf32, #tpu.memory_space<vmem>>, %arg14: memref<16x64xbf16, #tpu.memory_space<vmem>>, %arg15: memref<1x1xf32, #tpu.memory_space<vmem>>, %arg16: memref<1x1xf32, #tpu.memory_space<vmem>>, %arg17: memref<18x512xf32, #tpu.memory_space<vmem>>, %arg18: memref<2x32xf32, #tpu.memory_space<vmem>>, %arg19: memref<36x64xf32, #tpu.memory_space<vmem>>, %arg20: memref<72x64xf32, #tpu.memory_space<vmem>>, %arg21: memref<144x32xf32, #tpu.memory_space<vmem>>, %arg22: memref<288x16xf32, #tpu.memory_space<vmem>>) attributes {dimension_semantics = [#tpu.dimension_semantics<arbitrary>], iteration_bounds = array<i64: 1>, scalar_prefetch = 0 : i64, scratch_operands = 4 : i64, tpu.core_type = #tpu.core_type<tc>, window_params = [{pipeline_mode = #tpu.pipeline_mode<synchronous>, transform_indices = @transform_0, window_bounds = array<i64: 18, 64>}, {pipeline_mode = #tpu.pipeline_mode<synchronous>, transform_indices = @transform_1, window_bounds = array<i64: 64, 192>}, {pipeline_mode = #tpu.pipeline_mode<synchronous>, transform_indices = @transform_2, window_bounds = array<i64: 1, 64>}, {pipeline_mode = #tpu.pipeline_mode<synchronous>, transform_indices = @transform_3, window_bounds = array<i64: 1, 64>}, {pipeline_mode = #tpu.pipeline_mode<synchronous>, transform_indices = @transform_4, window_bounds = array<i64: 64, 192>}, {pipeline_mode = #tpu.pipeline_mode<synchronous>, transform_indices = @transform_5, window_bounds = array<i64: 1, 64>}, {pipeline_mode = #tpu.pipeline_mode<synchronous>, transform_indices = @transform_6, window_bounds = array<i64: 1, 64>}, {pipeline_mode = #tpu.pipeline_mode<synchronous>, transform_indices = @transform_7, window_bounds = array<i64: 64, 96>}, {pipeline_mode = #tpu.pipeline_mode<synchronous>, transform_indices = @transform_8, window_bounds = array<i64: 1, 32>}, {pipeline_mode = #tpu.pipeline_mode<synchronous>, transform_indices = @transform_9, window_bounds = array<i64: 1, 32>}, {pipeline_mode = #tpu.pipeline_mode<synchronous>, transform_indices = @transform_10, window_bounds = array<i64: 32, 48>}, {pipeline_mode = #tpu.pipeline_mode<synchronous>, transform_indices = @transform_11, window_bounds = array<i64: 1, 16>}, {pipeline_mode = #tpu.pipeline_mode<synchronous>, transform_indices = @transform_12, window_bounds = array<i64: 1, 16>}, {pipeline_mode = #tpu.pipeline_mode<synchronous>, transform_indices = @transform_13, window_bounds = array<i64: 16, 64>}, {pipeline_mode = #tpu.pipeline_mode<synchronous>, transform_indices = @transform_14, window_bounds = array<i64: 1, 1>}, {pipeline_mode = #tpu.pipeline_mode<synchronous>, transform_indices = @transform_15, window_bounds = array<i64: 1, 1>}, {pipeline_mode = #tpu.pipeline_mode<synchronous>, transform_indices = @transform_16, window_bounds = array<i64: 18, 512>}, {pipeline_mode = #tpu.pipeline_mode<synchronous>, transform_indices = @transform_17, window_bounds = array<i64: 2, 32>}]} {
    %c0 = arith.constant 0 : index
    %c0_0 = arith.constant 0 : index
    %0 = vector.load %arg1[%c0, %c0_0] : memref<18x64xf32, #tpu.memory_space<vmem>>, vector<18x64xf32>
    %1 = arith.truncf %0 : vector<18x64xf32> to vector<18x64xbf16>
    %c0_1 = arith.constant 0 : index
    %c0_2 = arith.constant 0 : index
    %2 = vector.load %arg2[%c0_1, %c0_2] : memref<64x192xbf16, #tpu.memory_space<vmem>>, vector<64x192xbf16>
    %cst = arith.constant dense<0.000000e+00> : vector<18x192xf32>
    %3 = tpu.matmul %1, %2, %cst {dimension_numbers = #tpu.dot_dimension_numbers<[1], [0], [0], [1], [0, 0, 1, 1], [], []>} : vector<18x64xbf16>, vector<64x192xbf16>, vector<18x192xf32> -> vector<18x192xf32>
    %4 = vector.extract_strided_slice %3 {offsets = [0, 0], sizes = [18, 64], strides = [1, 1]} : vector<18x192xf32> to vector<18x64xf32>
    %5 = vector.extract_strided_slice %3 {offsets = [0, 64], sizes = [18, 64], strides = [1, 1]} : vector<18x192xf32> to vector<18x64xf32>
    %6 = vector.extract_strided_slice %3 {offsets = [0, 128], sizes = [18, 64], strides = [1, 1]} : vector<18x192xf32> to vector<18x64xf32>
    %7 = vector.extract_strided_slice %4 {offsets = [0, 0], sizes = [1, 64], strides = [1, 1]} : vector<18x64xf32> to vector<1x64xf32>
    %c0_3 = arith.constant 0 : index
    %c0_4 = arith.constant 0 : index
    %8 = vector.load %arg19[%c0_3, %c0_4] : memref<36x64xf32, #tpu.memory_space<vmem>>, vector<1x64xf32>
    tpu.vector_store %arg19[%c0_3, %c0_4], %7 {strides = array<i32>} : memref<36x64xf32, #tpu.memory_space<vmem>>, vector<1x64xf32>,
    %9 = vector.extract_strided_slice %4 {offsets = [1, 0], sizes = [8, 64], strides = [1, 1]} : vector<18x64xf32> to vector<8x64xf32>
    %10 = vector.extract_strided_slice %6 {offsets = [0, 0], sizes = [8, 64], strides = [1, 1]} : vector<18x64xf32> to vector<8x64xf32>
    %11 = arith.addf %9, %10 : vector<8x64xf32>
    %c1 = arith.constant 1 : index
    %c0_5 = arith.constant 0 : index
    %12 = vector.load %arg19[%c1, %c0_5] : memref<36x64xf32, #tpu.memory_space<vmem>>, vector<8x64xf32>
    tpu.vector_store %arg19[%c1, %c0_5], %11 {strides = array<i32>} : memref<36x64xf32, #tpu.memory_space<vmem>>, vector<8x64xf32>,
    %13 = vector.extract_strided_slice %4 {offsets = [9, 0], sizes = [1, 64], strides = [1, 1]} : vector<18x64xf32> to vector<1x64xf32>
    %c9 = arith.constant 9 : index
    %c0_6 = arith.constant 0 : index
    %14 = vector.load %arg19[%c9, %c0_6] : memref<36x64xf32, #tpu.memory_space<vmem>>, vector<1x64xf32>
    tpu.vector_store %arg19[%c9, %c0_6], %13 {strides = array<i32>} : memref<36x64xf32, #tpu.memory_space<vmem>>, vector<1x64xf32>,
    %15 = vector.extract_strided_slice %4 {offsets = [10, 0], sizes = [8, 64], strides = [1, 1]} : vector<18x64xf32> to vector<8x64xf32>
    %16 = vector.extract_strided_slice %6 {offsets = [9, 0], sizes = [8, 64], strides = [1, 1]} : vector<18x64xf32> to vector<8x64xf32>
    %17 = arith.addf %15, %16 : vector<8x64xf32>
    %c10 = arith.constant 10 : index
    %c0_7 = arith.constant 0 : index
    %18 = vector.load %arg19[%c10, %c0_7] : memref<36x64xf32, #tpu.memory_space<vmem>>, vector<8x64xf32>
    tpu.vector_store %arg19[%c10, %c0_7], %17 {strides = array<i32>} : memref<36x64xf32, #tpu.memory_space<vmem>>, vector<8x64xf32>,
    %c18 = arith.constant 18 : index
    %c0_8 = arith.constant 0 : index
    %19 = vector.load %arg19[%c18, %c0_8] : memref<36x64xf32, #tpu.memory_space<vmem>>, vector<18x64xf32>
    tpu.vector_store %arg19[%c18, %c0_8], %5 {strides = array<i32>} : memref<36x64xf32, #tpu.memory_space<vmem>>, vector<18x64xf32>,
    %c0_9 = arith.constant 0 : index
    %c0_10 = arith.constant 0 : index
    %20 = vector.load %arg19[%c0_9, %c0_10] : memref<36x64xf32, #tpu.memory_space<vmem>>, vector<36x64xf32>
    %21 = arith.mulf %20, %20 : vector<36x64xf32>
    %22 = tpu.concatenate %20, %21 in 1 : vector<36x64xf32>, vector<36x64xf32> -> vector<36x128xf32>
    %cst_11 = arith.constant dense<0.000000e+00> : vector<128xf32>
    %23 = vector.multi_reduction <add>, %22, %cst_11 [0] : vector<36x128xf32> to vector<128xf32>
    %24 = vector.shape_cast %23 : vector<128xf32> to vector<1x128xf32>
    %25 = vector.extract_strided_slice %24 {offsets = [0, 0], sizes = [1, 64], strides = [1, 1]} : vector<1x128xf32> to vector<1x64xf32>
    %cst_12 = arith.constant 3.600000e+01 : f32
    %26 = vector.broadcast %cst_12 : f32 to vector<1x64xf32>
    %27 = arith.divf %25, %26 : vector<1x64xf32>
    %28 = vector.extract_strided_slice %24 {offsets = [0, 64], sizes = [1, 64], strides = [1, 1]} : vector<1x128xf32> to vector<1x64xf32>
    %cst_13 = arith.constant 3.600000e+01 : f32
    %29 = vector.broadcast %cst_13 : f32 to vector<1x64xf32>
    %30 = arith.divf %28, %29 : vector<1x64xf32>
    %31 = arith.mulf %27, %27 : vector<1x64xf32>
    %32 = arith.subf %30, %31 : vector<1x64xf32>
    %cst_14 = arith.constant 0.000000e+00 : f32
    %33 = vector.broadcast %cst_14 : f32 to vector<1x64xf32>
    %34 = arith.maximumf %32, %33 : vector<1x64xf32>
    %c0_15 = arith.constant 0 : index
    %c0_16 = arith.constant 0 : index
    %35 = vector.load %arg3[%c0_15, %c0_16] : memref<1x64xf32, #tpu.memory_space<vmem>>, vector<1x64xf32>
    %cst_17 = arith.constant 9.99999974E-6 : f32
    %36 = vector.broadcast %cst_17 : f32 to vector<1x64xf32>
    %37 = arith.addf %34, %36 : vector<1x64xf32>
    %38 = math.rsqrt %37 : vector<1x64xf32>
    %39 = arith.mulf %35, %38 : vector<1x64xf32>
    %c0_18 = arith.constant 0 : index
    %c0_19 = arith.constant 0 : index
    %40 = vector.load %arg4[%c0_18, %c0_19] : memref<1x64xf32, #tpu.memory_space<vmem>>, vector<1x64xf32>
    %41 = arith.mulf %27, %39 : vector<1x64xf32>
    %42 = arith.subf %40, %41 : vector<1x64xf32>
    %43 = vector.broadcast %39 : vector<1x64xf32> to vector<36x64xf32>
    %44 = arith.mulf %20, %43 : vector<36x64xf32>
    %45 = vector.broadcast %42 : vector<1x64xf32> to vector<36x64xf32>
    %46 = arith.addf %44, %45 : vector<36x64xf32>
    %cst_20 = arith.constant 0.000000e+00 : f32
    %47 = vector.broadcast %cst_20 : f32 to vector<36x64xf32>
    %48 = arith.maximumf %46, %47 : vector<36x64xf32>
    %49 = arith.truncf %48 : vector<36x64xf32> to vector<36x64xbf16>
    %c0_21 = arith.constant 0 : index
    %c0_22 = arith.constant 0 : index
    %50 = vector.load %arg5[%c0_21, %c0_22] : memref<64x192xbf16, #tpu.memory_space<vmem>>, vector<64x192xbf16>
    %cst_23 = arith.constant dense<0.000000e+00> : vector<36x192xf32>
    %51 = tpu.matmul %49, %50, %cst_23 {dimension_numbers = #tpu.dot_dimension_numbers<[1], [0], [0], [1], [0, 0, 1, 1], [], []>} : vector<36x64xbf16>, vector<64x192xbf16>, vector<36x192xf32> -> vector<36x192xf32>
    %52 = vector.extract_strided_slice %51 {offsets = [0, 0], sizes = [36, 64], strides = [1, 1]} : vector<36x192xf32> to vector<36x64xf32>
    %53 = vector.extract_strided_slice %51 {offsets = [0, 64], sizes = [36, 64], strides = [1, 1]} : vector<36x192xf32> to vector<36x64xf32>
    %54 = vector.extract_strided_slice %51 {offsets = [0, 128], sizes = [36, 64], strides = [1, 1]} : vector<36x192xf32> to vector<36x64xf32>
    %55 = vector.extract_strided_slice %53 {offsets = [0, 0], sizes = [18, 64], strides = [1, 1]} : vector<36x64xf32> to vector<18x64xf32>
    %c0_24 = arith.constant 0 : index
    %c0_25 = arith.constant 0 : index
    %56 = vector.load %arg20[%c0_24, %c0_25] : memref<72x64xf32, #tpu.memory_space<vmem>>, vector<18x64xf32>
    tpu.vector_store %arg20[%c0_24, %c0_25], %55 {strides = array<i32>} : memref<72x64xf32, #tpu.memory_space<vmem>>, vector<18x64xf32>,
    %57 = vector.extract_strided_slice %54 {offsets = [0, 0], sizes = [18, 64], strides = [1, 1]} : vector<36x64xf32> to vector<18x64xf32>
    %58 = vector.extract_strided_slice %52 {offsets = [18, 0], sizes = [18, 64], strides = [1, 1]} : vector<36x64xf32> to vector<18x64xf32>
    %59 = arith.addf %57, %58 : vector<18x64xf32>
    %c18_26 = arith.constant 18 : index
    %c0_27 = arith.constant 0 : index
    %60 = vector.load %arg20[%c18_26, %c0_27] : memref<72x64xf32, #tpu.memory_space<vmem>>, vector<18x64xf32>
    tpu.vector_store %arg20[%c18_26, %c0_27], %59 {strides = array<i32>} : memref<72x64xf32, #tpu.memory_space<vmem>>, vector<18x64xf32>,
    %61 = vector.extract_strided_slice %53 {offsets = [18, 0], sizes = [18, 64], strides = [1, 1]} : vector<36x64xf32> to vector<18x64xf32>
    %c36 = arith.constant 36 : index
    %c0_28 = arith.constant 0 : index
    %62 = vector.load %arg20[%c36, %c0_28] : memref<72x64xf32, #tpu.memory_space<vmem>>, vector<18x64xf32>
    tpu.vector_store %arg20[%c36, %c0_28], %61 {strides = array<i32>} : memref<72x64xf32, #tpu.memory_space<vmem>>, vector<18x64xf32>,
    %63 = vector.extract_strided_slice %54 {offsets = [18, 0], sizes = [8, 64], strides = [1, 1]} : vector<36x64xf32> to vector<8x64xf32>
    %64 = vector.extract_strided_slice %52 {offsets = [1, 0], sizes = [8, 64], strides = [1, 1]} : vector<36x64xf32> to vector<8x64xf32>
    %65 = arith.addf %63, %64 : vector<8x64xf32>
    %c54 = arith.constant 54 : index
    %c0_29 = arith.constant 0 : index
    %66 = vector.load %arg20[%c54, %c0_29] : memref<72x64xf32, #tpu.memory_space<vmem>>, vector<8x64xf32>
    tpu.vector_store %arg20[%c54, %c0_29], %65 {strides = array<i32>} : memref<72x64xf32, #tpu.memory_space<vmem>>, vector<8x64xf32>,
    %67 = vector.extract_strided_slice %54 {offsets = [26, 0], sizes = [1, 64], strides = [1, 1]} : vector<36x64xf32> to vector<1x64xf32>
    %c62 = arith.constant 62 : index
    %c0_30 = arith.constant 0 : index
    %68 = vector.load %arg20[%c62, %c0_30] : memref<72x64xf32, #tpu.memory_space<vmem>>, vector<1x64xf32>
    tpu.vector_store %arg20[%c62, %c0_30], %67 {strides = array<i32>} : memref<72x64xf32, #tpu.memory_space<vmem>>, vector<1x64xf32>,
    %69 = vector.extract_strided_slice %54 {offsets = [27, 0], sizes = [8, 64], strides = [1, 1]} : vector<36x64xf32> to vector<8x64xf32>
    %70 = vector.extract_strided_slice %52 {offsets = [10, 0], sizes = [8, 64], strides = [1, 1]} : vector<36x64xf32> to vector<8x64xf32>
    %71 = arith.addf %69, %70 : vector<8x64xf32>
    %c63 = arith.constant 63 : index
    %c0_31 = arith.constant 0 : index
    %72 = vector.load %arg20[%c63, %c0_31] : memref<72x64xf32, #tpu.memory_space<vmem>>, vector<8x64xf32>
    tpu.vector_store %arg20[%c63, %c0_31], %71 {strides = array<i32>} : memref<72x64xf32, #tpu.memory_space<vmem>>, vector<8x64xf32>,
    %73 = vector.extract_strided_slice %54 {offsets = [35, 0], sizes = [1, 64], strides = [1, 1]} : vector<36x64xf32> to vector<1x64xf32>
    %c71 = arith.constant 71 : index
    %c0_32 = arith.constant 0 : index
    %74 = vector.load %arg20[%c71, %c0_32] : memref<72x64xf32, #tpu.memory_space<vmem>>, vector<1x64xf32>
    tpu.vector_store %arg20[%c71, %c0_32], %73 {strides = array<i32>} : memref<72x64xf32, #tpu.memory_space<vmem>>, vector<1x64xf32>,
    %c0_33 = arith.constant 0 : index
    %c0_34 = arith.constant 0 : index
    %75 = vector.load %arg20[%c0_33, %c0_34] : memref<72x64xf32, #tpu.memory_space<vmem>>, vector<72x64xf32>
    %76 = arith.mulf %75, %75 : vector<72x64xf32>
    %77 = tpu.concatenate %75, %76 in 1 : vector<72x64xf32>, vector<72x64xf32> -> vector<72x128xf32>
    %cst_35 = arith.constant dense<0.000000e+00> : vector<128xf32>
    %78 = vector.multi_reduction <add>, %77, %cst_35 [0] : vector<72x128xf32> to vector<128xf32>
    %79 = vector.shape_cast %78 : vector<128xf32> to vector<1x128xf32>
    %80 = vector.extract_strided_slice %79 {offsets = [0, 0], sizes = [1, 64], strides = [1, 1]} : vector<1x128xf32> to vector<1x64xf32>
    %cst_36 = arith.constant 7.200000e+01 : f32
    %81 = vector.broadcast %cst_36 : f32 to vector<1x64xf32>
    %82 = arith.divf %80, %81 : vector<1x64xf32>
    %83 = vector.extract_strided_slice %79 {offsets = [0, 64], sizes = [1, 64], strides = [1, 1]} : vector<1x128xf32> to vector<1x64xf32>
    %cst_37 = arith.constant 7.200000e+01 : f32
    %84 = vector.broadcast %cst_37 : f32 to vector<1x64xf32>
    %85 = arith.divf %83, %84 : vector<1x64xf32>
    %86 = arith.mulf %82, %82 : vector<1x64xf32>
    %87 = arith.subf %85, %86 : vector<1x64xf32>
    %cst_38 = arith.constant 0.000000e+00 : f32
    %88 = vector.broadcast %cst_38 : f32 to vector<1x64xf32>
    %89 = arith.maximumf %87, %88 : vector<1x64xf32>
    %c0_39 = arith.constant 0 : index
    %c0_40 = arith.constant 0 : index
    %90 = vector.load %arg6[%c0_39, %c0_40] : memref<1x64xf32, #tpu.memory_space<vmem>>, vector<1x64xf32>
    %cst_41 = arith.constant 9.99999974E-6 : f32
    %91 = vector.broadcast %cst_41 : f32 to vector<1x64xf32>
    %92 = arith.addf %89, %91 : vector<1x64xf32>
    %93 = math.rsqrt %92 : vector<1x64xf32>
    %94 = arith.mulf %90, %93 : vector<1x64xf32>
    %c0_42 = arith.constant 0 : index
    %c0_43 = arith.constant 0 : index
    %95 = vector.load %arg7[%c0_42, %c0_43] : memref<1x64xf32, #tpu.memory_space<vmem>>, vector<1x64xf32>
    %96 = arith.mulf %82, %94 : vector<1x64xf32>
    %97 = arith.subf %95, %96 : vector<1x64xf32>
    %98 = vector.broadcast %94 : vector<1x64xf32> to vector<72x64xf32>
    %99 = arith.mulf %75, %98 : vector<72x64xf32>
    %100 = vector.broadcast %97 : vector<1x64xf32> to vector<72x64xf32>
    %101 = arith.addf %99, %100 : vector<72x64xf32>
    %cst_44 = arith.constant 0.000000e+00 : f32
    %102 = vector.broadcast %cst_44 : f32 to vector<72x64xf32>
    %103 = arith.maximumf %101, %102 : vector<72x64xf32>
    %104 = arith.truncf %103 : vector<72x64xf32> to vector<72x64xbf16>
    %c0_45 = arith.constant 0 : index
    %c0_46 = arith.constant 0 : index
    %105 = vector.load %arg8[%c0_45, %c0_46] : memref<64x96xbf16, #tpu.memory_space<vmem>>, vector<64x96xbf16>
    %cst_47 = arith.constant dense<0.000000e+00> : vector<72x96xf32>
    %106 = tpu.matmul %104, %105, %cst_47 {dimension_numbers = #tpu.dot_dimension_numbers<[1], [0], [0], [1], [0, 0, 1, 1], [], []>} : vector<72x64xbf16>, vector<64x96xbf16>, vector<72x96xf32> -> vector<72x96xf32>
    %107 = vector.extract_strided_slice %106 {offsets = [0, 0], sizes = [72, 32], strides = [1, 1]} : vector<72x96xf32> to vector<72x32xf32>
    %108 = vector.extract_strided_slice %106 {offsets = [0, 32], sizes = [72, 32], strides = [1, 1]} : vector<72x96xf32> to vector<72x32xf32>
    %109 = vector.extract_strided_slice %106 {offsets = [0, 64], sizes = [72, 32], strides = [1, 1]} : vector<72x96xf32> to vector<72x32xf32>
    %110 = vector.extract_strided_slice %108 {offsets = [0, 0], sizes = [18, 32], strides = [1, 1]} : vector<72x32xf32> to vector<18x32xf32>
    %c0_48 = arith.constant 0 : index
    %c0_49 = arith.constant 0 : index
    %111 = vector.load %arg21[%c0_48, %c0_49] : memref<144x32xf32, #tpu.memory_space<vmem>>, vector<18x32xf32>
    tpu.vector_store %arg21[%c0_48, %c0_49], %110 {strides = array<i32>} : memref<144x32xf32, #tpu.memory_space<vmem>>, vector<18x32xf32>,
    %112 = vector.extract_strided_slice %109 {offsets = [0, 0], sizes = [18, 32], strides = [1, 1]} : vector<72x32xf32> to vector<18x32xf32>
    %113 = vector.extract_strided_slice %107 {offsets = [18, 0], sizes = [18, 32], strides = [1, 1]} : vector<72x32xf32> to vector<18x32xf32>
    %114 = arith.addf %112, %113 : vector<18x32xf32>
    %c18_50 = arith.constant 18 : index
    %c0_51 = arith.constant 0 : index
    %115 = vector.load %arg21[%c18_50, %c0_51] : memref<144x32xf32, #tpu.memory_space<vmem>>, vector<18x32xf32>
    tpu.vector_store %arg21[%c18_50, %c0_51], %114 {strides = array<i32>} : memref<144x32xf32, #tpu.memory_space<vmem>>, vector<18x32xf32>,
    %116 = vector.extract_strided_slice %108 {offsets = [18, 0], sizes = [18, 32], strides = [1, 1]} : vector<72x32xf32> to vector<18x32xf32>
    %c36_52 = arith.constant 36 : index
    %c0_53 = arith.constant 0 : index
    %117 = vector.load %arg21[%c36_52, %c0_53] : memref<144x32xf32, #tpu.memory_space<vmem>>, vector<18x32xf32>
    tpu.vector_store %arg21[%c36_52, %c0_53], %116 {strides = array<i32>} : memref<144x32xf32, #tpu.memory_space<vmem>>, vector<18x32xf32>,
    %118 = vector.extract_strided_slice %109 {offsets = [18, 0], sizes = [18, 32], strides = [1, 1]} : vector<72x32xf32> to vector<18x32xf32>
    %119 = vector.extract_strided_slice %107 {offsets = [36, 0], sizes = [18, 32], strides = [1, 1]} : vector<72x32xf32> to vector<18x32xf32>
    %120 = arith.addf %118, %119 : vector<18x32xf32>
    %c54_54 = arith.constant 54 : index
    %c0_55 = arith.constant 0 : index
    %121 = vector.load %arg21[%c54_54, %c0_55] : memref<144x32xf32, #tpu.memory_space<vmem>>, vector<18x32xf32>
    tpu.vector_store %arg21[%c54_54, %c0_55], %120 {strides = array<i32>} : memref<144x32xf32, #tpu.memory_space<vmem>>, vector<18x32xf32>,
    %122 = vector.extract_strided_slice %108 {offsets = [36, 0], sizes = [18, 32], strides = [1, 1]} : vector<72x32xf32> to vector<18x32xf32>
    %c72 = arith.constant 72 : index
    %c0_56 = arith.constant 0 : index
    %123 = vector.load %arg21[%c72, %c0_56] : memref<144x32xf32, #tpu.memory_space<vmem>>, vector<18x32xf32>
    tpu.vector_store %arg21[%c72, %c0_56], %122 {strides = array<i32>} : memref<144x32xf32, #tpu.memory_space<vmem>>, vector<18x32xf32>,
    %124 = vector.extract_strided_slice %109 {offsets = [36, 0], sizes = [18, 32], strides = [1, 1]} : vector<72x32xf32> to vector<18x32xf32>
    %125 = vector.extract_strided_slice %107 {offsets = [54, 0], sizes = [18, 32], strides = [1, 1]} : vector<72x32xf32> to vector<18x32xf32>
    %126 = arith.addf %124, %125 : vector<18x32xf32>
    %c90 = arith.constant 90 : index
    %c0_57 = arith.constant 0 : index
    %127 = vector.load %arg21[%c90, %c0_57] : memref<144x32xf32, #tpu.memory_space<vmem>>, vector<18x32xf32>
    tpu.vector_store %arg21[%c90, %c0_57], %126 {strides = array<i32>} : memref<144x32xf32, #tpu.memory_space<vmem>>, vector<18x32xf32>,
    %128 = vector.extract_strided_slice %108 {offsets = [54, 0], sizes = [18, 32], strides = [1, 1]} : vector<72x32xf32> to vector<18x32xf32>
    %c108 = arith.constant 108 : index
    %c0_58 = arith.constant 0 : index
    %129 = vector.load %arg21[%c108, %c0_58] : memref<144x32xf32, #tpu.memory_space<vmem>>, vector<18x32xf32>
    tpu.vector_store %arg21[%c108, %c0_58], %128 {strides = array<i32>} : memref<144x32xf32, #tpu.memory_space<vmem>>, vector<18x32xf32>,
    %130 = vector.extract_strided_slice %109 {offsets = [54, 0], sizes = [8, 32], strides = [1, 1]} : vector<72x32xf32> to vector<8x32xf32>
    %131 = vector.extract_strided_slice %107 {offsets = [1, 0], sizes = [8, 32], strides = [1, 1]} : vector<72x32xf32> to vector<8x32xf32>
    %132 = arith.addf %130, %131 : vector<8x32xf32>
    %c126 = arith.constant 126 : index
    %c0_59 = arith.constant 0 : index
    %133 = vector.load %arg21[%c126, %c0_59] : memref<144x32xf32, #tpu.memory_space<vmem>>, vector<8x32xf32>
    tpu.vector_store %arg21[%c126, %c0_59], %132 {strides = array<i32>} : memref<144x32xf32, #tpu.memory_space<vmem>>, vector<8x32xf32>,
    %134 = vector.extract_strided_slice %109 {offsets = [62, 0], sizes = [1, 32], strides = [1, 1]} : vector<72x32xf32> to vector<1x32xf32>
    %c134 = arith.constant 134 : index
    %c0_60 = arith.constant 0 : index
    %135 = vector.load %arg21[%c134, %c0_60] : memref<144x32xf32, #tpu.memory_space<vmem>>, vector<1x32xf32>
    tpu.vector_store %arg21[%c134, %c0_60], %134 {strides = array<i32>} : memref<144x32xf32, #tpu.memory_space<vmem>>, vector<1x32xf32>,
    %136 = vector.extract_strided_slice %109 {offsets = [63, 0], sizes = [8, 32], strides = [1, 1]} : vector<72x32xf32> to vector<8x32xf32>
    %137 = vector.extract_strided_slice %107 {offsets = [10, 0], sizes = [8, 32], strides = [1, 1]} : vector<72x32xf32> to vector<8x32xf32>
    %138 = arith.addf %136, %137 : vector<8x32xf32>
    %c135 = arith.constant 135 : index
    %c0_61 = arith.constant 0 : index
    %139 = vector.load %arg21[%c135, %c0_61] : memref<144x32xf32, #tpu.memory_space<vmem>>, vector<8x32xf32>
    tpu.vector_store %arg21[%c135, %c0_61], %138 {strides = array<i32>} : memref<144x32xf32, #tpu.memory_space<vmem>>, vector<8x32xf32>,
    %140 = vector.extract_strided_slice %109 {offsets = [71, 0], sizes = [1, 32], strides = [1, 1]} : vector<72x32xf32> to vector<1x32xf32>
    %c143 = arith.constant 143 : index
    %c0_62 = arith.constant 0 : index
    %141 = vector.load %arg21[%c143, %c0_62] : memref<144x32xf32, #tpu.memory_space<vmem>>, vector<1x32xf32>
    tpu.vector_store %arg21[%c143, %c0_62], %140 {strides = array<i32>} : memref<144x32xf32, #tpu.memory_space<vmem>>, vector<1x32xf32>,
    %c0_63 = arith.constant 0 : index
    %c0_64 = arith.constant 0 : index
    %142 = vector.load %arg21[%c0_63, %c0_64] : memref<144x32xf32, #tpu.memory_space<vmem>>, vector<144x32xf32>
    %143 = arith.mulf %142, %142 : vector<144x32xf32>
    %144 = tpu.concatenate %142, %143 in 1 : vector<144x32xf32>, vector<144x32xf32> -> vector<144x64xf32>
    %cst_65 = arith.constant dense<0.000000e+00> : vector<64xf32>
    %145 = vector.multi_reduction <add>, %144, %cst_65 [0] : vector<144x64xf32> to vector<64xf32>
    %146 = vector.shape_cast %145 : vector<64xf32> to vector<1x64xf32>
    %147 = vector.extract_strided_slice %146 {offsets = [0, 0], sizes = [1, 32], strides = [1, 1]} : vector<1x64xf32> to vector<1x32xf32>
    %cst_66 = arith.constant 1.440000e+02 : f32
    %148 = vector.broadcast %cst_66 : f32 to vector<1x32xf32>
    %149 = arith.divf %147, %148 : vector<1x32xf32>
    %150 = vector.extract_strided_slice %146 {offsets = [0, 32], sizes = [1, 32], strides = [1, 1]} : vector<1x64xf32> to vector<1x32xf32>
    %cst_67 = arith.constant 1.440000e+02 : f32
    %151 = vector.broadcast %cst_67 : f32 to vector<1x32xf32>
    %152 = arith.divf %150, %151 : vector<1x32xf32>
    %153 = arith.mulf %149, %149 : vector<1x32xf32>
    %154 = arith.subf %152, %153 : vector<1x32xf32>
    %cst_68 = arith.constant 0.000000e+00 : f32
    %155 = vector.broadcast %cst_68 : f32 to vector<1x32xf32>
    %156 = arith.maximumf %154, %155 : vector<1x32xf32>
    %c0_69 = arith.constant 0 : index
    %c0_70 = arith.constant 0 : index
    %157 = vector.load %arg9[%c0_69, %c0_70] : memref<1x32xf32, #tpu.memory_space<vmem>>, vector<1x32xf32>
    %cst_71 = arith.constant 9.99999974E-6 : f32
    %158 = vector.broadcast %cst_71 : f32 to vector<1x32xf32>
    %159 = arith.addf %156, %158 : vector<1x32xf32>
    %160 = math.rsqrt %159 : vector<1x32xf32>
    %161 = arith.mulf %157, %160 : vector<1x32xf32>
    %c0_72 = arith.constant 0 : index
    %c0_73 = arith.constant 0 : index
    %162 = vector.load %arg10[%c0_72, %c0_73] : memref<1x32xf32, #tpu.memory_space<vmem>>, vector<1x32xf32>
    %163 = arith.mulf %149, %161 : vector<1x32xf32>
    %164 = arith.subf %162, %163 : vector<1x32xf32>
    %165 = vector.broadcast %161 : vector<1x32xf32> to vector<144x32xf32>
    %166 = arith.mulf %142, %165 : vector<144x32xf32>
    %167 = vector.broadcast %164 : vector<1x32xf32> to vector<144x32xf32>
    %168 = arith.addf %166, %167 : vector<144x32xf32>
    %cst_74 = arith.constant 0.000000e+00 : f32
    %169 = vector.broadcast %cst_74 : f32 to vector<144x32xf32>
    %170 = arith.maximumf %168, %169 : vector<144x32xf32>
    %171 = arith.truncf %170 : vector<144x32xf32> to vector<144x32xbf16>
    %c0_75 = arith.constant 0 : index
    %c0_76 = arith.constant 0 : index
    %172 = vector.load %arg11[%c0_75, %c0_76] : memref<32x48xbf16, #tpu.memory_space<vmem>>, vector<32x48xbf16>
    %cst_77 = arith.constant dense<0.000000e+00> : vector<144x48xf32>
    %173 = tpu.matmul %171, %172, %cst_77 {dimension_numbers = #tpu.dot_dimension_numbers<[1], [0], [0], [1], [0, 0, 1, 1], [], []>} : vector<144x32xbf16>, vector<32x48xbf16>, vector<144x48xf32> -> vector<144x48xf32>
    %174 = vector.extract_strided_slice %173 {offsets = [0, 0], sizes = [144, 16], strides = [1, 1]} : vector<144x48xf32> to vector<144x16xf32>
    %175 = vector.extract_strided_slice %173 {offsets = [0, 16], sizes = [144, 16], strides = [1, 1]} : vector<144x48xf32> to vector<144x16xf32>
    %176 = vector.extract_strided_slice %173 {offsets = [0, 32], sizes = [144, 16], strides = [1, 1]} : vector<144x48xf32> to vector<144x16xf32>
    %177 = vector.extract_strided_slice %175 {offsets = [0, 0], sizes = [18, 16], strides = [1, 1]} : vector<144x16xf32> to vector<18x16xf32>
    %c0_78 = arith.constant 0 : index
    %c0_79 = arith.constant 0 : index
    %178 = vector.load %arg22[%c0_78, %c0_79] : memref<288x16xf32, #tpu.memory_space<vmem>>, vector<18x16xf32>
    tpu.vector_store %arg22[%c0_78, %c0_79], %177 {strides = array<i32>} : memref<288x16xf32, #tpu.memory_space<vmem>>, vector<18x16xf32>,
    %179 = vector.extract_strided_slice %176 {offsets = [0, 0], sizes = [18, 16], strides = [1, 1]} : vector<144x16xf32> to vector<18x16xf32>
    %180 = vector.extract_strided_slice %174 {offsets = [18, 0], sizes = [18, 16], strides = [1, 1]} : vector<144x16xf32> to vector<18x16xf32>
    %181 = arith.addf %179, %180 : vector<18x16xf32>
    %c18_80 = arith.constant 18 : index
    %c0_81 = arith.constant 0 : index
    %182 = vector.load %arg22[%c18_80, %c0_81] : memref<288x16xf32, #tpu.memory_space<vmem>>, vector<18x16xf32>
    tpu.vector_store %arg22[%c18_80, %c0_81], %181 {strides = array<i32>} : memref<288x16xf32, #tpu.memory_space<vmem>>, vector<18x16xf32>,
    %183 = vector.extract_strided_slice %175 {offsets = [18, 0], sizes = [18, 16], strides = [1, 1]} : vector<144x16xf32> to vector<18x16xf32>
    %c36_82 = arith.constant 36 : index
    %c0_83 = arith.constant 0 : index
    %184 = vector.load %arg22[%c36_82, %c0_83] : memref<288x16xf32, #tpu.memory_space<vmem>>, vector<18x16xf32>
    tpu.vector_store %arg22[%c36_82, %c0_83], %183 {strides = array<i32>} : memref<288x16xf32, #tpu.memory_space<vmem>>, vector<18x16xf32>,
    %185 = vector.extract_strided_slice %176 {offsets = [18, 0], sizes = [18, 16], strides = [1, 1]} : vector<144x16xf32> to vector<18x16xf32>
    %186 = vector.extract_strided_slice %174 {offsets = [36, 0], sizes = [18, 16], strides = [1, 1]} : vector<144x16xf32> to vector<18x16xf32>
    %187 = arith.addf %185, %186 : vector<18x16xf32>
    %c54_84 = arith.constant 54 : index
    %c0_85 = arith.constant 0 : index
    %188 = vector.load %arg22[%c54_84, %c0_85] : memref<288x16xf32, #tpu.memory_space<vmem>>, vector<18x16xf32>
    tpu.vector_store %arg22[%c54_84, %c0_85], %187 {strides = array<i32>} : memref<288x16xf32, #tpu.memory_space<vmem>>, vector<18x16xf32>,
    %189 = vector.extract_strided_slice %175 {offsets = [36, 0], sizes = [18, 16], strides = [1, 1]} : vector<144x16xf32> to vector<18x16xf32>
    %c72_86 = arith.constant 72 : index
    %c0_87 = arith.constant 0 : index
    %190 = vector.load %arg22[%c72_86, %c0_87] : memref<288x16xf32, #tpu.memory_space<vmem>>, vector<18x16xf32>
    tpu.vector_store %arg22[%c72_86, %c0_87], %189 {strides = array<i32>} : memref<288x16xf32, #tpu.memory_space<vmem>>, vector<18x16xf32>,
    %191 = vector.extract_strided_slice %176 {offsets = [36, 0], sizes = [18, 16], strides = [1, 1]} : vector<144x16xf32> to vector<18x16xf32>
    %192 = vector.extract_strided_slice %174 {offsets = [54, 0], sizes = [18, 16], strides = [1, 1]} : vector<144x16xf32> to vector<18x16xf32>
    %193 = arith.addf %191, %192 : vector<18x16xf32>
    %c90_88 = arith.constant 90 : index
    %c0_89 = arith.constant 0 : index
    %194 = vector.load %arg22[%c90_88, %c0_89] : memref<288x16xf32, #tpu.memory_space<vmem>>, vector<18x16xf32>
    tpu.vector_store %arg22[%c90_88, %c0_89], %193 {strides = array<i32>} : memref<288x16xf32, #tpu.memory_space<vmem>>, vector<18x16xf32>,
    %195 = vector.extract_strided_slice %175 {offsets = [54, 0], sizes = [18, 16], strides = [1, 1]} : vector<144x16xf32> to vector<18x16xf32>
    %c108_90 = arith.constant 108 : index
    %c0_91 = arith.constant 0 : index
    %196 = vector.load %arg22[%c108_90, %c0_91] : memref<288x16xf32, #tpu.memory_space<vmem>>, vector<18x16xf32>
    tpu.vector_store %arg22[%c108_90, %c0_91], %195 {strides = array<i32>} : memref<288x16xf32, #tpu.memory_space<vmem>>, vector<18x16xf32>,
    %197 = vector.extract_strided_slice %176 {offsets = [54, 0], sizes = [18, 16], strides = [1, 1]} : vector<144x16xf32> to vector<18x16xf32>
    %198 = vector.extract_strided_slice %174 {offsets = [72, 0], sizes = [18, 16], strides = [1, 1]} : vector<144x16xf32> to vector<18x16xf32>
    %199 = arith.addf %197, %198 : vector<18x16xf32>
    %c126_92 = arith.constant 126 : index
    %c0_93 = arith.constant 0 : index
    %200 = vector.load %arg22[%c126_92, %c0_93] : memref<288x16xf32, #tpu.memory_space<vmem>>, vector<18x16xf32>
    tpu.vector_store %arg22[%c126_92, %c0_93], %199 {strides = array<i32>} : memref<288x16xf32, #tpu.memory_space<vmem>>, vector<18x16xf32>,
    %201 = vector.extract_strided_slice %175 {offsets = [72, 0], sizes = [18, 16], strides = [1, 1]} : vector<144x16xf32> to vector<18x16xf32>
    %c144 = arith.constant 144 : index
    %c0_94 = arith.constant 0 : index
    %202 = vector.load %arg22[%c144, %c0_94] : memref<288x16xf32, #tpu.memory_space<vmem>>, vector<18x16xf32>
    tpu.vector_store %arg22[%c144, %c0_94], %201 {strides = array<i32>} : memref<288x16xf32, #tpu.memory_space<vmem>>, vector<18x16xf32>,
    %203 = vector.extract_strided_slice %176 {offsets = [72, 0], sizes = [18, 16], strides = [1, 1]} : vector<144x16xf32> to vector<18x16xf32>
    %204 = vector.extract_strided_slice %174 {offsets = [90, 0], sizes = [18, 16], strides = [1, 1]} : vector<144x16xf32> to vector<18x16xf32>
    %205 = arith.addf %203, %204 : vector<18x16xf32>
    %c162 = arith.constant 162 : index
    %c0_95 = arith.constant 0 : index
    %206 = vector.load %arg22[%c162, %c0_95] : memref<288x16xf32, #tpu.memory_space<vmem>>, vector<18x16xf32>
    tpu.vector_store %arg22[%c162, %c0_95], %205 {strides = array<i32>} : memref<288x16xf32, #tpu.memory_space<vmem>>, vector<18x16xf32>,
    %207 = vector.extract_strided_slice %175 {offsets = [90, 0], sizes = [18, 16], strides = [1, 1]} : vector<144x16xf32> to vector<18x16xf32>
    %c180 = arith.constant 180 : index
    %c0_96 = arith.constant 0 : index
    %208 = vector.load %arg22[%c180, %c0_96] : memref<288x16xf32, #tpu.memory_space<vmem>>, vector<18x16xf32>
    tpu.vector_store %arg22[%c180, %c0_96], %207 {strides = array<i32>} : memref<288x16xf32, #tpu.memory_space<vmem>>, vector<18x16xf32>,
    %209 = vector.extract_strided_slice %176 {offsets = [90, 0], sizes = [18, 16], strides = [1, 1]} : vector<144x16xf32> to vector<18x16xf32>
    %210 = vector.extract_strided_slice %174 {offsets = [108, 0], sizes = [18, 16], strides = [1, 1]} : vector<144x16xf32> to vector<18x16xf32>
    %211 = arith.addf %209, %210 : vector<18x16xf32>
    %c198 = arith.constant 198 : index
    %c0_97 = arith.constant 0 : index
    %212 = vector.load %arg22[%c198, %c0_97] : memref<288x16xf32, #tpu.memory_space<vmem>>, vector<18x16xf32>
    tpu.vector_store %arg22[%c198, %c0_97], %211 {strides = array<i32>} : memref<288x16xf32, #tpu.memory_space<vmem>>, vector<18x16xf32>,
    %213 = vector.extract_strided_slice %175 {offsets = [108, 0], sizes = [18, 16], strides = [1, 1]} : vector<144x16xf32> to vector<18x16xf32>
    %c216 = arith.constant 216 : index
    %c0_98 = arith.constant 0 : index
    %214 = vector.load %arg22[%c216, %c0_98] : memref<288x16xf32, #tpu.memory_space<vmem>>, vector<18x16xf32>
    tpu.vector_store %arg22[%c216, %c0_98], %213 {strides = array<i32>} : memref<288x16xf32, #tpu.memory_space<vmem>>, vector<18x16xf32>,
    %215 = vector.extract_strided_slice %176 {offsets = [108, 0], sizes = [18, 16], strides = [1, 1]} : vector<144x16xf32> to vector<18x16xf32>
    %216 = vector.extract_strided_slice %174 {offsets = [126, 0], sizes = [18, 16], strides = [1, 1]} : vector<144x16xf32> to vector<18x16xf32>
    %217 = arith.addf %215, %216 : vector<18x16xf32>
    %c234 = arith.constant 234 : index
    %c0_99 = arith.constant 0 : index
    %218 = vector.load %arg22[%c234, %c0_99] : memref<288x16xf32, #tpu.memory_space<vmem>>, vector<18x16xf32>
    tpu.vector_store %arg22[%c234, %c0_99], %217 {strides = array<i32>} : memref<288x16xf32, #tpu.memory_space<vmem>>, vector<18x16xf32>,
    %219 = vector.extract_strided_slice %175 {offsets = [126, 0], sizes = [18, 16], strides = [1, 1]} : vector<144x16xf32> to vector<18x16xf32>
    %c252 = arith.constant 252 : index
    %c0_100 = arith.constant 0 : index
    %220 = vector.load %arg22[%c252, %c0_100] : memref<288x16xf32, #tpu.memory_space<vmem>>, vector<18x16xf32>
    tpu.vector_store %arg22[%c252, %c0_100], %219 {strides = array<i32>} : memref<288x16xf32, #tpu.memory_space<vmem>>, vector<18x16xf32>,
    %221 = vector.extract_strided_slice %176 {offsets = [126, 0], sizes = [8, 16], strides = [1, 1]} : vector<144x16xf32> to vector<8x16xf32>
    %222 = vector.extract_strided_slice %174 {offsets = [1, 0], sizes = [8, 16], strides = [1, 1]} : vector<144x16xf32> to vector<8x16xf32>
    %223 = arith.addf %221, %222 : vector<8x16xf32>
    %c270 = arith.constant 270 : index
    %c0_101 = arith.constant 0 : index
    %224 = vector.load %arg22[%c270, %c0_101] : memref<288x16xf32, #tpu.memory_space<vmem>>, vector<8x16xf32>
    tpu.vector_store %arg22[%c270, %c0_101], %223 {strides = array<i32>} : memref<288x16xf32, #tpu.memory_space<vmem>>, vector<8x16xf32>,
    %225 = vector.extract_strided_slice %176 {offsets = [134, 0], sizes = [1, 16], strides = [1, 1]} : vector<144x16xf32> to vector<1x16xf32>
    %c278 = arith.constant 278 : index
    %c0_102 = arith.constant 0 : index
    %226 = vector.load %arg22[%c278, %c0_102] : memref<288x16xf32, #tpu.memory_space<vmem>>, vector<1x16xf32>
    tpu.vector_store %arg22[%c278, %c0_102], %225 {strides = array<i32>} : memref<288x16xf32, #tpu.memory_space<vmem>>, vector<1x16xf32>,
    %227 = vector.extract_strided_slice %176 {offsets = [135, 0], sizes = [8, 16], strides = [1, 1]} : vector<144x16xf32> to vector<8x16xf32>
    %228 = vector.extract_strided_slice %174 {offsets = [10, 0], sizes = [8, 16], strides = [1, 1]} : vector<144x16xf32> to vector<8x16xf32>
    %229 = arith.addf %227, %228 : vector<8x16xf32>
    %c279 = arith.constant 279 : index
    %c0_103 = arith.constant 0 : index
    %230 = vector.load %arg22[%c279, %c0_103] : memref<288x16xf32, #tpu.memory_space<vmem>>, vector<8x16xf32>
    tpu.vector_store %arg22[%c279, %c0_103], %229 {strides = array<i32>} : memref<288x16xf32, #tpu.memory_space<vmem>>, vector<8x16xf32>,
    %231 = vector.extract_strided_slice %176 {offsets = [143, 0], sizes = [1, 16], strides = [1, 1]} : vector<144x16xf32> to vector<1x16xf32>
    %c287 = arith.constant 287 : index
    %c0_104 = arith.constant 0 : index
    %232 = vector.load %arg22[%c287, %c0_104] : memref<288x16xf32, #tpu.memory_space<vmem>>, vector<1x16xf32>
    tpu.vector_store %arg22[%c287, %c0_104], %231 {strides = array<i32>} : memref<288x16xf32, #tpu.memory_space<vmem>>, vector<1x16xf32>,
    %c0_105 = arith.constant 0 : index
    %c0_106 = arith.constant 0 : index
    %233 = vector.load %arg22[%c0_105, %c0_106] : memref<288x16xf32, #tpu.memory_space<vmem>>, vector<288x16xf32>
    %234 = arith.mulf %233, %233 : vector<288x16xf32>
    %235 = tpu.concatenate %233, %234 in 1 : vector<288x16xf32>, vector<288x16xf32> -> vector<288x32xf32>
    %cst_107 = arith.constant dense<0.000000e+00> : vector<32xf32>
    %236 = vector.multi_reduction <add>, %235, %cst_107 [0] : vector<288x32xf32> to vector<32xf32>
    %237 = vector.shape_cast %236 : vector<32xf32> to vector<1x32xf32>
    %238 = vector.extract_strided_slice %237 {offsets = [0, 0], sizes = [1, 16], strides = [1, 1]} : vector<1x32xf32> to vector<1x16xf32>
    %cst_108 = arith.constant 2.880000e+02 : f32
    %239 = vector.broadcast %cst_108 : f32 to vector<1x16xf32>
    %240 = arith.divf %238, %239 : vector<1x16xf32>
    %241 = vector.extract_strided_slice %237 {offsets = [0, 16], sizes = [1, 16], strides = [1, 1]} : vector<1x32xf32> to vector<1x16xf32>
    %cst_109 = arith.constant 2.880000e+02 : f32
    %242 = vector.broadcast %cst_109 : f32 to vector<1x16xf32>
    %243 = arith.divf %241, %242 : vector<1x16xf32>
    %244 = arith.mulf %240, %240 : vector<1x16xf32>
    %245 = arith.subf %243, %244 : vector<1x16xf32>
    %cst_110 = arith.constant 0.000000e+00 : f32
    %246 = vector.broadcast %cst_110 : f32 to vector<1x16xf32>
    %247 = arith.maximumf %245, %246 : vector<1x16xf32>
    %c0_111 = arith.constant 0 : index
    %c0_112 = arith.constant 0 : index
    %248 = vector.load %arg12[%c0_111, %c0_112] : memref<1x16xf32, #tpu.memory_space<vmem>>, vector<1x16xf32>
    %cst_113 = arith.constant 9.99999974E-6 : f32
    %249 = vector.broadcast %cst_113 : f32 to vector<1x16xf32>
    %250 = arith.addf %247, %249 : vector<1x16xf32>
    %251 = math.rsqrt %250 : vector<1x16xf32>
    %252 = arith.mulf %248, %251 : vector<1x16xf32>
    %c0_114 = arith.constant 0 : index
    %c0_115 = arith.constant 0 : index
    %253 = vector.load %arg13[%c0_114, %c0_115] : memref<1x16xf32, #tpu.memory_space<vmem>>, vector<1x16xf32>
    %254 = arith.mulf %240, %252 : vector<1x16xf32>
    %255 = arith.subf %253, %254 : vector<1x16xf32>
    %256 = vector.broadcast %252 : vector<1x16xf32> to vector<288x16xf32>
    %257 = arith.mulf %233, %256 : vector<288x16xf32>
    %258 = vector.broadcast %255 : vector<1x16xf32> to vector<288x16xf32>
    %259 = arith.addf %257, %258 : vector<288x16xf32>
    %cst_116 = arith.constant 0.000000e+00 : f32
    %260 = vector.broadcast %cst_116 : f32 to vector<288x16xf32>
    %261 = arith.maximumf %259, %260 : vector<288x16xf32>
    %262 = arith.truncf %261 : vector<288x16xf32> to vector<288x16xbf16>
    %c0_117 = arith.constant 0 : index
    %c0_118 = arith.constant 0 : index
    %263 = vector.load %arg14[%c0_117, %c0_118] : memref<16x64xbf16, #tpu.memory_space<vmem>>, vector<16x64xbf16>
    %cst_119 = arith.constant dense<0.000000e+00> : vector<288x64xf32>
    %264 = tpu.matmul %262, %263, %cst_119 {dimension_numbers = #tpu.dot_dimension_numbers<[1], [0], [0], [1], [0, 0, 1, 1], [], []>} : vector<288x16xbf16>, vector<16x64xbf16>, vector<288x64xf32> -> vector<288x64xf32>
    %265 = vector.extract_strided_slice %264 {offsets = [0, 0], sizes = [288, 32], strides = [1, 1]} : vector<288x64xf32> to vector<288x32xf32>
    %266 = vector.extract_strided_slice %264 {offsets = [0, 32], sizes = [288, 32], strides = [1, 1]} : vector<288x64xf32> to vector<288x32xf32>
    %267 = vector.extract_strided_slice %265 {offsets = [0, 0], sizes = [1, 32], strides = [1, 1]} : vector<288x32xf32> to vector<1x32xf32>
    %c0_120 = arith.constant 0 : index
    %c0_121 = arith.constant 0 : index
    %268 = vector.load %arg17[%c0_120, %c0_121] : memref<18x512xf32, #tpu.memory_space<vmem>>, vector<1x32xf32>
    tpu.vector_store %arg17[%c0_120, %c0_121], %267 {strides = array<i32>} : memref<18x512xf32, #tpu.memory_space<vmem>>, vector<1x32xf32>,
    %269 = vector.extract_strided_slice %265 {offsets = [1, 0], sizes = [8, 32], strides = [1, 1]} : vector<288x32xf32> to vector<8x32xf32>
    %270 = vector.extract_strided_slice %266 {offsets = [270, 0], sizes = [8, 32], strides = [1, 1]} : vector<288x32xf32> to vector<8x32xf32>
    %271 = arith.addf %269, %270 : vector<8x32xf32>
    %c1_122 = arith.constant 1 : index
    %c0_123 = arith.constant 0 : index
    %272 = vector.load %arg17[%c1_122, %c0_123] : memref<18x512xf32, #tpu.memory_space<vmem>>, vector<8x32xf32>
    tpu.vector_store %arg17[%c1_122, %c0_123], %271 {strides = array<i32>} : memref<18x512xf32, #tpu.memory_space<vmem>>, vector<8x32xf32>,
    %273 = vector.extract_strided_slice %265 {offsets = [9, 0], sizes = [1, 32], strides = [1, 1]} : vector<288x32xf32> to vector<1x32xf32>
    %c9_124 = arith.constant 9 : index
    %c0_125 = arith.constant 0 : index
    %274 = vector.load %arg17[%c9_124, %c0_125] : memref<18x512xf32, #tpu.memory_space<vmem>>, vector<1x32xf32>
    tpu.vector_store %arg17[%c9_124, %c0_125], %273 {strides = array<i32>} : memref<18x512xf32, #tpu.memory_space<vmem>>, vector<1x32xf32>,
    %275 = vector.extract_strided_slice %265 {offsets = [10, 0], sizes = [8, 32], strides = [1, 1]} : vector<288x32xf32> to vector<8x32xf32>
    %276 = vector.extract_strided_slice %266 {offsets = [279, 0], sizes = [8, 32], strides = [1, 1]} : vector<288x32xf32> to vector<8x32xf32>
    %277 = arith.addf %275, %276 : vector<8x32xf32>
    %c10_126 = arith.constant 10 : index
    %c0_127 = arith.constant 0 : index
    %278 = vector.load %arg17[%c10_126, %c0_127] : memref<18x512xf32, #tpu.memory_space<vmem>>, vector<8x32xf32>
    tpu.vector_store %arg17[%c10_126, %c0_127], %277 {strides = array<i32>} : memref<18x512xf32, #tpu.memory_space<vmem>>, vector<8x32xf32>,
    %279 = vector.extract_strided_slice %265 {offsets = [18, 0], sizes = [18, 32], strides = [1, 1]} : vector<288x32xf32> to vector<18x32xf32>
    %280 = vector.extract_strided_slice %266 {offsets = [0, 0], sizes = [18, 32], strides = [1, 1]} : vector<288x32xf32> to vector<18x32xf32>
    %281 = arith.addf %279, %280 : vector<18x32xf32>
    %c0_128 = arith.constant 0 : index
    %c32 = arith.constant 32 : index
    %282 = vector.load %arg17[%c0_128, %c32] : memref<18x512xf32, #tpu.memory_space<vmem>>, vector<18x32xf32>
    tpu.vector_store %arg17[%c0_128, %c32], %281 {strides = array<i32>} : memref<18x512xf32, #tpu.memory_space<vmem>>, vector<18x32xf32>,
    %283 = vector.extract_strided_slice %265 {offsets = [36, 0], sizes = [18, 32], strides = [1, 1]} : vector<288x32xf32> to vector<18x32xf32>
    %284 = vector.extract_strided_slice %266 {offsets = [18, 0], sizes = [18, 32], strides = [1, 1]} : vector<288x32xf32> to vector<18x32xf32>
    %285 = arith.addf %283, %284 : vector<18x32xf32>
    %c0_129 = arith.constant 0 : index
    %c64 = arith.constant 64 : index
    %286 = vector.load %arg17[%c0_129, %c64] : memref<18x512xf32, #tpu.memory_space<vmem>>, vector<18x32xf32>
    tpu.vector_store %arg17[%c0_129, %c64], %285 {strides = array<i32>} : memref<18x512xf32, #tpu.memory_space<vmem>>, vector<18x32xf32>,
    %287 = vector.extract_strided_slice %265 {offsets = [54, 0], sizes = [18, 32], strides = [1, 1]} : vector<288x32xf32> to vector<18x32xf32>
    %288 = vector.extract_strided_slice %266 {offsets = [36, 0], sizes = [18, 32], strides = [1, 1]} : vector<288x32xf32> to vector<18x32xf32>
    %289 = arith.addf %287, %288 : vector<18x32xf32>
    %c0_130 = arith.constant 0 : index
    %c96 = arith.constant 96 : index
    %290 = vector.load %arg17[%c0_130, %c96] : memref<18x512xf32, #tpu.memory_space<vmem>>, vector<18x32xf32>
    tpu.vector_store %arg17[%c0_130, %c96], %289 {strides = array<i32>} : memref<18x512xf32, #tpu.memory_space<vmem>>, vector<18x32xf32>,
    %291 = vector.extract_strided_slice %265 {offsets = [72, 0], sizes = [18, 32], strides = [1, 1]} : vector<288x32xf32> to vector<18x32xf32>
    %292 = vector.extract_strided_slice %266 {offsets = [54, 0], sizes = [18, 32], strides = [1, 1]} : vector<288x32xf32> to vector<18x32xf32>
    %293 = arith.addf %291, %292 : vector<18x32xf32>
    %c0_131 = arith.constant 0 : index
    %c128 = arith.constant 128 : index
    %294 = vector.load %arg17[%c0_131, %c128] : memref<18x512xf32, #tpu.memory_space<vmem>>, vector<18x32xf32>
    tpu.vector_store %arg17[%c0_131, %c128], %293 {strides = array<i32>} : memref<18x512xf32, #tpu.memory_space<vmem>>, vector<18x32xf32>,
    %295 = vector.extract_strided_slice %265 {offsets = [90, 0], sizes = [18, 32], strides = [1, 1]} : vector<288x32xf32> to vector<18x32xf32>
    %296 = vector.extract_strided_slice %266 {offsets = [72, 0], sizes = [18, 32], strides = [1, 1]} : vector<288x32xf32> to vector<18x32xf32>
    %297 = arith.addf %295, %296 : vector<18x32xf32>
    %c0_132 = arith.constant 0 : index
    %c160 = arith.constant 160 : index
    %298 = vector.load %arg17[%c0_132, %c160] : memref<18x512xf32, #tpu.memory_space<vmem>>, vector<18x32xf32>
    tpu.vector_store %arg17[%c0_132, %c160], %297 {strides = array<i32>} : memref<18x512xf32, #tpu.memory_space<vmem>>, vector<18x32xf32>,
    %299 = vector.extract_strided_slice %265 {offsets = [108, 0], sizes = [18, 32], strides = [1, 1]} : vector<288x32xf32> to vector<18x32xf32>
    %300 = vector.extract_strided_slice %266 {offsets = [90, 0], sizes = [18, 32], strides = [1, 1]} : vector<288x32xf32> to vector<18x32xf32>
    %301 = arith.addf %299, %300 : vector<18x32xf32>
    %c0_133 = arith.constant 0 : index
    %c192 = arith.constant 192 : index
    %302 = vector.load %arg17[%c0_133, %c192] : memref<18x512xf32, #tpu.memory_space<vmem>>, vector<18x32xf32>
    tpu.vector_store %arg17[%c0_133, %c192], %301 {strides = array<i32>} : memref<18x512xf32, #tpu.memory_space<vmem>>, vector<18x32xf32>,
    %303 = vector.extract_strided_slice %265 {offsets = [126, 0], sizes = [18, 32], strides = [1, 1]} : vector<288x32xf32> to vector<18x32xf32>
    %304 = vector.extract_strided_slice %266 {offsets = [108, 0], sizes = [18, 32], strides = [1, 1]} : vector<288x32xf32> to vector<18x32xf32>
    %305 = arith.addf %303, %304 : vector<18x32xf32>
    %c0_134 = arith.constant 0 : index
    %c224 = arith.constant 224 : index
    %306 = vector.load %arg17[%c0_134, %c224] : memref<18x512xf32, #tpu.memory_space<vmem>>, vector<18x32xf32>
    tpu.vector_store %arg17[%c0_134, %c224], %305 {strides = array<i32>} : memref<18x512xf32, #tpu.memory_space<vmem>>, vector<18x32xf32>,
    %307 = vector.extract_strided_slice %265 {offsets = [144, 0], sizes = [18, 32], strides = [1, 1]} : vector<288x32xf32> to vector<18x32xf32>
    %308 = vector.extract_strided_slice %266 {offsets = [126, 0], sizes = [18, 32], strides = [1, 1]} : vector<288x32xf32> to vector<18x32xf32>
    %309 = arith.addf %307, %308 : vector<18x32xf32>
    %c0_135 = arith.constant 0 : index
    %c256 = arith.constant 256 : index
    %310 = vector.load %arg17[%c0_135, %c256] : memref<18x512xf32, #tpu.memory_space<vmem>>, vector<18x32xf32>
    tpu.vector_store %arg17[%c0_135, %c256], %309 {strides = array<i32>} : memref<18x512xf32, #tpu.memory_space<vmem>>, vector<18x32xf32>,
    %311 = vector.extract_strided_slice %265 {offsets = [162, 0], sizes = [18, 32], strides = [1, 1]} : vector<288x32xf32> to vector<18x32xf32>
    %312 = vector.extract_strided_slice %266 {offsets = [144, 0], sizes = [18, 32], strides = [1, 1]} : vector<288x32xf32> to vector<18x32xf32>
    %313 = arith.addf %311, %312 : vector<18x32xf32>
    %c0_136 = arith.constant 0 : index
    %c288 = arith.constant 288 : index
    %314 = vector.load %arg17[%c0_136, %c288] : memref<18x512xf32, #tpu.memory_space<vmem>>, vector<18x32xf32>
    tpu.vector_store %arg17[%c0_136, %c288], %313 {strides = array<i32>} : memref<18x512xf32, #tpu.memory_space<vmem>>, vector<18x32xf32>,
    %315 = vector.extract_strided_slice %265 {offsets = [180, 0], sizes = [18, 32], strides = [1, 1]} : vector<288x32xf32> to vector<18x32xf32>
    %316 = vector.extract_strided_slice %266 {offsets = [162, 0], sizes = [18, 32], strides = [1, 1]} : vector<288x32xf32> to vector<18x32xf32>
    %317 = arith.addf %315, %316 : vector<18x32xf32>
    %c0_137 = arith.constant 0 : index
    %c320 = arith.constant 320 : index
    %318 = vector.load %arg17[%c0_137, %c320] : memref<18x512xf32, #tpu.memory_space<vmem>>, vector<18x32xf32>
    tpu.vector_store %arg17[%c0_137, %c320], %317 {strides = array<i32>} : memref<18x512xf32, #tpu.memory_space<vmem>>, vector<18x32xf32>,
    %319 = vector.extract_strided_slice %265 {offsets = [198, 0], sizes = [18, 32], strides = [1, 1]} : vector<288x32xf32> to vector<18x32xf32>
    %320 = vector.extract_strided_slice %266 {offsets = [180, 0], sizes = [18, 32], strides = [1, 1]} : vector<288x32xf32> to vector<18x32xf32>
    %321 = arith.addf %319, %320 : vector<18x32xf32>
    %c0_138 = arith.constant 0 : index
    %c352 = arith.constant 352 : index
    %322 = vector.load %arg17[%c0_138, %c352] : memref<18x512xf32, #tpu.memory_space<vmem>>, vector<18x32xf32>
    tpu.vector_store %arg17[%c0_138, %c352], %321 {strides = array<i32>} : memref<18x512xf32, #tpu.memory_space<vmem>>, vector<18x32xf32>,
    %323 = vector.extract_strided_slice %265 {offsets = [216, 0], sizes = [18, 32], strides = [1, 1]} : vector<288x32xf32> to vector<18x32xf32>
    %324 = vector.extract_strided_slice %266 {offsets = [198, 0], sizes = [18, 32], strides = [1, 1]} : vector<288x32xf32> to vector<18x32xf32>
    %325 = arith.addf %323, %324 : vector<18x32xf32>
    %c0_139 = arith.constant 0 : index
    %c384 = arith.constant 384 : index
    %326 = vector.load %arg17[%c0_139, %c384] : memref<18x512xf32, #tpu.memory_space<vmem>>, vector<18x32xf32>
    tpu.vector_store %arg17[%c0_139, %c384], %325 {strides = array<i32>} : memref<18x512xf32, #tpu.memory_space<vmem>>, vector<18x32xf32>,
    %327 = vector.extract_strided_slice %265 {offsets = [234, 0], sizes = [18, 32], strides = [1, 1]} : vector<288x32xf32> to vector<18x32xf32>
    %328 = vector.extract_strided_slice %266 {offsets = [216, 0], sizes = [18, 32], strides = [1, 1]} : vector<288x32xf32> to vector<18x32xf32>
    %329 = arith.addf %327, %328 : vector<18x32xf32>
    %c0_140 = arith.constant 0 : index
    %c416 = arith.constant 416 : index
    %330 = vector.load %arg17[%c0_140, %c416] : memref<18x512xf32, #tpu.memory_space<vmem>>, vector<18x32xf32>
    tpu.vector_store %arg17[%c0_140, %c416], %329 {strides = array<i32>} : memref<18x512xf32, #tpu.memory_space<vmem>>, vector<18x32xf32>,
    %331 = vector.extract_strided_slice %265 {offsets = [252, 0], sizes = [18, 32], strides = [1, 1]} : vector<288x32xf32> to vector<18x32xf32>
    %332 = vector.extract_strided_slice %266 {offsets = [234, 0], sizes = [18, 32], strides = [1, 1]} : vector<288x32xf32> to vector<18x32xf32>
    %333 = arith.addf %331, %332 : vector<18x32xf32>
    %c0_141 = arith.constant 0 : index
    %c448 = arith.constant 448 : index
    %334 = vector.load %arg17[%c0_141, %c448] : memref<18x512xf32, #tpu.memory_space<vmem>>, vector<18x32xf32>
    tpu.vector_store %arg17[%c0_141, %c448], %333 {strides = array<i32>} : memref<18x512xf32, #tpu.memory_space<vmem>>, vector<18x32xf32>,
    %335 = vector.extract_strided_slice %265 {offsets = [270, 0], sizes = [18, 32], strides = [1, 1]} : vector<288x32xf32> to vector<18x32xf32>
    %336 = vector.extract_strided_slice %266 {offsets = [252, 0], sizes = [18, 32], strides = [1, 1]} : vector<288x32xf32> to vector<18x32xf32>
    %337 = arith.addf %335, %336 : vector<18x32xf32>
    %c0_142 = arith.constant 0 : index
    %c480 = arith.constant 480 : index
    %338 = vector.load %arg17[%c0_142, %c480] : memref<18x512xf32, #tpu.memory_space<vmem>>, vector<18x32xf32>
    tpu.vector_store %arg17[%c0_142, %c480], %337 {strides = array<i32>} : memref<18x512xf32, #tpu.memory_space<vmem>>, vector<18x32xf32>,
    %339 = vector.extract_strided_slice %266 {offsets = [278, 0], sizes = [1, 32], strides = [1, 1]} : vector<288x32xf32> to vector<1x32xf32>
    %c0_143 = arith.constant 0 : index
    %c0_144 = arith.constant 0 : index
    %340 = vector.load %arg18[%c0_143, %c0_144] : memref<2x32xf32, #tpu.memory_space<vmem>>, vector<1x32xf32>
    tpu.vector_store %arg18[%c0_143, %c0_144], %339 {strides = array<i32>} : memref<2x32xf32, #tpu.memory_space<vmem>>, vector<1x32xf32>,
    %341 = vector.extract_strided_slice %266 {offsets = [287, 0], sizes = [1, 32], strides = [1, 1]} : vector<288x32xf32> to vector<1x32xf32>
    %c1_145 = arith.constant 1 : index
    %c0_146 = arith.constant 0 : index
    %342 = vector.load %arg18[%c1_145, %c0_146] : memref<2x32xf32, #tpu.memory_space<vmem>>, vector<1x32xf32>
    tpu.vector_store %arg18[%c1_145, %c0_146], %341 {strides = array<i32>} : memref<2x32xf32, #tpu.memory_space<vmem>>, vector<1x32xf32>,
    %c0_147 = arith.constant 0 : index
    %c0_148 = arith.constant 0 : index
    %343 = vector.load %arg17[%c0_147, %c0_148] : memref<18x512xf32, #tpu.memory_space<vmem>>, vector<18x512xf32>
    %c0_149 = arith.constant 0 : index
    %c0_150 = arith.constant 0 : index
    %344 = vector.load %arg18[%c0_149, %c0_150] : memref<2x32xf32, #tpu.memory_space<vmem>>, vector<2x32xf32>
    %cst_151 = arith.constant dense<0.000000e+00> : vector<512xf32>
    %345 = vector.multi_reduction <add>, %343, %cst_151 [0] : vector<18x512xf32> to vector<512xf32>
    %346 = vector.shape_cast %345 : vector<512xf32> to vector<1x512xf32>
    %cst_152 = arith.constant dense<0.000000e+00> : vector<1xf32>
    %347 = vector.multi_reduction <add>, %346, %cst_152 [1] : vector<1x512xf32> to vector<1xf32>
    %348 = vector.shape_cast %347 : vector<1xf32> to vector<1x1xf32>
    %349 = arith.mulf %343, %343 : vector<18x512xf32>
    %cst_153 = arith.constant dense<0.000000e+00> : vector<512xf32>
    %350 = vector.multi_reduction <add>, %349, %cst_153 [0] : vector<18x512xf32> to vector<512xf32>
    %351 = vector.shape_cast %350 : vector<512xf32> to vector<1x512xf32>
    %cst_154 = arith.constant dense<0.000000e+00> : vector<1xf32>
    %352 = vector.multi_reduction <add>, %351, %cst_154 [1] : vector<1x512xf32> to vector<1xf32>
    %353 = vector.shape_cast %352 : vector<1xf32> to vector<1x1xf32>
    %354 = vector.extract_strided_slice %343 {offsets = [0, 0], sizes = [1, 24], strides = [1, 1]} : vector<18x512xf32> to vector<1x24xf32>
    %cst_155 = arith.constant dense<0.000000e+00> : vector<24xf32>
    %355 = vector.multi_reduction <add>, %354, %cst_155 [0] : vector<1x24xf32> to vector<24xf32>
    %356 = vector.shape_cast %355 : vector<24xf32> to vector<1x24xf32>
    %cst_156 = arith.constant dense<0.000000e+00> : vector<1xf32>
    %357 = vector.multi_reduction <add>, %356, %cst_156 [1] : vector<1x24xf32> to vector<1xf32>
    %358 = vector.shape_cast %357 : vector<1xf32> to vector<1x1xf32>
    %359 = arith.subf %348, %358 : vector<1x1xf32>
    %360 = arith.mulf %354, %354 : vector<1x24xf32>
    %cst_157 = arith.constant dense<0.000000e+00> : vector<24xf32>
    %361 = vector.multi_reduction <add>, %360, %cst_157 [0] : vector<1x24xf32> to vector<24xf32>
    %362 = vector.shape_cast %361 : vector<24xf32> to vector<1x24xf32>
    %cst_158 = arith.constant dense<0.000000e+00> : vector<1xf32>
    %363 = vector.multi_reduction <add>, %362, %cst_158 [1] : vector<1x24xf32> to vector<1xf32>
    %364 = vector.shape_cast %363 : vector<1xf32> to vector<1x1xf32>
    %365 = arith.subf %353, %364 : vector<1x1xf32>
    %366 = vector.extract_strided_slice %343 {offsets = [9, 0], sizes = [1, 24], strides = [1, 1]} : vector<18x512xf32> to vector<1x24xf32>
    %cst_159 = arith.constant dense<0.000000e+00> : vector<24xf32>
    %367 = vector.multi_reduction <add>, %366, %cst_159 [0] : vector<1x24xf32> to vector<24xf32>
    %368 = vector.shape_cast %367 : vector<24xf32> to vector<1x24xf32>
    %cst_160 = arith.constant dense<0.000000e+00> : vector<1xf32>
    %369 = vector.multi_reduction <add>, %368, %cst_160 [1] : vector<1x24xf32> to vector<1xf32>
    %370 = vector.shape_cast %369 : vector<1xf32> to vector<1x1xf32>
    %371 = arith.subf %359, %370 : vector<1x1xf32>
    %372 = arith.mulf %366, %366 : vector<1x24xf32>
    %cst_161 = arith.constant dense<0.000000e+00> : vector<24xf32>
    %373 = vector.multi_reduction <add>, %372, %cst_161 [0] : vector<1x24xf32> to vector<24xf32>
    %374 = vector.shape_cast %373 : vector<24xf32> to vector<1x24xf32>
    %cst_162 = arith.constant dense<0.000000e+00> : vector<1xf32>
    %375 = vector.multi_reduction <add>, %374, %cst_162 [1] : vector<1x24xf32> to vector<1xf32>
    %376 = vector.shape_cast %375 : vector<1xf32> to vector<1x1xf32>
    %377 = arith.subf %365, %376 : vector<1x1xf32>
    %378 = vector.extract_strided_slice %344 {offsets = [0, 0], sizes = [2, 24], strides = [1, 1]} : vector<2x32xf32> to vector<2x24xf32>
    %cst_163 = arith.constant dense<0.000000e+00> : vector<24xf32>
    %379 = vector.multi_reduction <add>, %378, %cst_163 [0] : vector<2x24xf32> to vector<24xf32>
    %380 = vector.shape_cast %379 : vector<24xf32> to vector<1x24xf32>
    %cst_164 = arith.constant dense<0.000000e+00> : vector<1xf32>
    %381 = vector.multi_reduction <add>, %380, %cst_164 [1] : vector<1x24xf32> to vector<1xf32>
    %382 = vector.shape_cast %381 : vector<1xf32> to vector<1x1xf32>
    %383 = arith.addf %371, %382 : vector<1x1xf32>
    %384 = arith.mulf %378, %378 : vector<2x24xf32>
    %cst_165 = arith.constant dense<0.000000e+00> : vector<24xf32>
    %385 = vector.multi_reduction <add>, %384, %cst_165 [0] : vector<2x24xf32> to vector<24xf32>
    %386 = vector.shape_cast %385 : vector<24xf32> to vector<1x24xf32>
    %cst_166 = arith.constant dense<0.000000e+00> : vector<1xf32>
    %387 = vector.multi_reduction <add>, %386, %cst_166 [1] : vector<1x24xf32> to vector<1xf32>
    %388 = vector.shape_cast %387 : vector<1xf32> to vector<1x1xf32>
    %389 = arith.addf %377, %388 : vector<1x1xf32>
    %cst_167 = arith.constant 9.216000e+03 : f32
    %390 = vector.broadcast %cst_167 : f32 to vector<1x1xf32>
    %391 = arith.divf %383, %390 : vector<1x1xf32>
    %cst_168 = arith.constant 9.216000e+03 : f32
    %392 = vector.broadcast %cst_168 : f32 to vector<1x1xf32>
    %393 = arith.divf %389, %392 : vector<1x1xf32>
    %394 = arith.mulf %391, %391 : vector<1x1xf32>
    %395 = arith.subf %393, %394 : vector<1x1xf32>
    %cst_169 = arith.constant 0.000000e+00 : f32
    %396 = vector.broadcast %cst_169 : f32 to vector<1x1xf32>
    %397 = arith.maximumf %395, %396 : vector<1x1xf32>
    %c0_170 = arith.constant 0 : index
    %c0_171 = arith.constant 0 : index
    %398 = vector.load %arg15[%c0_170, %c0_171] : memref<1x1xf32, #tpu.memory_space<vmem>>, vector<1x1xf32>
    %cst_172 = arith.constant 9.99999974E-6 : f32
    %399 = vector.broadcast %cst_172 : f32 to vector<1x1xf32>
    %400 = arith.addf %397, %399 : vector<1x1xf32>
    %401 = math.rsqrt %400 : vector<1x1xf32>
    %402 = arith.mulf %398, %401 : vector<1x1xf32>
    %c0_173 = arith.constant 0 : index
    %c0_174 = arith.constant 0 : index
    %403 = vector.load %arg16[%c0_173, %c0_174] : memref<1x1xf32, #tpu.memory_space<vmem>>, vector<1x1xf32>
    %404 = arith.mulf %391, %402 : vector<1x1xf32>
    %405 = arith.subf %403, %404 : vector<1x1xf32>
    %406 = vector.broadcast %402 : vector<1x1xf32> to vector<18x512xf32>
    %407 = arith.mulf %343, %406 : vector<18x512xf32>
    %408 = vector.broadcast %405 : vector<1x1xf32> to vector<18x512xf32>
    %409 = arith.addf %407, %408 : vector<18x512xf32>
    %cst_175 = arith.constant 0.000000e+00 : f32
    %410 = vector.broadcast %cst_175 : f32 to vector<18x512xf32>
    %411 = arith.maximumf %409, %410 : vector<18x512xf32>
    %c0_176 = arith.constant 0 : index
    %c0_177 = arith.constant 0 : index
    %412 = vector.load %arg17[%c0_176, %c0_177] : memref<18x512xf32, #tpu.memory_space<vmem>>, vector<18x512xf32>
    tpu.vector_store %arg17[%c0_176, %c0_177], %411 {strides = array<i32>} : memref<18x512xf32, #tpu.memory_space<vmem>>, vector<18x512xf32>,
    %413 = vector.broadcast %402 : vector<1x1xf32> to vector<2x32xf32>
    %414 = arith.mulf %344, %413 : vector<2x32xf32>
    %415 = vector.broadcast %405 : vector<1x1xf32> to vector<2x32xf32>
    %416 = arith.addf %414, %415 : vector<2x32xf32>
    %cst_178 = arith.constant 0.000000e+00 : f32
    %417 = vector.broadcast %cst_178 : f32 to vector<2x32xf32>
    %418 = arith.maximumf %416, %417 : vector<2x32xf32>
    %c0_179 = arith.constant 0 : index
    %c0_180 = arith.constant 0 : index
    %419 = vector.load %arg18[%c0_179, %c0_180] : memref<2x32xf32, #tpu.memory_space<vmem>>, vector<2x32xf32>
    tpu.vector_store %arg18[%c0_179, %c0_180], %418 {strides = array<i32>} : memref<2x32xf32, #tpu.memory_space<vmem>>, vector<2x32xf32>,
    return
  }
  func.func @transform_0(%arg0: i32) -> (i32, i32) {
    %c0_i32 = arith.constant 0 : i32
    %c0_i32_0 = arith.constant 0 : i32
    %c0_i32_1 = arith.constant 0 : i32
    return %c0_i32, %c0_i32_0 : i32, i32
  }
  func.func @transform_1(%arg0: i32) -> (i32, i32) {
    %c0_i32 = arith.constant 0 : i32
    %c0_i32_0 = arith.constant 0 : i32
    %c0_i32_1 = arith.constant 0 : i32
    return %c0_i32, %c0_i32_0 : i32, i32
  }
  func.func @transform_2(%arg0: i32) -> (i32, i32) {
    %c0_i32 = arith.constant 0 : i32
    %c0_i32_0 = arith.constant 0 : i32
    %c0_i32_1 = arith.constant 0 : i32
    return %c0_i32, %c0_i32_0 : i32, i32
  }
  func.func @transform_3(%arg0: i32) -> (i32, i32) {
    %c0_i32 = arith.constant 0 : i32
    %c0_i32_0 = arith.constant 0 : i32
    %c0_i32_1 = arith.constant 0 : i32
    return %c0_i32, %c0_i32_0 : i32, i32
  }
  func.func @transform_4(%arg0: i32) -> (i32, i32) {
    %c0_i32 = arith.constant 0 : i32
    %c0_i32_0 = arith.constant 0 : i32
    %c0_i32_1 = arith.constant 0 : i32
    return %c0_i32, %c0_i32_0 : i32, i32
  }
  func.func @transform_5(%arg0: i32) -> (i32, i32) {
    %c0_i32 = arith.constant 0 : i32
    %c0_i32_0 = arith.constant 0 : i32
    %c0_i32_1 = arith.constant 0 : i32
    return %c0_i32, %c0_i32_0 : i32, i32
  }
  func.func @transform_6(%arg0: i32) -> (i32, i32) {
    %c0_i32 = arith.constant 0 : i32
    %c0_i32_0 = arith.constant 0 : i32
    %c0_i32_1 = arith.constant 0 : i32
    return %c0_i32, %c0_i32_0 : i32, i32
  }
  func.func @transform_7(%arg0: i32) -> (i32, i32) {
    %c0_i32 = arith.constant 0 : i32
    %c0_i32_0 = arith.constant 0 : i32
    %c0_i32_1 = arith.constant 0 : i32
    return %c0_i32, %c0_i32_0 : i32, i32
  }
  func.func @transform_8(%arg0: i32) -> (i32, i32) {
    %c0_i32 = arith.constant 0 : i32
    %c0_i32_0 = arith.constant 0 : i32
    %c0_i32_1 = arith.constant 0 : i32
    return %c0_i32, %c0_i32_0 : i32, i32
  }
  func.func @transform_9(%arg0: i32) -> (i32, i32) {
    %c0_i32 = arith.constant 0 : i32
    %c0_i32_0 = arith.constant 0 : i32
    %c0_i32_1 = arith.constant 0 : i32
    return %c0_i32, %c0_i32_0 : i32, i32
  }
  func.func @transform_10(%arg0: i32) -> (i32, i32) {
    %c0_i32 = arith.constant 0 : i32
    %c0_i32_0 = arith.constant 0 : i32
    %c0_i32_1 = arith.constant 0 : i32
    return %c0_i32, %c0_i32_0 : i32, i32
  }
  func.func @transform_11(%arg0: i32) -> (i32, i32) {
    %c0_i32 = arith.constant 0 : i32
    %c0_i32_0 = arith.constant 0 : i32
    %c0_i32_1 = arith.constant 0 : i32
    return %c0_i32, %c0_i32_0 : i32, i32
  }
  func.func @transform_12(%arg0: i32) -> (i32, i32) {
    %c0_i32 = arith.constant 0 : i32
    %c0_i32_0 = arith.constant 0 : i32
    %c0_i32_1 = arith.constant 0 : i32
    return %c0_i32, %c0_i32_0 : i32, i32
  }
  func.func @transform_13(%arg0: i32) -> (i32, i32) {
    %c0_i32 = arith.constant 0 : i32
    %c0_i32_0 = arith.constant 0 : i32
    %c0_i32_1 = arith.constant 0 : i32
    return %c0_i32, %c0_i32_0 : i32, i32
  }
  func.func @transform_14(%arg0: i32) -> (i32, i32) {
    %c0_i32 = arith.constant 0 : i32
    %c0_i32_0 = arith.constant 0 : i32
    %c0_i32_1 = arith.constant 0 : i32
    return %c0_i32, %c0_i32_0 : i32, i32
  }
  func.func @transform_15(%arg0: i32) -> (i32, i32) {
    %c0_i32 = arith.constant 0 : i32
    %c0_i32_0 = arith.constant 0 : i32
    %c0_i32_1 = arith.constant 0 : i32
    return %c0_i32, %c0_i32_0 : i32, i32
  }
  func.func @transform_16(%arg0: i32) -> (i32, i32) {
    %c0_i32 = arith.constant 0 : i32
    %c0_i32_0 = arith.constant 0 : i32
    %c0_i32_1 = arith.constant 0 : i32
    return %c0_i32, %c0_i32_0 : i32, i32
  }
  func.func @transform_17(%arg0: i32) -> (i32, i32) {
    %c0_i32 = arith.constant 0 : i32
    %c0_i32_0 = arith.constant 0 : i32
    %c0_i32_1 = arith.constant 0 : i32
    return %c0_i32, %c0_i32_0 : i32, i32
  }
}

</mosaic_0001>

<bundles_post_ra>
// kernel: decoder_forward.1
= control target key start
LH: loop header
LB: loop body
LE: loop exit
PB: predicated region body
PF: predicated region fallthrough
CT: control target
= control target key end

     0   :  { %v3604_v1 = vmov 0   ;;  %vm113_vm0 = vcmask 523264   ;;  %vm171_vm1 = vcmask 516096   ;;  %vm181_vm2 = vcmask 517121   ;;  %s5719_s1 = inlined_call_operand.vmem [shape: bf16[64,192], index: 1, kind: input, shape index: {}]   ;;  %s5720_s0 = inlined_call_operand.vmem [shape: f32[18,64], index: 0, kind: input, shape index: {}]   ;;  %s5721_s4 = inlined_call_operand.vmem [shape: bf16[64,192], index: 4, kind: input, shape index: {}]   ;;  %s5722_s2 = inlined_call_operand.vmem [shape: f32[1,64], index: 2, kind: input, shape index: {}]   ;;  %s5723_s3 = inlined_call_operand.vmem [shape: f32[1,64], index: 3, kind: input, shape index: {}]   ;;  %s5724_s7 = inlined_call_operand.vmem [shape: bf16[64,96], index: 7, kind: input, shape index: {}]   ;;  %s5725_s5 = inlined_call_operand.vmem [shape: f32[1,64], index: 5, kind: input, shape index: {}]   ;;  %s5726_s6 = inlined_call_operand.vmem [shape: f32[1,64], index: 6, kind: input, shape index: {}]   ;;  %s5727_s10 = inlined_call_operand.vmem [shape: bf16[32,48], index: 10, kind: input, shape index: {}]   ;;  %s5728_s8 = inlined_call_operand.vmem [shape: f32[1,32], index: 8, kind: input, shape index: {}]   ;;  %s5729_s9 = inlined_call_operand.vmem [shape: f32[1,32], index: 9, kind: input, shape index: {}]   ;;  %s5730_s13 = inlined_call_operand.vmem [shape: bf16[16,64], index: 13, kind: input, shape index: {}]   ;;  %s5731_s11 = inlined_call_operand.vmem [shape: f32[1,16], index: 11, kind: input, shape index: {}]   ;;  %s5732_s12 = inlined_call_operand.vmem [shape: f32[1,16], index: 12, kind: input, shape index: {}]   ;;  %s5733_s16 = inlined_call_operand.vmem [shape: f32[18,512], index: 16, kind: output, shape index: {0}]   ;;  %s5734_s17 = inlined_call_operand.vmem [shape: f32[2,32], index: 17, kind: output, shape index: {1}]   ;;  %s5735_s14 = inlined_call_operand.<no memory space> [shape: f32[1,1], index: 14, kind: input, shape index: {}]   ;;  %s5736_s15 = inlined_call_operand.<no memory space> [shape: f32[1,1], index: 15, kind: input, shape index: {}]  }
   0x1   :  { %5739 = sst [smem:[#allocation8_spill]] %s5719_s1  ;;  %152 = vmatprep.mubr.bf16.mxu1 %v3604_v1  ;;  %3561 = vset.pattern.permute.xlu1 %v3604_v1  ;;  %vm178_vm3 = vcmask 523265   ;;  %vm193_vm4 = vcmask 523266   ;;  %vm185_vm5 = vcmask 1040384   ;;  %vm195_vm6 = vcmask 517120  }
   0x2   :  { %5740 = sst [smem:[#allocation9_spill]] %s5720_s0  ;;  %3562 = vset.pattern.permute.xlu0 %v3604_v1  ;;  %vm250_vm7 = vcmask 1043456   ;;  %vm458_vm8 = vcmask 1045504   ;;  %vm492_vm9 = vcmask 518146   ;;  %vm500_vm10 = vcmask 523267  }
   0x3   :  { %s5741_s26 = sld [smem:[#allocation8_spill]]  ;;  %vm504_vm11 = vcmask 519171   ;;  %vm502_vm12 = vcmask 518144   ;;  %vm481_vm13 = vcmask 519168   ;;  %vm3608_vm14 = vmmov 0  }
   0x4   :  { %s5742_s29 = sld [smem:[#allocation9_spill]]  ;;  %vm929_vm15 = vcmask 1044480  }
   0x9   :  { %v3563_v0 = vld [vmem:[%s5741_s26 + $0x34] ss:$8 sps:$4 sm:$0xff]   ;;  %v3565_v2 = vld [vmem:[%s5741_s26 + $0x30] ss:$8 sps:$4 sm:$0xff]   ;;  %v3566_v3 = vld [vmem:[%s5741_s26 + $0x24] ss:$8 sps:$4 sm:$0xff]  }
   0xa   :  { %128 = vmatprep.subr.bf16.mxu1 %v3563_v0  ;;  %v3568_v4 = vld [vmem:[%s5741_s26 + $0x20] ss:$8 sps:$4 sm:$0xff]   ;;  %v3569_v5 = vld [vmem:[%s5741_s26 + $0x14] ss:$8 sps:$4 sm:$0xff]   ;;  %v3571_v6 = vld [vmem:[%s5741_s26 + $0x10] ss:$8 sps:$4 sm:$0xff]  }
   0xb   :  { %129 = vmatpush1.bf16.msra.mxu1 %v3565_v2  ;;  %v3572_v7 = vld [vmem:[%s5741_s26 + $0x4] ss:$8 sps:$4 sm:$0xff]   ;;  %v3574_v8 = vld [vmem:[%s5741_s26] ss:$8 sps:$4 sm:$0xff]   ;;  %v62_v12 = vld [vmem:[%s5742_s29 + $0x10] sm:$0x3] }
   0xc   :  { %130 = vmatprep.subr.bf16.mxu1 %v3566_v3  ;;  %v60_v9 = vld [vmem:[%s5742_s29] sm:$0xff]  ;;  %v61_v10 = vld [vmem:[%s5742_s29 + $0x8] sm:$0xff]  ;;  %v64_v13 = vpack.c.bf16 %v62_v12, %v62_v12  ;;  %s3605_s26 = smov 64   ;;  %v3575_v3 = vld [vmem:[%s5721_s4 + $0x30] ss:$8 sps:$4 sm:$0xff]  }
   0xd   :  { %v63_v11 = vpack.c.bf16 %v61_v10, %v60_v9  ;;  %v3606_v9 = vmov 1966171168   ;;  %v3580_v12 = vld [vmem:[%s5721_s4 + $0x24] ss:$8 sps:$4 sm:$0xff]  }
   0xe   :  { %v273_v10 = vunpack.c.l.s4 %v3606_v9 }
   0xf   :  { %131 = vmatpush1.bf16.msra.mxu1 %v3568_v4  ;;  %v3577_v4 = vld [vmem:[%s5721_s4 + $0x34] ss:$8 sps:$4 sm:$0xff]  }
  0x10   :  { %132 = vmatprep.subr.bf16.mxu1 %v3569_v5 }
  0x13   :  { %133 = vmatpush1.bf16.msra.mxu1 %v3571_v6 }
  0x14   :  { %134 = vmatprep.subr.bf16.mxu1 %v3572_v7 }
  0x17   :  { %135 = vmatpush1.bf16.msra.mxu1 %v3574_v8 }
  0x18   :  { %388 = vmatprep.subr.bf16.mxu1 %v3577_v4 }
  0x1a   :  { %3355 = vmatmul.mubr.msk.bf16.vlgmr.msra.gmra.mxu1 %vm113_vm0, %v63_v11  ;;  %v275_v11 = vlaneseq }
  0x1b   :  { %162 = vmatprep.mubr.bf16.mxu1 %v3604_v1  ;;  %389 = vmatpush1.bf16.msra.mxu1 %v3575_v3 }
  0x1c   :  { %390 = vmatprep.subr.bf16.mxu1 %v3580_v12 }
  0x22   :  { %3356 = vmatmul.mubr.msk.bf16.gmra.mxu1 %vm113_vm0, %v64_v13  ;;  %v274_v13 = vunpack.c.0.s8 %v273_v10 }
  0x23   :  { %412 = vmatprep.mubr.bf16.mxu1 %v3604_v1 }
  0xda   :  { %v154_v14 = vpop.f32.mrf.mxu1 }
  0xdb   :  { %172 = vst.msk [vmem:[#allocation2] sm:$0x1] %vm171_vm1, %v154_v14  ;;  %200 = vrot.lane.b32.xlu0 %v154_v14, %s3605_s26 }
  0xdc   :  { %v156_v15 = vpop.f32.mrf.mxu1 }
  0xdd   :  { %v174_v16 = vrot.slane %v156_v15, 7  ;;  %v3578_v15 = vld [vmem:[%s5721_s4 + $0x20] ss:$8 sps:$4 sm:$0xff]  }
  0xde   :  { %v158_v17 = vpop.f32.mrf.mxu1  ;;  %391 = vmatpush1.bf16.msra.mxu1 %v3578_v15 }
  0xdf   :  { %v176_v18 = vadd.f32 %v174_v16, %v154_v14  ;;  %v177_v19 = vadd.f32 %v174_v16, %v158_v17  ;;  %182 = vst.msk [vmem:[#allocation2 + $0x8] sm:$0x2] %vm181_vm2, %v158_v17  ;;  %202 = vrot.lane.b32.xlu0 %v158_v17, %s3605_s26  ;;  %v276_v14 = vshrl.u32 %v275_v11, 7  ;;  %v3583_v16 = vld [vmem:[%s5721_s4 + $0x14] ss:$8 sps:$4 sm:$0xff]   ;;  %vm795_vm2 = vcmask 254976  }
  0xe0   :  { %v160_v20 = vpop.f32.mrf.mxu1  ;;  %392 = vmatprep.subr.bf16.mxu1 %v3583_v16 }
  0xe1   :  { %179 = vst.msk [vmem:[#allocation2] sm:$0xfe] %vm178_vm3, %v176_v18  ;;  %v186_v21 = vrot.slane %v160_v20, 7  ;;  %v3581_v18 = vld [vmem:[%s5721_s4 + $0x10] ss:$8 sps:$4 sm:$0xff]   ;;  %vm837_vm3 = vcmask 261122  }
  0xe2   :  { %180 = vst.msk [vmem:[#allocation2 + $0x8] sm:$0x1] %vm171_vm1, %v177_v19  ;;  %v164_v22 = vpop.f32.mrf.mxu1  ;;  %393 = vmatpush1.bf16.msra.mxu1 %v3581_v18  ;;  %v3586_v20 = vld [vmem:[%s5721_s4 + $0x4] ss:$8 sps:$4 sm:$0xff]   ;;  %vm792_vm1 = vcmask 261120  }
  0xe3   :  { %v191_v23 = vadd.f32 %v186_v21, %v158_v17  ;;  %204 = vrot.lane.b32.xlu1 %v164_v22, %s3605_s26  ;;  %v3806_v17 = vsub.s32 %v274_v13, %v276_v14  ;;  %394 = vmatprep.subr.bf16.mxu1 %v3586_v20 }
  0xe4   :  { %v166_v24 = vpop.f32.mrf.mxu1 }
  0xe5   :  { %194 = vst.msk [vmem:[#allocation2 + $0x8] sm:$0xfc] %vm193_vm4, %v191_v23  ;;  %v187_v25 = vrot.slane %v166_v24, 7  ;;  %v268_v24 = vld [vmem:[%s5722_s2] sm:$0x1] }
  0xe6   :  { %v168_v26 = vpop.f32.mrf.mxu1 }
  0xe7   :  { %v188_v27 = vsel %vm185_vm5, %v186_v21, %v187_v25  ;;  %v3823_v25 = vsub.s32 0, %v276_v14 }
  0xe8   :  { %v192_v28 = vadd.f32 %v188_v27, %v164_v22  ;;  %v169_v29 = vpop.f32.mrf.mxu1  ;;  %v3750_v30 = vld [vmem:[#allocation2] sm:$0xff] }
  0xe9   :  { %v217_v31 = vmul.f32 %v3750_v30, %v3750_v30  ;;  %v3584_v22 = vld [vmem:[%s5721_s4] ss:$8 sps:$4 sm:$0xff]  }
  0xea   :  { %196 = vst.msk [vmem:[#allocation2 + $0x10] sm:$0x3] %vm195_vm6, %v192_v28  ;;  %395 = vmatpush1.bf16.msra.mxu1 %v3584_v22  ;;  %v290_v28 = vld [vmem:[%s5723_s3] sm:$0x1] }
  0xeb   :  { %227 = vrot.lane.b32.xlu1 %v217_v31, %s3605_s26 }
  0xec   :  { %v3756_v32 = vld [vmem:[#allocation2 + $0x8] sm:$0xff] }
  0xed   :  { %v218_v33 = vmul.f32 %v3756_v32, %v3756_v32 }
  0xef   :  { %229 = vrot.lane.b32.xlu0 %v218_v33, %s3605_s26 }
 0x14d   :  { %v201_v34 = vpop.permute.xlu0 %200 }
 0x14e   :  { %209 = vst.msk [vmem:[#allocation2 + $0x12] sm:$0xff] %vm113_vm0, %v201_v34 }
 0x151   :  { %v203_v35 = vpop.permute.xlu0 %202 }
 0x152   :  { %210 = vst.msk [vmem:[#allocation2 + $0x1a] sm:$0xff] %vm113_vm0, %v203_v35 }
 0x155   :  { %v205_v36 = vpop.permute.xlu1 %204  ;;  %v3763_v37 = vld [vmem:[#allocation2 + $0x10] sm:$0xff] }
 0x156   :  { %211 = vst.msk [vmem:[#allocation2 + $0x22] sm:$0x3] %vm195_vm6, %v205_v36  ;;  %v219_v38 = vmul.f32 %v3763_v37, %v3763_v37 }
 0x158   :  { %231 = vrot.lane.b32.xlu1 %v219_v38, %s3605_s26 }
 0x159   :  { %v3769_v39 = vld [vmem:[#allocation2 + $0x18] sm:$0xff] }
 0x15a   :  { %v220_v40 = vmul.f32 %v3769_v39, %v3769_v39 }
 0x15c   :  { %233 = vrot.lane.b32.xlu0 %v220_v40, %s3605_s26 }
 0x15d   :  { %v3774_v41 = vld [vmem:[#allocation2 + $0x20] sm:$0xf]  ;;  %v228_v43 = vpop.permute.xlu1 %227 }
 0x15e   :  { %v221_v42 = vmul.f32 %v3774_v41, %v3774_v41  ;;  %v242_v47 = vsel %vm113_vm0, %v3750_v30, %v228_v43 }
 0x160   :  { %235 = vrot.lane.b32.xlu1 %v221_v42, %s3605_s26 }
 0x161   :  { %v230_v44 = vpop.permute.xlu0 %229 }
 0x162   :  { %v243_v46 = vsel %vm113_vm0, %v3756_v32, %v230_v44 }
 0x163   :  { %v247_v50 = vadd.f32 %v243_v46, %v242_v47 }
 0x1ca   :  { %v232_v45 = vpop.permute.xlu1 %231 }
 0x1cb   :  { %v244_v48 = vsel %vm113_vm0, %v3763_v37, %v232_v45 }
 0x1cc   :  { %v248_v52 = vadd.f32 %v247_v50, %v244_v48 }
 0x1ce   :  { %v234_v49 = vpop.permute.xlu0 %233 }
 0x1cf   :  { %v245_v51 = vsel %vm113_vm0, %v3769_v39, %v234_v49 }
 0x1d0   :  { %v249_v54 = vadd.f32 %v248_v52, %v245_v51 }
 0x1d2   :  { %v236_v53 = vpop.permute.xlu1 %235 }
 0x1d3   :  { %v246_v55 = vsel %vm113_vm0, %v3774_v41, %v236_v53 }
 0x1d4   :  { %v251_v56 = vsel %vm250_vm7, %v246_v55, 0.0 }
 0x1d5   :  { %v252_v57 = vadd.f32 %v251_v56, %v249_v54 }
 0x1d7   :  { %v253_v58 = vrot.slane %v252_v57, 4 }
 0x1d9   :  { %v254_v59 = vadd.f32 %v253_v58, %v252_v57 }
 0x1db   :  { %v255_v60 = vrot.slane %v254_v59, 2 }
 0x1dd   :  { %v256_v61 = vadd.f32 %v255_v60, %v254_v59 }
 0x1df   :  { %v257_v62 = vrot.slane %v256_v61, 1 }
 0x1e1   :  { %v258_v63 = vadd.f32 %v257_v62, %v256_v61 }
 0x1e3   :  { %v260_v0 = vmul.f32 0.027777778, %v258_v63 }
 0x1e5   :  { %v261_v2 = vmul.f32 %v260_v0, %v260_v0 }
 0x1e7   :  { %263 = vrot.lane.b32.xlu0 %v261_v2, %s3605_s26 }
 0x259   :  { %v264_v5 = vpop.permute.xlu0 %263 }
 0x25a   :  { %v266_v6 = vsub.f32 %v260_v0, %v264_v5 }
 0x25c   :  { %v267_v7 = vmax.f32 %v266_v6, 0.0 }
 0x25e   :  { %v269_v8 = vadd.f32 1e-05, %v267_v7 }
 0x260   :  { %3594 = vrsqrt.f32 %v269_v8 }
 0x26d   :  { %v3595_v19 = vpop.eup %3594 }
 0x26e   :  { %v278_v21 = vrot.slane %v3595_v19, %v3806_v17 }
 0x270   :  { %v285_v23 = vrot.slane %v278_v21, %v3806_v17 }
 0x272   :  { %286 = vrot.lane.b32.xlu1 %v285_v23, %s3605_s26 }
 0x2e4   :  { %v287_v26 = vpop.permute.xlu1 %286 }
 0x2e5   :  { %v289_v27 = vmul.f32 %v287_v26, %v268_v24 }
 0x2e7   :  { %v291_v29 = vmul.f32 %v289_v27, %v260_v0  ;;  %v297_v31 = vrot.slane %v289_v27, %v3823_v25 }
 0x2e9   :  { %v292_v33 = vsub.f32 %v290_v28, %v291_v29  ;;  %v299_v34 = vmul.f32 %v297_v31, %v3750_v30  ;;  %v300_v35 = vmul.f32 %v297_v31, %v3756_v32  ;;  %v301_v44 = vmul.f32 %v297_v31, %v3763_v37 }
 0x2ea   :  { %v302_v45 = vmul.f32 %v297_v31, %v3769_v39  ;;  %v303_v32 = vmul.f32 %v297_v31, %v3774_v41 }
 0x2eb   :  { %v308_v36 = vrot.slane %v292_v33, %v3823_v25 }
 0x2ed   :  { %v310_v38 = vadd.f32 %v308_v36, %v299_v34  ;;  %v311_v40 = vadd.f32 %v308_v36, %v300_v35  ;;  %v312_v47 = vadd.f32 %v308_v36, %v301_v44  ;;  %v313_v48 = vadd.f32 %v308_v36, %v302_v45 }
 0x2ee   :  { %v314_v51 = vadd.f32 %v308_v36, %v303_v32 }
 0x2ef   :  { %v315_v42 = vmax.f32 %v310_v38, 0.0  ;;  %v316_v43 = vmax.f32 %v311_v40, 0.0  ;;  %v317_v30 = vmax.f32 %v312_v47, 0.0  ;;  %v318_v49 = vmax.f32 %v313_v48, 0.0 }
 0x2f0   :  { %v319_v37 = vmax.f32 %v314_v51, 0.0 }
 0x2f1   :  { %v320_v46 = vpack.c.bf16 %v316_v43, %v315_v42  ;;  %v321_v50 = vpack.c.bf16 %v318_v49, %v317_v30 }
 0x2f2   :  { %v322_v52 = vpack.c.bf16 %v319_v37, %v319_v37 }
 0x2f3   :  { %3365 = vmatmul.mubr.msk.bf16.vlgmr.msra.gmra.mxu1 %vm113_vm0, %v320_v46 }
 0x2f4   :  { %422 = vmatprep.mubr.bf16.mxu1 %v3604_v1 }
 0x2fb   :  { %3366 = vmatmul.mubr.msk.bf16.gmra.mxu1 %vm113_vm0, %v321_v50 }
 0x2fc   :  { %432 = vmatprep.mubr.bf16.mxu1 %v3604_v1 }
 0x303   :  { %3367 = vmatmul.mubr.msk.bf16.gmra.mxu1 %vm113_vm0, %v322_v52 }
 0x3b3   :  { %v414_v39 = vpop.f32.mrf.mxu1 }
 0x3b4   :  { %444 = vrot.lane.b32.xlu0 %v414_v39, %s3605_s26  ;;  %v483_v41 = vrot.slane %v414_v39, 7 }
 0x3b5   :  { %v416_v53 = vpop.f32.mrf.mxu1 }
 0x3b7   :  { %v418_v54 = vpop.f32.mrf.mxu1 }
 0x3b8   :  { %446 = vrot.lane.b32.xlu1 %v418_v54, %s3605_s26  ;;  %v484_v57 = vrot.slane %v418_v54, 7 }
 0x3b9   :  { %v420_v55 = vpop.f32.mrf.mxu1 }
 0x3ba   :  { %v485_v0 = vsel %vm185_vm5, %v483_v41, %v484_v57 }
 0x3bb   :  { %v424_v56 = vpop.f32.mrf.mxu1 }
 0x3bc   :  { %448 = vrot.lane.b32.xlu0 %v424_v56, %s3605_s26  ;;  %v459_v60 = vrot.slane %v424_v56, 2  ;;  %v494_v62 = vrot.slane %v424_v56, 7 }
 0x3bd   :  { %v426_v58 = vpop.f32.mrf.mxu1 }
 0x3be   :  { %v488_v59 = vadd.f32 %v483_v41, %v426_v58  ;;  %v495_v9 = vsel %vm185_vm5, %v484_v57, %v494_v62  ;;  %vm881_vm5 = vcmask 261124  }
 0x3bf   :  { %v428_v1 = vpop.f32.mrf.mxu1 }
 0x3c0   :  { %490 = vst.msk [vmem:[#allocation3 + $0x34] sm:$0xfc] %vm193_vm4, %v488_v59  ;;  %v460_v61 = vrot.slane %v428_v1, 2  ;;  %473 = vrot.lane.b32.xlu1 %v428_v1, %s3605_s26 }
 0x3c1   :  { %v430_v63 = vpop.f32.mrf.mxu1 }
 0x3c2   :  { %v461_v2 = vsel %vm458_vm8, %v459_v60, %v460_v61  ;;  %v489_v3 = vadd.f32 %v485_v0, %v430_v63  ;;  %493 = vst.msk [vmem:[#allocation3 + $0x3c] sm:$0x4] %vm492_vm9, %v430_v63  ;;  %v498_v4 = vadd.f32 %v484_v57, %v430_v63  ;;  %vm925_vm9 = vcmask 261126  }
 0x3c3   :  { %v467_v5 = vadd.f32 %v461_v2, %v416_v53  ;;  %v434_v6 = vpop.f32.mrf.mxu1 }
 0x3c4   :  { %491 = vst.msk [vmem:[#allocation3 + $0x3c] sm:$0x3] %vm195_vm6, %v489_v3  ;;  %v462_v7 = vrot.slane %v434_v6, 2  ;;  %475 = vrot.lane.b32.xlu0 %v434_v6, %s3605_s26 }
 0x3c5   :  { %501 = vst.msk [vmem:[#allocation3 + $0x3c] sm:$0xf8] %vm500_vm10, %v498_v4  ;;  %v436_v8 = vpop.f32.mrf.mxu1  ;;  %vm974_vm10 = vcmask 261127  }
 0x3c6   :  { %470 = vst.msk [vmem:[#allocation3 + $0x12] sm:$0xff] %vm113_vm0, %v467_v5  ;;  %v463_v10 = vsel %vm458_vm8, %v460_v61, %v462_v7  ;;  %v469_v11 = vadd.f32 %v462_v7, %v426_v58  ;;  %v499_v12 = vadd.f32 %v495_v9, %v436_v8 }
 0x3c7   :  { %505 = vst.msk [vmem:[#allocation3 + $0x44] sm:$0x8] %vm504_vm11, %v436_v8  ;;  %v468_v13 = vadd.f32 %v463_v10, %v420_v55  ;;  %v438_v14 = vpop.f32.mrf.mxu1  ;;  %vm954_vm11 = vcmask 260102  }
 0x3c8   :  { %472 = vst.msk [vmem:[#allocation3 + $0x22] sm:$0x3] %vm195_vm6, %v469_v11  ;;  %v3607_v11 = vmov 0.0  }
 0x3c9   :  { %503 = vst.msk [vmem:[#allocation3 + $0x44] sm:$0x7] %vm502_vm12, %v499_v12  ;;  %v439_v15 = vpop.f32.mrf.mxu1  ;;  %3446 = vmatprep.subr.bf16.mxu0 %v3607_v11  ;;  %v3587_v12 = vld [vmem:[%s5724_s7 + $0x18] sm:$0xff]   ;;  %3474 = vmatprep.subr.bf16.mxu1 %v3607_v11  ;;  %vm976_vm12 = vcmask 260096  }
 0x3ca   :  { %471 = vst.msk [vmem:[#allocation3 + $0x1a] sm:$0xff] %vm113_vm0, %v468_v13  ;;  %3447 = vmatpush3.bf16.msra.mxu0 %v3587_v12  ;;  %3454 = vmatprep.mubr.msk.bf16.mxu0 %vm3608_vm14, %v3607_v11 }
 0x3cb   :  { %3448 = vmatprep.subr.bf16.mxu0 %v3607_v11  ;;  %3478 = vmatprep.mubr.msk.bf16.mxu1 %vm3608_vm14, %v3607_v11 }
 0x3cc   :  { %v3887_v38 = vld [vmem:[#allocation3 + $0x38] sm:$0xff] }
 0x3cd   :  { %v522_v43 = vmul.f32 %v3887_v38, %v3887_v38 }
 0x3d0   :  { %v3897_v44 = vld [vmem:[#allocation3 + $0x40] sm:$0xff] }
 0x3d1   :  { %v3868_v26 = vld [vmem:[#allocation3 + $0x18] sm:$0xff]  ;;  %v523_v45 = vmul.f32 %v3897_v44, %v3897_v44 }
 0x3d2   :  { %v518_v31 = vmul.f32 %v3868_v26, %v3868_v26 }
 0x426   :  { %v445_v16 = vpop.permute.xlu0 %444 }
 0x427   :  { %453 = vst.msk [vmem:[#allocation3] sm:$0xff] %vm113_vm0, %v445_v16 }
 0x42a   :  { %v447_v18 = vpop.permute.xlu1 %446 }
 0x42b   :  { %454 = vst.msk [vmem:[#allocation3 + $0x8] sm:$0xff] %vm113_vm0, %v447_v18  ;;  %v3588_v18 = vld [vmem:[%s5724_s7 + $0x10] sm:$0xff]  }
 0x42c   :  { %3449 = vmatpush3.bf16.msra.mxu0 %v3588_v18 }
 0x42d   :  { %3450 = vmatprep.subr.bf16.mxu0 %v3607_v11 }
 0x42e   :  { %v449_v19 = vpop.permute.xlu0 %448  ;;  %v3856_v20 = vld [vmem:[#allocation3] sm:$0xff] }
 0x42f   :  { %455 = vst.msk [vmem:[#allocation3 + $0x10] sm:$0x3] %vm195_vm6, %v449_v19  ;;  %v515_v21 = vmul.f32 %v3856_v20, %v3856_v20  ;;  %vm884_vm6 = vcmask 259072  }
 0x430   :  { %479 = vst.msk [vmem:[#allocation3 + $0x22] sm:$0xfc] %vm193_vm4, %v449_v19  ;;  %v3589_v19 = vld [vmem:[%s5724_s7 + $0x8] sm:$0xff]   ;;  %vm840_vm4 = vcmask 257024  }
 0x431   :  { %533 = vrot.lane.b32.xlu1 %v515_v21, %s3605_s26  ;;  %3451 = vmatpush3.bf16.msra.mxu0 %v3589_v19 }
 0x432   :  { %v474_v22 = vpop.permute.xlu1 %473  ;;  %v3863_v23 = vld [vmem:[#allocation3 + $0x8] sm:$0xff]  ;;  %3452 = vmatprep.subr.bf16.mxu0 %v3607_v11 }
 0x433   :  { %480 = vst.msk [vmem:[#allocation3 + $0x2a] sm:$0xff] %vm113_vm0, %v474_v22  ;;  %v516_v24 = vmul.f32 %v3863_v23, %v3863_v23  ;;  %v3590_v22 = vld [vmem:[%s5724_s7] sm:$0xff]  }
 0x435   :  { %535 = vrot.lane.b32.xlu0 %v516_v24, %s3605_s26  ;;  %3453 = vmatpush3.bf16.msra.mxu0 %v3590_v22 }
 0x436   :  { %v476_v27 = vpop.permute.xlu0 %475  ;;  %v3871_v28 = vld [vmem:[#allocation3 + $0x10] sm:$0xff] }
 0x437   :  { %482 = vst.msk [vmem:[#allocation3 + $0x32] sm:$0xf] %vm481_vm13, %v476_v27  ;;  %v517_v29 = vmul.f32 %v3871_v28, %v3871_v28  ;;  %v3877_v33 = vld [vmem:[#allocation3 + $0x20] sm:$0xff]  ;;  %vm1421_vm13 = vcmask 123904  }
 0x438   :  { %v519_v35 = vmul.f32 %v3877_v33, %v3877_v33 }
 0x439   :  { %537 = vrot.lane.b32.xlu1 %v517_v29, %s3605_s26  ;;  %539 = vrot.lane.b32.xlu0 %v518_v31, %s3605_s26  ;;  %v592_v29 = vld [vmem:[%s5725_s5] sm:$0x1]  ;;  %s3609_s5 = smov 96  }
 0x43a   :  { %v3881_v34 = vld [vmem:[#allocation3 + $0x28] sm:$0xff] }
 0x43b   :  { %v520_v36 = vmul.f32 %v3881_v34, %v3881_v34 }
 0x43d   :  { %541 = vrot.lane.b32.xlu1 %v519_v35, %s3605_s26  ;;  %543 = vrot.lane.b32.xlu0 %v520_v36, %s3605_s26  ;;  %v614_v36 = vld [vmem:[%s5726_s6] sm:$0x1]  ;;  %s3610_s6 = smov 32  }
 0x43e   :  { %v3891_v40 = vld [vmem:[#allocation3 + $0x30] sm:$0xff] }
 0x43f   :  { %v521_v42 = vmul.f32 %v3891_v40, %v3891_v40 }
 0x441   :  { %545 = vrot.lane.b32.xlu1 %v521_v42, %s3605_s26  ;;  %547 = vrot.lane.b32.xlu0 %v522_v43, %s3605_s26 }
 0x445   :  { %549 = vrot.lane.b32.xlu1 %v523_v45, %s3605_s26 }
 0x4a3   :  { %v534_v46 = vpop.permute.xlu1 %533 }
 0x4a4   :  { %v560_v30 = vsel %vm113_vm0, %v3856_v20, %v534_v46 }
 0x4a7   :  { %v536_v47 = vpop.permute.xlu0 %535 }
 0x4a8   :  { %v561_v48 = vsel %vm113_vm0, %v3863_v23, %v536_v47 }
 0x4a9   :  { %v569_v49 = vadd.f32 %v561_v48, %v560_v30 }
 0x4ab   :  { %v538_v32 = vpop.permute.xlu1 %537  ;;  %v540_v50 = vpop.permute.xlu0 %539 }
 0x4ac   :  { %v562_v51 = vsel %vm113_vm0, %v3871_v28, %v538_v32  ;;  %v563_v52 = vsel %vm113_vm0, %v3868_v26, %v540_v50 }
 0x4ad   :  { %v570_v37 = vadd.f32 %v569_v49, %v562_v51 }
 0x4af   :  { %v571_v39 = vadd.f32 %v570_v37, %v563_v52  ;;  %v542_v53 = vpop.permute.xlu1 %541  ;;  %v544_v54 = vpop.permute.xlu0 %543 }
 0x4b0   :  { %v564_v55 = vsel %vm113_vm0, %v3877_v33, %v542_v53  ;;  %v565_v41 = vsel %vm113_vm0, %v3881_v34, %v544_v54 }
 0x4b1   :  { %v572_v56 = vadd.f32 %v571_v39, %v564_v55 }
 0x4b3   :  { %v573_v57 = vadd.f32 %v572_v56, %v565_v41  ;;  %v546_v58 = vpop.permute.xlu1 %545  ;;  %v548_v59 = vpop.permute.xlu0 %547 }
 0x4b4   :  { %v566_v1 = vsel %vm113_vm0, %v3891_v40, %v546_v58  ;;  %v567_v61 = vsel %vm113_vm0, %v3887_v38, %v548_v59 }
 0x4b5   :  { %v574_v60 = vadd.f32 %v573_v57, %v566_v1 }
 0x4b7   :  { %v575_v62 = vadd.f32 %v574_v60, %v567_v61  ;;  %v550_v63 = vpop.permute.xlu1 %549 }
 0x4b8   :  { %v568_v0 = vsel %vm113_vm0, %v3897_v44, %v550_v63 }
 0x4b9   :  { %v576_v2 = vadd.f32 %v575_v62, %v568_v0 }
 0x4bb   :  { %v577_v3 = vrot.slane %v576_v2, 4 }
 0x4bd   :  { %v578_v4 = vadd.f32 %v577_v3, %v576_v2 }
 0x4bf   :  { %v579_v5 = vrot.slane %v578_v4, 2 }
 0x4c1   :  { %v580_v6 = vadd.f32 %v579_v5, %v578_v4 }
 0x4c3   :  { %v581_v7 = vrot.slane %v580_v6, 1 }
 0x4c5   :  { %v582_v8 = vadd.f32 %v581_v7, %v580_v6 }
 0x4c7   :  { %v584_v9 = vmul.f32 0.013888889, %v582_v8 }
 0x4c9   :  { %v585_v10 = vmul.f32 %v584_v9, %v584_v9 }
 0x4cb   :  { %587 = vrot.lane.b32.xlu0 %v585_v10, %s3605_s26 }
 0x53d   :  { %v588_v13 = vpop.permute.xlu0 %587 }
 0x53e   :  { %v590_v14 = vsub.f32 %v584_v9, %v588_v13 }
 0x540   :  { %v591_v15 = vmax.f32 %v590_v14, 0.0 }
 0x542   :  { %v593_v16 = vadd.f32 1e-05, %v591_v15 }
 0x544   :  { %3596 = vrsqrt.f32 %v593_v16 }
 0x551   :  { %v3597_v21 = vpop.eup %3596 }
 0x552   :  { %v602_v24 = vrot.slane %v3597_v21, %v3806_v17 }
 0x554   :  { %v609_v27 = vrot.slane %v602_v24, %v3806_v17 }
 0x556   :  { %610 = vrot.lane.b32.xlu1 %v609_v27, %s3605_s26 }
 0x5c8   :  { %v611_v31 = vpop.permute.xlu1 %610 }
 0x5c9   :  { %v613_v35 = vmul.f32 %v611_v31, %v592_v29 }
 0x5cb   :  { %v615_v42 = vmul.f32 %v613_v35, %v584_v9  ;;  %v621_v43 = vrot.slane %v613_v35, %v3823_v25 }
 0x5cd   :  { %v616_v45 = vsub.f32 %v614_v36, %v615_v42  ;;  %v623_v47 = vmul.f32 %v621_v43, %v3856_v20  ;;  %v624_v48 = vmul.f32 %v621_v43, %v3863_v23  ;;  %v625_v51 = vmul.f32 %v621_v43, %v3871_v28 }
 0x5ce   :  { %v626_v37 = vmul.f32 %v621_v43, %v3868_v26  ;;  %v627_v23 = vmul.f32 %v621_v43, %v3877_v33  ;;  %v628_v55 = vmul.f32 %v621_v43, %v3881_v34  ;;  %v629_v58 = vmul.f32 %v621_v43, %v3891_v40 }
 0x5cf   :  { %v636_v46 = vrot.slane %v616_v45, %v3823_v25  ;;  %v630_v59 = vmul.f32 %v621_v43, %v3887_v38  ;;  %v631_v62 = vmul.f32 %v621_v43, %v3897_v44 }
 0x5d1   :  { %v638_v30 = vadd.f32 %v636_v46, %v623_v47  ;;  %v639_v49 = vadd.f32 %v636_v46, %v624_v48  ;;  %v640_v39 = vadd.f32 %v636_v46, %v625_v51  ;;  %v641_v53 = vadd.f32 %v636_v46, %v626_v37 }
 0x5d2   :  { %v642_v41 = vadd.f32 %v636_v46, %v627_v23  ;;  %v643_v57 = vadd.f32 %v636_v46, %v628_v55  ;;  %v644_v60 = vadd.f32 %v636_v46, %v629_v58  ;;  %v645_v61 = vadd.f32 %v636_v46, %v630_v59 }
 0x5d3   :  { %v647_v32 = vmax.f32 %v638_v30, 0.0  ;;  %v648_v50 = vmax.f32 %v639_v49, 0.0  ;;  %v649_v54 = vmax.f32 %v640_v39, 0.0  ;;  %v650_v20 = vmax.f32 %v641_v53, 0.0 }
 0x5d4   :  { %v651_v26 = vmax.f32 %v642_v41, 0.0  ;;  %v652_v28 = vmax.f32 %v643_v57, 0.0  ;;  %v653_v33 = vmax.f32 %v644_v60, 0.0  ;;  %v654_v34 = vmax.f32 %v645_v61, 0.0 }
 0x5d5   :  { %v656_v52 = vpack.c.bf16 %v648_v50, %v647_v32  ;;  %v657_v56 = vpack.c.bf16 %v650_v20, %v649_v54  ;;  %v646_v0 = vadd.f32 %v636_v46, %v631_v62 }
 0x5d6   :  { %v658_v1 = vpack.c.bf16 %v652_v28, %v651_v26  ;;  %v659_v63 = vpack.c.bf16 %v654_v34, %v653_v33 }
 0x5d7   :  { %3455 = vmatmul.mubr.msk.bf16.vlgmr.msra.gmra.mxu0 %vm113_vm0, %v656_v52  ;;  %v655_v38 = vmax.f32 %v646_v0, 0.0 }
 0x5d8   :  { %3458 = vmatprep.mubr.msk.bf16.mxu0 %vm3608_vm14, %v3607_v11 }
 0x5d9   :  { %v660_v40 = vpack.c.bf16 %v655_v38, %v655_v38 }
 0x5df   :  { %3459 = vmatmul.mubr.msk.bf16.gmra.mxu0 %vm113_vm0, %v657_v56 }
 0x5e0   :  { %3462 = vmatprep.mubr.msk.bf16.mxu0 %vm3608_vm14, %v3607_v11 }
 0x5e7   :  { %3463 = vmatmul.mubr.msk.bf16.gmra.mxu0 %vm113_vm0, %v658_v1 }
 0x5e8   :  { %3466 = vmatprep.mubr.msk.bf16.mxu0 %vm3608_vm14, %v3607_v11 }
 0x5ef   :  { %3467 = vmatmul.mubr.msk.bf16.gmra.mxu0 %vm113_vm0, %v659_v63 }
 0x5f0   :  { %3470 = vmatprep.mubr.msk.bf16.mxu0 %vm3608_vm14, %v3607_v11 }
 0x5f7   :  { %3471 = vmatmul.mubr.msk.bf16.gmra.mxu0 %vm113_vm0, %v660_v40 }
 0x697   :  { %v742_v2 = vpop.f32.mrf.mxu0 }
 0x698   :  { %v930_v32 = vrot.slane %v742_v2, 3 }
 0x699   :  { %v3456_v3 = vpop.f32.mrf.mxu0 }
 0x69b   :  { %v3977_v4 = vpop.f32.mrf.mxu0 }
 0x69c   :  { %v931_v48 = vrot.slane %v3977_v4, 3 }
 0x69d   :  { %v3457_v5 = vpop.f32.mrf.mxu0 }
 0x69e   :  { %v932_v51 = vsel %vm929_vm15, %v930_v32, %v931_v48 }
 0x69f   :  { %v3979_v6 = vpop.f32.mrf.mxu0 }
 0x6a0   :  { %v799_v9 = vrot.slane %v3979_v6, 2  ;;  %v956_v37 = vrot.slane %v3979_v6, 3 }
 0x6a1   :  { %v3460_v7 = vpop.f32.mrf.mxu0 }
 0x6a2   :  { %v957_v52 = vsel %vm929_vm15, %v931_v48, %v956_v37 }
 0x6a3   :  { %v3981_v44 = vpop.f32.mrf.mxu0 }
 0x6a4   :  { %v800_v8 = vrot.slane %v3981_v44, 2 }
 0x6a5   :  { %v3461_v10 = vpop.f32.mrf.mxu0 }
 0x6a6   :  { %v801_v12 = vsel %vm458_vm8, %v799_v9, %v800_v8 }
 0x6a7   :  { %804 = vrot.lane.b32.xlu0 %v801_v12, %s3605_s26  ;;  %v3987_v13 = vpop.f32.mrf.mxu0 }
 0x6a8   :  { %v802_v14 = vrot.slane %v3987_v13, 2 }
 0x6a9   :  { %v3464_v15 = vpop.f32.mrf.mxu0 }
 0x6aa   :  { %v803_v16 = vsel %vm458_vm8, %v800_v8, %v802_v14 }
 0x6ab   :  { %808 = vrot.lane.b32.xlu0 %v802_v14, %s3605_s26  ;;  %806 = vrot.lane.b32.xlu1 %v803_v16, %s3605_s26  ;;  %v3993_v18 = vpop.f32.mrf.mxu0 }
 0x6ac   :  { %v844_v19 = vrot.slane %v3993_v18, 2 }
 0x6ad   :  { %v3465_v21 = vpop.f32.mrf.mxu0 }
 0x6ae   :  { %v845_v22 = vsel %vm458_vm8, %v802_v14, %v844_v19 }
 0x6af   :  { %848 = vrot.lane.b32.xlu1 %v845_v22, %s3605_s26  ;;  %v3998_v24 = vpop.f32.mrf.mxu0 }
 0x6b0   :  { %v846_v27 = vrot.slane %v3998_v24, 2 }
 0x6b1   :  { %v3468_v29 = vpop.f32.mrf.mxu0 }
 0x6b2   :  { %v847_v31 = vsel %vm458_vm8, %v844_v19, %v846_v27 }
 0x6b3   :  { %852 = vrot.lane.b32.xlu1 %v846_v27, %s3605_s26  ;;  %850 = vrot.lane.b32.xlu0 %v847_v31, %s3605_s26  ;;  %v4004_v35 = vpop.f32.mrf.mxu0 }
 0x6b4   :  { %v888_v36 = vrot.slane %v4004_v35, 2 }
 0x6b5   :  { %v3469_v42 = vpop.f32.mrf.mxu0 }
 0x6b6   :  { %v889_v43 = vsel %vm458_vm8, %v846_v27, %v888_v36 }
 0x6b7   :  { %892 = vrot.lane.b32.xlu0 %v889_v43, %s3605_s26  ;;  %v4009_v45 = vpop.f32.mrf.mxu0 }
 0x6b8   :  { %v890_v46 = vrot.slane %v4009_v45, 2 }
 0x6b9   :  { %v3472_v47 = vpop.f32.mrf.mxu0 }
 0x6ba   :  { %v891_v30 = vsel %vm458_vm8, %v888_v36, %v890_v46 }
 0x6bb   :  { %896 = vrot.lane.b32.xlu0 %v890_v46, %s3605_s26  ;;  %894 = vrot.lane.b32.xlu1 %v891_v30, %s3605_s26  ;;  %v777_v49 = vpop.f32.mrf.mxu0 }
 0x6bd   :  { %v3473_v50 = vpop.f32.mrf.mxu0 }
 0x6bf   :  { %935 = vrot.lane.b32.xlu0 %v932_v51, %s3605_s26  ;;  %933 = vrot.lane.b32.xlu1 %v930_v32, %s3605_s26 }
 0x6c3   :  { %960 = vrot.lane.b32.xlu0 %v957_v52, %s3605_s26  ;;  %958 = vrot.lane.b32.xlu1 %v931_v48, %s3605_s26 }
 0x6c7   :  { %785 = vrot.lane.b32.xlu0 %v3977_v4, %s3609_s5  ;;  %783 = vrot.lane.b32.xlu1 %v742_v2, %s3609_s5 }
 0x6cb   :  { %833 = vrot.lane.b32.xlu0 %v3987_v13, %s3609_s5  ;;  %787 = vrot.lane.b32.xlu1 %v3979_v6, %s3609_s5 }
 0x6cf   :  { %875 = vrot.lane.b32.xlu0 %v3993_v18, %s3609_s5  ;;  %831 = vrot.lane.b32.xlu1 %v3981_v44, %s3609_s5 }
 0x6d3   :  { %877 = vrot.lane.b32.xlu1 %v3998_v24, %s3609_s5 }
 0x719   :  { %v805_v39 = vpop.permute.xlu0 %804 }
 0x71a   :  { %v813_v53 = vadd.f32 %v805_v39, %v742_v2 }
 0x71c   :  { %819 = vrot.lane.b32.xlu0 %v813_v53, %s3605_s26 }
 0x71d   :  { %v809_v54 = vpop.permute.xlu0 %808  ;;  %v807_v20 = vpop.permute.xlu1 %806 }
 0x71e   :  { %v815_v23 = vadd.f32 %v809_v54, %v3979_v6  ;;  %v814_v55 = vadd.f32 %v807_v20, %v3977_v4 }
 0x720   :  { %823 = vrot.lane.b32.xlu0 %v815_v23, %s3605_s26  ;;  %821 = vrot.lane.b32.xlu1 %v814_v55, %s3605_s26 }
 0x721   :  { %v849_v56 = vpop.permute.xlu1 %848 }
 0x722   :  { %v857_v41 = vadd.f32 %v849_v56, %v3979_v6 }
 0x724   :  { %921 = vrot.lane.b32.xlu0 %v4009_v45, %s3609_s5  ;;  %863 = vrot.lane.b32.xlu1 %v857_v41, %s3605_s26 }
 0x725   :  { %v853_v57 = vpop.permute.xlu1 %852  ;;  %v851_v26 = vpop.permute.xlu0 %850 }
 0x726   :  { %v859_v28 = vadd.f32 %v853_v57, %v3987_v13  ;;  %v858_v58 = vadd.f32 %v851_v26, %v3981_v44 }
 0x728   :  { %865 = vrot.lane.b32.xlu0 %v858_v58, %s3605_s26  ;;  %867 = vrot.lane.b32.xlu1 %v859_v28, %s3605_s26 }
 0x729   :  { %v893_v59 = vpop.permute.xlu0 %892 }
 0x72a   :  { %v901_v1 = vadd.f32 %v893_v59, %v3987_v13 }
 0x72c   :  { %907 = vrot.lane.b32.xlu0 %v901_v1, %s3605_s26  ;;  %919 = vrot.lane.b32.xlu1 %v4004_v35, %s3609_s5 }
 0x72d   :  { %v897_v60 = vpop.permute.xlu0 %896  ;;  %v895_v61 = vpop.permute.xlu1 %894 }
 0x72e   :  { %v903_v33 = vadd.f32 %v897_v60, %v3998_v24  ;;  %v902_v34 = vadd.f32 %v895_v61, %v3993_v18 }
 0x730   :  { %911 = vrot.lane.b32.xlu0 %v903_v33, %s3605_s26  ;;  %909 = vrot.lane.b32.xlu1 %v902_v34, %s3605_s26 }
 0x731   :  { %v936_v62 = vpop.permute.xlu0 %935  ;;  %v934_v63 = vpop.permute.xlu1 %933 }
 0x732   :  { %v940_v0 = vadd.f32 %v936_v62, %v4004_v35  ;;  %v939_v38 = vadd.f32 %v934_v63, %v3998_v24 }
 0x734   :  { %945 = vrot.lane.b32.xlu0 %v940_v0, %s3605_s26  ;;  %943 = vrot.lane.b32.xlu1 %v939_v38, %s3605_s26 }
 0x735   :  { %v961_v40 = vpop.permute.xlu0 %960  ;;  %v959_v2 = vpop.permute.xlu1 %958 }
 0x736   :  { %v964_v3 = vadd.f32 %v959_v2, %v4004_v35  ;;  %v965_v6 = vadd.f32 %v961_v40, %v4009_v45 }
 0x738   :  { %951 = vrot.lane.b32.xlu1 %v4004_v35, %s3605_s26  ;;  %968 = vrot.lane.b32.xlu0 %v964_v3, %s3605_s26 }
 0x739   :  { %v786_v4 = vpop.permute.xlu0 %785  ;;  %v784_v5 = vpop.permute.xlu1 %783 }
 0x73a   :  { %794 = vst.msk [vmem:[#allocation4 + $0x8] sm:$0xff] %vm792_vm1, %v786_v4  ;;  %793 = vst.msk [vmem:[#allocation4] sm:$0xff] %vm792_vm1, %v784_v5 }
 0x73c   :  { %970 = vrot.lane.b32.xlu1 %v965_v6, %s3605_s26  ;;  %978 = vrot.lane.b32.xlu0 %v4009_v45, %s3605_s26 }
 0x73d   :  { %v834_v7 = vpop.permute.xlu0 %833  ;;  %v788_v44 = vpop.permute.xlu1 %787 }
 0x73e   :  { %796 = vst.msk [vmem:[#allocation4 + $0x10] sm:$0x3] %vm795_vm2, %v788_v44 }
 0x73f   :  { %838 = vst.msk [vmem:[#allocation4 + $0x22] sm:$0xfc] %vm837_vm3, %v788_v44 }
 0x740   :  { %841 = vst.msk [vmem:[#allocation4 + $0x32] sm:$0xf] %vm840_vm4, %v834_v7 }
 0x741   :  { %882 = vst.msk [vmem:[#allocation4 + $0x44] sm:$0xf0] %vm881_vm5, %v834_v7  ;;  %v876_v8 = vpop.permute.xlu0 %875  ;;  %v832_v9 = vpop.permute.xlu1 %831  ;;  %v4075_v10 = vld [vmem:[#allocation4 + $0x8] sm:$0xff]  ;;  %v4077_v12 = vld [vmem:[#allocation4] sm:$0xff] }
 0x742   :  { %883 = vst.msk [vmem:[#allocation4 + $0x4c] sm:$0xff] %vm792_vm1, %v876_v8  ;;  %839 = vst.msk [vmem:[#allocation4 + $0x2a] sm:$0xff] %vm792_vm1, %v832_v9  ;;  %v1001_v13 = vmul.f32 %v4075_v10, %v4075_v10  ;;  %v1000_v14 = vmul.f32 %v4077_v12, %v4077_v12 }
 0x744   :  { %1038 = vrot.lane.b32.xlu0 %v1001_v13, %s3610_s6  ;;  %1036 = vrot.lane.b32.xlu1 %v1000_v14, %s3610_s6 }
 0x745   :  { %v878_v15 = vpop.permute.xlu1 %877 }
 0x746   :  { %885 = vst.msk [vmem:[#allocation4 + $0x54] sm:$0x3f] %vm884_vm6, %v878_v15 }
 0x747   :  { %926 = vst.msk [vmem:[#allocation4 + $0x66] sm:$0xc0] %vm925_vm9, %v878_v15 }
 0x749   :  { %v4109_v45 = vld [vmem:[#allocation4 + $0x28] sm:$0xff] }
 0x74a   :  { %v1005_v30 = vmul.f32 %v4109_v45, %v4109_v45  ;;  %v4133_v53 = vld [vmem:[#allocation4 + $0x48] sm:$0xff] }
 0x74b   :  { %v1009_v55 = vmul.f32 %v4133_v53, %v4133_v53 }
 0x74d   :  { %v4135_v54 = vld [vmem:[#allocation4 + $0x50] sm:$0xff] }
 0x74e   :  { %v1010_v56 = vmul.f32 %v4135_v54, %v4135_v54 }
 0x78e   :  { %v820_v16 = vpop.permute.xlu0 %819 }
 0x78f   :  { %828 = vst.msk [vmem:[#allocation4 + $0x12] sm:$0xff] %vm792_vm1, %v820_v16 }
 0x792   :  { %v824_v18 = vpop.permute.xlu0 %823  ;;  %v822_v19 = vpop.permute.xlu1 %821 }
 0x793   :  { %830 = vst.msk [vmem:[#allocation4 + $0x22] sm:$0x3] %vm795_vm2, %v824_v18 }
 0x794   :  { %829 = vst.msk [vmem:[#allocation4 + $0x1a] sm:$0xff] %vm792_vm1, %v822_v19 }
 0x796   :  { %v922_v21 = vpop.permute.xlu0 %921  ;;  %v864_v22 = vpop.permute.xlu1 %863  ;;  %v4092_v24 = vld [vmem:[#allocation4 + $0x10] sm:$0xff] }
 0x797   :  { %928 = vst.msk [vmem:[#allocation4 + $0x76] sm:$0xff] %vm792_vm1, %v922_v21  ;;  %v1002_v27 = vmul.f32 %v4092_v24, %v4092_v24 }
 0x798   :  { %872 = vst.msk [vmem:[#allocation4 + $0x34] sm:$0xfc] %vm837_vm3, %v864_v22 }
 0x799   :  { %1040 = vrot.lane.b32.xlu1 %v1002_v27, %s3610_s6 }
 0x79a   :  { %v866_v29 = vpop.permute.xlu0 %865  ;;  %v868_v31 = vpop.permute.xlu1 %867 }
 0x79b   :  { %v4099_v35 = vld [vmem:[#allocation4 + $0x20] sm:$0xff]  ;;  %v4101_v36 = vld [vmem:[#allocation4 + $0x18] sm:$0xff]  ;;  %873 = vst.msk [vmem:[#allocation4 + $0x3c] sm:$0xff] %vm792_vm1, %v866_v29 }
 0x79c   :  { %874 = vst.msk [vmem:[#allocation4 + $0x44] sm:$0xf] %vm840_vm4, %v868_v31  ;;  %v1004_v42 = vmul.f32 %v4099_v35, %v4099_v35  ;;  %v1003_v43 = vmul.f32 %v4101_v36, %v4101_v36  ;;  %vm1551_vm4 = vcmask 130054  }
 0x79e   :  { %1044 = vrot.lane.b32.xlu1 %v1004_v42, %s3610_s6  ;;  %1042 = vrot.lane.b32.xlu0 %v1003_v43, %s3610_s6  ;;  %v908_v46 = vpop.permute.xlu0 %907  ;;  %v920_v47 = vpop.permute.xlu1 %919 }
 0x79f   :  { %v4113_v48 = vld [vmem:[#allocation4 + $0x30] sm:$0xff]  ;;  %916 = vst.msk [vmem:[#allocation4 + $0x56] sm:$0xf0] %vm881_vm5, %v908_v46  ;;  %vm1466_vm5 = vcmask 125952  }
 0x7a0   :  { %927 = vst.msk [vmem:[#allocation4 + $0x6e] sm:$0xff] %vm792_vm1, %v920_v47  ;;  %v1006_v49 = vmul.f32 %v4113_v48, %v4113_v48 }
 0x7a2   :  { %1046 = vrot.lane.b32.xlu0 %v1005_v30, %s3610_s6  ;;  %1048 = vrot.lane.b32.xlu1 %v1006_v49, %s3610_s6  ;;  %v912_v32 = vpop.permute.xlu0 %911  ;;  %v910_v50 = vpop.permute.xlu1 %909  ;;  %v4123_v51 = vld [vmem:[#allocation4 + $0x38] sm:$0xff] }
 0x7a3   :  { %v4125_v37 = vld [vmem:[#allocation4 + $0x40] sm:$0xff]  ;;  %918 = vst.msk [vmem:[#allocation4 + $0x66] sm:$0x3f] %vm884_vm6, %v912_v32  ;;  %v1007_v52 = vmul.f32 %v4123_v51, %v4123_v51 }
 0x7a4   :  { %917 = vst.msk [vmem:[#allocation4 + $0x5e] sm:$0xff] %vm792_vm1, %v910_v50  ;;  %v1008_v39 = vmul.f32 %v4125_v37, %v4125_v37 }
 0x7a6   :  { %1050 = vrot.lane.b32.xlu0 %v1007_v52, %s3610_s6  ;;  %1052 = vrot.lane.b32.xlu1 %v1008_v39, %s3610_s6  ;;  %v946_v20 = vpop.permute.xlu0 %945  ;;  %v944_v23 = vpop.permute.xlu1 %943 }
 0x7a7   :  { %950 = vst.msk [vmem:[#allocation4 + $0x80] sm:$0x3f] %vm884_vm6, %v946_v20  ;;  %v4157_v1 = vld [vmem:[#allocation4 + $0x70] sm:$0xff]  ;;  %vm1507_vm6 = vcmask 130052  }
 0x7a8   :  { %949 = vst.msk [vmem:[#allocation4 + $0x78] sm:$0xc0] %vm925_vm9, %v944_v23  ;;  %v1014_v34 = vmul.f32 %v4157_v1, %v4157_v1  ;;  %vm1752_vm9 = vcmask 129030  }
 0x7aa   :  { %1054 = vrot.lane.b32.xlu0 %v1009_v55, %s3610_s6  ;;  %1056 = vrot.lane.b32.xlu1 %v1010_v56, %s3610_s6  ;;  %v969_v41 = vpop.permute.xlu0 %968  ;;  %v952_v57 = vpop.permute.xlu1 %951  ;;  %v4159_v60 = vld [vmem:[#allocation4 + $0x68] sm:$0xff] }
 0x7ab   :  { %v4147_v26 = vld [vmem:[#allocation4 + $0x60] sm:$0xff]  ;;  %v4149_v28 = vld [vmem:[#allocation4 + $0x58] sm:$0xff]  ;;  %975 = vst.msk [vmem:[#allocation4 + $0x80] sm:$0x80] %vm974_vm10, %v969_v41  ;;  %v1013_v62 = vmul.f32 %v4159_v60, %v4159_v60 }
 0x7ac   :  { %955 = vst.msk [vmem:[#allocation4 + $0x80] sm:$0x40] %vm954_vm11, %v952_v57  ;;  %v1012_v58 = vmul.f32 %v4147_v26, %v4147_v26  ;;  %v1011_v59 = vmul.f32 %v4149_v28, %v4149_v28 }
 0x7ae   :  { %1060 = vrot.lane.b32.xlu1 %v1012_v58, %s3610_s6  ;;  %1058 = vrot.lane.b32.xlu0 %v1011_v59, %s3610_s6  ;;  %v979_v61 = vpop.permute.xlu0 %978  ;;  %v971_v33 = vpop.permute.xlu1 %970 }
 0x7af   :  { %981 = vst.msk [vmem:[#allocation4 + $0x88] sm:$0x80] %vm974_vm10, %v979_v61  ;;  %v4168_v63 = vld [vmem:[#allocation4 + $0x78] sm:$0xff] }
 0x7b0   :  { %977 = vst.msk [vmem:[#allocation4 + $0x88] sm:$0x7f] %vm976_vm12, %v971_v33  ;;  %v1015_v38 = vmul.f32 %v4168_v63, %v4168_v63  ;;  %vm1774_vm12 = vcmask 129024  }
 0x7b2   :  { %1064 = vrot.lane.b32.xlu1 %v1014_v34, %s3610_s6  ;;  %1062 = vrot.lane.b32.xlu0 %v1013_v62, %s3610_s6 }
 0x7b3   :  { %v4172_v0 = vld [vmem:[#allocation4 + $0x80] sm:$0xff] }
 0x7b4   :  { %v1016_v40 = vmul.f32 %v4172_v0, %v4172_v0 }
 0x7b6   :  { %1066 = vrot.lane.b32.xlu0 %v1015_v38, %s3610_s6  ;;  %1068 = vrot.lane.b32.xlu1 %v1016_v40, %s3610_s6  ;;  %v1039_v4 = vpop.permute.xlu0 %1038  ;;  %v1037_v5 = vpop.permute.xlu1 %1036 }
 0x7b7   :  { %v4180_v2 = vld [vmem:[#allocation4 + $0x88] sm:$0xff]  ;;  %v1091_v6 = vsel %vm792_vm1, %v4075_v10, %v1039_v4  ;;  %v1090_v7 = vsel %vm792_vm1, %v4077_v12, %v1037_v5 }
 0x7b8   :  { %v1017_v3 = vmul.f32 %v4180_v2, %v4180_v2  ;;  %v1109_v44 = vsel %vm113_vm0, %v1091_v6, 0.0  ;;  %v1108_v8 = vsel %vm113_vm0, %v1090_v7, 0.0 }
 0x7b9   :  { %v1110_v15 = vadd.f32 %v1109_v44, %v1108_v8 }
 0x7ba   :  { %1070 = vrot.lane.b32.xlu0 %v1017_v3, %s3610_s6 }
 0x80b   :  { %v1041_v9 = vpop.permute.xlu1 %1040 }
 0x80c   :  { %v1092_v13 = vsel %vm792_vm1, %v4092_v24, %v1041_v9 }
 0x80d   :  { %v1111_v14 = vsel %vm113_vm0, %v1092_v13, 0.0 }
 0x80e   :  { %v1112_v19 = vadd.f32 %v1111_v14, %v1110_v15 }
 0x810   :  { %v1043_v16 = vpop.permute.xlu0 %1042  ;;  %v1045_v18 = vpop.permute.xlu1 %1044 }
 0x811   :  { %v1093_v21 = vsel %vm792_vm1, %v4101_v36, %v1043_v16  ;;  %v1094_v22 = vsel %vm792_vm1, %v4099_v35, %v1045_v18 }
 0x812   :  { %v1113_v27 = vsel %vm113_vm0, %v1093_v21, 0.0  ;;  %v1115_v31 = vsel %vm113_vm0, %v1094_v22, 0.0 }
 0x813   :  { %v1114_v29 = vadd.f32 %v1113_v27, %v1112_v19 }
 0x814   :  { %v1047_v42 = vpop.permute.xlu0 %1046  ;;  %v1049_v43 = vpop.permute.xlu1 %1048 }
 0x815   :  { %v1116_v46 = vadd.f32 %v1115_v31, %v1114_v29  ;;  %v1095_v47 = vsel %vm792_vm1, %v4109_v45, %v1047_v42  ;;  %v1096_v30 = vsel %vm792_vm1, %v4113_v48, %v1049_v43 }
 0x816   :  { %v1117_v49 = vsel %vm113_vm0, %v1095_v47, 0.0  ;;  %v1119_v50 = vsel %vm113_vm0, %v1096_v30, 0.0 }
 0x817   :  { %v1118_v32 = vadd.f32 %v1117_v49, %v1116_v46 }
 0x818   :  { %v1051_v52 = vpop.permute.xlu0 %1050  ;;  %v1053_v39 = vpop.permute.xlu1 %1052 }
 0x819   :  { %v1120_v20 = vadd.f32 %v1119_v50, %v1118_v32  ;;  %v1097_v23 = vsel %vm792_vm1, %v4123_v51, %v1051_v52  ;;  %v1098_v55 = vsel %vm792_vm1, %v4125_v37, %v1053_v39 }
 0x81a   :  { %v1121_v56 = vsel %vm113_vm0, %v1097_v23, 0.0  ;;  %v1123_v57 = vsel %vm113_vm0, %v1098_v55, 0.0 }
 0x81b   :  { %v1122_v41 = vadd.f32 %v1121_v56, %v1120_v20 }
 0x81c   :  { %v1055_v58 = vpop.permute.xlu0 %1054  ;;  %v1057_v59 = vpop.permute.xlu1 %1056 }
 0x81d   :  { %v1124_v61 = vadd.f32 %v1123_v57, %v1122_v41  ;;  %v1099_v33 = vsel %vm792_vm1, %v4133_v53, %v1055_v58  ;;  %v1100_v34 = vsel %vm792_vm1, %v4135_v54, %v1057_v59 }
 0x81e   :  { %v1125_v62 = vsel %vm113_vm0, %v1099_v33, 0.0  ;;  %v1127_v40 = vsel %vm113_vm0, %v1100_v34, 0.0 }
 0x81f   :  { %v1126_v38 = vadd.f32 %v1125_v62, %v1124_v61  ;;  %v3591_v61 = vld [vmem:[%s5727_s10 + $0x8] sm:$0xff]  }
 0x820   :  { %v1059_v3 = vpop.permute.xlu0 %1058  ;;  %v1061_v4 = vpop.permute.xlu1 %1060  ;;  %3475 = vmatpush3.bf16.msra.mxu1 %v3591_v61 }
 0x821   :  { %v1128_v5 = vadd.f32 %v1127_v40, %v1126_v38  ;;  %v1101_v6 = vsel %vm792_vm1, %v4149_v28, %v1059_v3  ;;  %v1102_v7 = vsel %vm792_vm1, %v4147_v26, %v1061_v4  ;;  %3476 = vmatprep.subr.bf16.mxu1 %v3607_v11  ;;  %v3592_v40 = vld [vmem:[%s5727_s10] sm:$0xff]  }
 0x822   :  { %v1129_v44 = vsel %vm113_vm0, %v1101_v6, 0.0  ;;  %v1131_v9 = vsel %vm113_vm0, %v1102_v7, 0.0  ;;  %v1158_v6 = vld [vmem:[%s5728_s8] sm:$0x1]  ;;  %s3611_s8 = smov 112  }
 0x823   :  { %v1130_v8 = vadd.f32 %v1129_v44, %v1128_v5 }
 0x824   :  { %v1063_v13 = vpop.permute.xlu0 %1062  ;;  %v1065_v14 = vpop.permute.xlu1 %1064  ;;  %3477 = vmatpush3.bf16.msra.mxu1 %v3592_v40 }
 0x825   :  { %v1132_v15 = vadd.f32 %v1131_v9, %v1130_v8  ;;  %v1103_v16 = vsel %vm792_vm1, %v4159_v60, %v1063_v13  ;;  %v1104_v18 = vsel %vm792_vm1, %v4157_v1, %v1065_v14  ;;  %v1180_v8 = vld [vmem:[%s5729_s9] sm:$0x1]  ;;  %s3612_s9 = smov 16  }
 0x826   :  { %v1133_v19 = vsel %vm113_vm0, %v1103_v16, 0.0  ;;  %v1135_v22 = vsel %vm113_vm0, %v1104_v18, 0.0 }
 0x827   :  { %v1134_v21 = vadd.f32 %v1133_v19, %v1132_v15 }
 0x828   :  { %v1067_v27 = vpop.permute.xlu0 %1066  ;;  %v1069_v29 = vpop.permute.xlu1 %1068 }
 0x829   :  { %v1136_v31 = vadd.f32 %v1135_v22, %v1134_v21  ;;  %v1105_v42 = vsel %vm792_vm1, %v4168_v63, %v1067_v27  ;;  %v1106_v43 = vsel %vm792_vm1, %v4172_v0, %v1069_v29 }
 0x82a   :  { %v1137_v46 = vsel %vm113_vm0, %v1105_v42, 0.0  ;;  %v1139_v30 = vsel %vm113_vm0, %v1106_v43, 0.0 }
 0x82b   :  { %v1138_v47 = vadd.f32 %v1137_v46, %v1136_v31 }
 0x82c   :  { %v1071_v49 = vpop.permute.xlu0 %1070 }
 0x82d   :  { %v1140_v32 = vadd.f32 %v1139_v30, %v1138_v47  ;;  %v1107_v50 = vsel %vm792_vm1, %v4180_v2, %v1071_v49 }
 0x82e   :  { %v1141_v52 = vsel %vm113_vm0, %v1107_v50, 0.0  ;;  %vm1418_vm0 = vcmask 130048  }
 0x82f   :  { %v1142_v39 = vadd.f32 %v1141_v52, %v1140_v32 }
 0x831   :  { %v1143_v20 = vrot.slane %v1142_v39, 4 }
 0x833   :  { %v1144_v23 = vadd.f32 %v1143_v20, %v1142_v39 }
 0x835   :  { %v1145_v55 = vrot.slane %v1144_v23, 2 }
 0x837   :  { %v1146_v56 = vadd.f32 %v1145_v55, %v1144_v23 }
 0x839   :  { %v1147_v41 = vrot.slane %v1146_v56, 1 }
 0x83b   :  { %v1148_v57 = vadd.f32 %v1147_v41, %v1146_v56 }
 0x83d   :  { %v1150_v58 = vmul.f32 0.0069444445, %v1148_v57 }
 0x83f   :  { %v1151_v59 = vmul.f32 %v1150_v58, %v1150_v58 }
 0x841   :  { %1153 = vrot.lane.b32.xlu1 %v1151_v59, %s3610_s6 }
 0x8b3   :  { %v1154_v33 = vpop.permute.xlu1 %1153 }
 0x8b4   :  { %v1156_v34 = vsub.f32 %v1150_v58, %v1154_v33 }
 0x8b6   :  { %v1157_v62 = vmax.f32 %v1156_v34, 0.0 }
 0x8b8   :  { %v1159_v38 = vadd.f32 1e-05, %v1157_v62 }
 0x8ba   :  { %3598 = vrsqrt.f32 %v1159_v38 }
 0x8c7   :  { %v3599_v3 = vpop.eup %3598 }
 0x8c8   :  { %v1168_v4 = vrot.slane %v3599_v3, %v3806_v17 }
 0x8ca   :  { %v1175_v5 = vrot.slane %v1168_v4, %v3806_v17 }
 0x8cc   :  { %1176 = vrot.lane.b32.xlu0 %v1175_v5, %s3609_s5 }
 0x93e   :  { %v1177_v7 = vpop.permute.xlu0 %1176 }
 0x93f   :  { %v1179_v44 = vmul.f32 %v1177_v7, %v1158_v6 }
 0x941   :  { %v1181_v9 = vmul.f32 %v1179_v44, %v1150_v58  ;;  %v4257_v13 = vrot.slane %v1179_v44, %v3823_v25 }
 0x943   :  { %v1182_v14 = vsub.f32 %v1180_v8, %v1181_v9  ;;  %v1189_v16 = vmul.f32 %v4257_v13, %v4077_v12  ;;  %v1190_v18 = vmul.f32 %v4257_v13, %v4075_v10  ;;  %v1191_v29 = vmul.f32 %v4257_v13, %v4092_v24 }
 0x944   :  { %v1192_v31 = vmul.f32 %v4257_v13, %v4101_v36  ;;  %v1205_v47 = vmul.f32 %v4257_v13, %v4172_v0  ;;  %v1206_v24 = vmul.f32 %v4257_v13, %v4180_v2  ;;  %v1193_v36 = vmul.f32 %v4257_v13, %v4099_v35 }
 0x945   :  { %v4260_v15 = vrot.slane %v1182_v14, %v3823_v25  ;;  %v1194_v30 = vmul.f32 %v4257_v13, %v4109_v45  ;;  %v1195_v45 = vmul.f32 %v4257_v13, %v4113_v48  ;;  %v1196_v55 = vmul.f32 %v4257_v13, %v4123_v51 }
 0x946   :  { %v1197_v61 = vmul.f32 %v4257_v13, %v4125_v37  ;;  %v1198_v48 = vmul.f32 %v4257_v13, %v4133_v53  ;;  %v1199_v40 = vmul.f32 %v4257_v13, %v4135_v54  ;;  %v1200_v37 = vmul.f32 %v4257_v13, %v4149_v28 }
 0x947   :  { %v1213_v19 = vadd.f32 %v4260_v15, %v1189_v16  ;;  %v1214_v21 = vadd.f32 %v4260_v15, %v1190_v18  ;;  %v1215_v43 = vadd.f32 %v4260_v15, %v1191_v29  ;;  %v1216_v12 = vadd.f32 %v4260_v15, %v1192_v31 }
 0x948   :  { %v1229_v49 = vadd.f32 %v4260_v15, %v1205_v47  ;;  %v1230_v32 = vadd.f32 %v4260_v15, %v1206_v24  ;;  %v1217_v52 = vadd.f32 %v4260_v15, %v1193_v36  ;;  %v1218_v39 = vadd.f32 %v4260_v15, %v1194_v30 }
 0x949   :  { %v1231_v22 = vmax.f32 %v1213_v19, 0.0  ;;  %v1232_v27 = vmax.f32 %v1214_v21, 0.0  ;;  %v1233_v10 = vmax.f32 %v1215_v43, 0.0  ;;  %v1234_v46 = vmax.f32 %v1216_v12, 0.0 }
 0x94a   :  { %v1247_v20 = vmax.f32 %v1229_v49, 0.0  ;;  %v1248_v0 = vmax.f32 %v1230_v32, 0.0  ;;  %v1235_v2 = vmax.f32 %v1217_v52, 0.0  ;;  %v1236_v23 = vmax.f32 %v1218_v39, 0.0 }
 0x94b   :  { %v1249_v42 = vpack.c.bf16 %v1232_v27, %v1231_v22  ;;  %v1250_v50 = vpack.c.bf16 %v1234_v46, %v1233_v10  ;;  %v1219_v41 = vadd.f32 %v4260_v15, %v1195_v45  ;;  %v1220_v57 = vadd.f32 %v4260_v15, %v1196_v55 }
 0x94c   :  { %v1257_v35 = vpack.c.bf16 %v1248_v0, %v1247_v20  ;;  %v1251_v56 = vpack.c.bf16 %v1236_v23, %v1235_v2  ;;  %v1221_v51 = vadd.f32 %v4260_v15, %v1197_v61  ;;  %v1222_v34 = vadd.f32 %v4260_v15, %v1198_v48 }
 0x94d   :  { %3479 = vmatmul.mubr.msk.bf16.vlgmr.msra.gmra.mxu1 %vm792_vm1, %v1249_v42  ;;  %v1237_v58 = vmax.f32 %v1219_v41, 0.0  ;;  %v1238_v59 = vmax.f32 %v1220_v57, 0.0  ;;  %v1223_v53 = vadd.f32 %v4260_v15, %v1199_v40  ;;  %v1224_v4 = vadd.f32 %v4260_v15, %v1200_v37 }
 0x94e   :  { %3482 = vmatprep.mubr.msk.bf16.mxu1 %vm3608_vm14, %v3607_v11  ;;  %v1239_v62 = vmax.f32 %v1221_v51, 0.0  ;;  %v1240_v38 = vmax.f32 %v1222_v34, 0.0  ;;  %v1201_v7 = vmul.f32 %v4257_v13, %v4147_v26  ;;  %v1202_v54 = vmul.f32 %v4257_v13, %v4159_v60 }
 0x94f   :  { %v1252_v33 = vpack.c.bf16 %v1238_v59, %v1237_v58  ;;  %v1241_v5 = vmax.f32 %v1223_v53, 0.0  ;;  %v1242_v6 = vmax.f32 %v1224_v4, 0.0  ;;  %v1203_v16 = vmul.f32 %v4257_v13, %v4157_v1 }
 0x950   :  { %v1253_v3 = vpack.c.bf16 %v1240_v38, %v1239_v62  ;;  %v1225_v28 = vadd.f32 %v4260_v15, %v1201_v7  ;;  %v1226_v8 = vadd.f32 %v4260_v15, %v1202_v54  ;;  %v1204_v26 = vmul.f32 %v4257_v13, %v4168_v63 }
 0x951   :  { %v1254_v44 = vpack.c.bf16 %v1242_v6, %v1241_v5  ;;  %v1227_v60 = vadd.f32 %v4260_v15, %v1203_v16 }
 0x952   :  { %v1243_v9 = vmax.f32 %v1225_v28, 0.0  ;;  %v1244_v14 = vmax.f32 %v1226_v8, 0.0  ;;  %v1228_v19 = vadd.f32 %v4260_v15, %v1204_v26 }
 0x953   :  { %v1245_v21 = vmax.f32 %v1227_v60, 0.0 }
 0x954   :  { %v1255_v18 = vpack.c.bf16 %v1244_v14, %v1243_v9  ;;  %v1246_v22 = vmax.f32 %v1228_v19, 0.0 }
 0x955   :  { %3483 = vmatmul.mubr.msk.bf16.gmra.mxu1 %vm792_vm1, %v1250_v50 }
 0x956   :  { %3486 = vmatprep.mubr.msk.bf16.mxu1 %vm3608_vm14, %v3607_v11  ;;  %v1256_v27 = vpack.c.bf16 %v1246_v22, %v1245_v21 }
 0x95d   :  { %3487 = vmatmul.mubr.msk.bf16.gmra.mxu1 %vm792_vm1, %v1251_v56 }
 0x95e   :  { %3490 = vmatprep.mubr.msk.bf16.mxu1 %vm3608_vm14, %v3607_v11 }
 0x965   :  { %3491 = vmatmul.mubr.msk.bf16.gmra.mxu1 %vm792_vm1, %v1252_v33 }
 0x966   :  { %3494 = vmatprep.mubr.msk.bf16.mxu1 %vm3608_vm14, %v3607_v11 }
 0x96d   :  { %3495 = vmatmul.mubr.msk.bf16.gmra.mxu1 %vm792_vm1, %v1253_v3 }
 0x96e   :  { %3498 = vmatprep.mubr.msk.bf16.mxu1 %vm3608_vm14, %v3607_v11 }
 0x975   :  { %3499 = vmatmul.mubr.msk.bf16.gmra.mxu1 %vm792_vm1, %v1254_v44 }
 0x976   :  { %3502 = vmatprep.mubr.msk.bf16.mxu1 %vm3608_vm14, %v3607_v11 }
 0x97d   :  { %3503 = vmatmul.mubr.msk.bf16.gmra.mxu1 %vm792_vm1, %v1255_v18 }
 0x97e   :  { %3506 = vmatprep.mubr.msk.bf16.mxu1 %vm3608_vm14, %v3607_v11 }
 0x985   :  { %3507 = vmatmul.mubr.msk.bf16.gmra.mxu1 %vm792_vm1, %v1256_v27 }
 0x986   :  { %3510 = vmatprep.mubr.msk.bf16.mxu1 %vm3608_vm14, %v3607_v11  ;;  %vm1463_vm14 = vcmask 130050  }
 0x98d   :  { %3511 = vmatmul.mubr.msk.bf16.gmra.mxu1 %vm792_vm1, %v1257_v35 }
 0xa0d   :  { %v4341_v1 = vpop.f32.mrf.mxu1 }
 0xa0e   :  { %v1728_v63 = vrot.slane %v4341_v1, 3  ;;  %1409 = vrot.lane.b32.xlu0 %v4341_v1, %s3611_s8 }
 0xa0f   :  { %v3480_v13 = vpop.f32.mrf.mxu1 }
 0xa10   :  { %1731 = vrot.lane.b32.xlu1 %v1728_v63, %s3610_s6 }
 0xa11   :  { %v4347_v15 = vpop.f32.mrf.mxu1 }
 0xa12   :  { %v1729_v29 = vrot.slane %v4347_v15, 3 }
 0xa13   :  { %v3481_v31 = vpop.f32.mrf.mxu1 }
 0xa14   :  { %1411 = vrot.lane.b32.xlu1 %v4347_v15, %s3611_s8  ;;  %1756 = vrot.lane.b32.xlu0 %v1729_v29, %s3610_s6  ;;  %v1730_v43 = vsel %vm929_vm15, %v1728_v63, %v1729_v29 }
 0xa15   :  { %v4353_v11 = vpop.f32.mrf.mxu1 }
 0xa16   :  { %v1754_v12 = vrot.slane %v4353_v11, 3  ;;  %v1425_v30 = vrot.slane %v4353_v11, 2 }
 0xa17   :  { %v3484_v42 = vpop.f32.mrf.mxu1 }
 0xa18   :  { %1733 = vrot.lane.b32.xlu1 %v1730_v43, %s3610_s6  ;;  %1413 = vrot.lane.b32.xlu0 %v4353_v11, %s3611_s8  ;;  %v1755_v24 = vsel %vm929_vm15, %v1729_v29, %v1754_v12  ;;  %vm1510_vm15 = vcmask 128000  }
 0xa19   :  { %v4360_v10 = vpop.f32.mrf.mxu1 }
 0xa1a   :  { %v1426_v46 = vrot.slane %v4360_v10, 2 }
 0xa1b   :  { %v3485_v47 = vpop.f32.mrf.mxu1 }
 0xa1c   :  { %1758 = vrot.lane.b32.xlu0 %v1755_v24, %s3610_s6  ;;  %1457 = vrot.lane.b32.xlu1 %v4360_v10, %s3611_s8  ;;  %v1427_v50 = vsel %vm458_vm8, %v1425_v30, %v1426_v46 }
 0xa1d   :  { %v4367_v36 = vpop.f32.mrf.mxu1 }
 0xa1e   :  { %v1428_v49 = vrot.slane %v4367_v36, 2 }
 0xa1f   :  { %v3488_v32 = vpop.f32.mrf.mxu1 }
 0xa20   :  { %1430 = vrot.lane.b32.xlu1 %v1427_v50, %s3610_s6  ;;  %v1429_v52 = vsel %vm458_vm8, %v1426_v46, %v1428_v49 }
 0xa21   :  { %1432 = vrot.lane.b32.xlu0 %v1429_v52, %s3610_s6  ;;  %v4375_v39 = vpop.f32.mrf.mxu1 }
 0xa22   :  { %v1470_v20 = vrot.slane %v4375_v39, 2 }
 0xa23   :  { %v3489_v0 = vpop.f32.mrf.mxu1 }
 0xa24   :  { %1434 = vrot.lane.b32.xlu1 %v1428_v49, %s3610_s6  ;;  %v1471_v35 = vsel %vm458_vm8, %v1428_v49, %v1470_v20 }
 0xa25   :  { %1474 = vrot.lane.b32.xlu0 %v1471_v35, %s3610_s6  ;;  %v4381_v2 = vpop.f32.mrf.mxu1 }
 0xa26   :  { %v1472_v23 = vrot.slane %v4381_v2, 2 }
 0xa27   :  { %v3492_v45 = vpop.f32.mrf.mxu1 }
 0xa28   :  { %v1473_v55 = vsel %vm458_vm8, %v1470_v20, %v1472_v23 }
 0xa29   :  { %1478 = vrot.lane.b32.xlu0 %v1472_v23, %s3610_s6  ;;  %1476 = vrot.lane.b32.xlu1 %v1473_v55, %s3610_s6  ;;  %v4387_v56 = vpop.f32.mrf.mxu1 }
 0xa2a   :  { %v1514_v57 = vrot.slane %v4387_v56, 2 }
 0xa2b   :  { %v3493_v41 = vpop.f32.mrf.mxu1 }
 0xa2c   :  { %v1515_v48 = vsel %vm458_vm8, %v1472_v23, %v1514_v57 }
 0xa2d   :  { %1503 = vrot.lane.b32.xlu0 %v4381_v2, %s3611_s8  ;;  %1459 = vrot.lane.b32.xlu1 %v4367_v36, %s3611_s8  ;;  %v4394_v58 = vpop.f32.mrf.mxu1 }
 0xa2e   :  { %v1516_v59 = vrot.slane %v4394_v58, 2 }
 0xa2f   :  { %v3496_v61 = vpop.f32.mrf.mxu1 }
 0xa30   :  { %v1517_v33 = vsel %vm458_vm8, %v1514_v57, %v1516_v59 }
 0xa31   :  { %1518 = vrot.lane.b32.xlu1 %v1515_v48, %s3610_s6  ;;  %1520 = vrot.lane.b32.xlu0 %v1517_v33, %s3610_s6  ;;  %v4401_v51 = vpop.f32.mrf.mxu1 }
 0xa32   :  { %v1558_v38 = vrot.slane %v4401_v51, 2 }
 0xa33   :  { %v3497_v34 = vpop.f32.mrf.mxu1 }
 0xa35   :  { %1522 = vrot.lane.b32.xlu1 %v1516_v59, %s3610_s6  ;;  %1545 = vrot.lane.b32.xlu0 %v4387_v56, %s3611_s8  ;;  %v4406_v62 = vpop.f32.mrf.mxu1 }
 0xa36   :  { %v1559_v37 = vrot.slane %v4406_v62, 2 }
 0xa37   :  { %v3500_v40 = vpop.f32.mrf.mxu1 }
 0xa38   :  { %v1560_v5 = vsel %vm458_vm8, %v1558_v38, %v1559_v37 }
 0xa39   :  { %1501 = vrot.lane.b32.xlu1 %v4375_v39, %s3611_s8  ;;  %1563 = vrot.lane.b32.xlu0 %v1558_v38, %s3610_s6  ;;  %v4413_v3 = vpop.f32.mrf.mxu1 }
 0xa3a   :  { %v1561_v53 = vrot.slane %v4413_v3, 2 }
 0xa3b   :  { %v3501_v4 = vpop.f32.mrf.mxu1 }
 0xa3c   :  { %v1562_v6 = vsel %vm458_vm8, %v1559_v37, %v1561_v53 }
 0xa3d   :  { %1565 = vrot.lane.b32.xlu1 %v1560_v5, %s3610_s6  ;;  %1567 = vrot.lane.b32.xlu0 %v1562_v6, %s3610_s6  ;;  %v4420_v7 = vpop.f32.mrf.mxu1 }
 0xa3e   :  { %v1604_v44 = vrot.slane %v4420_v7, 2 }
 0xa3f   :  { %v3504_v54 = vpop.f32.mrf.mxu1 }
 0xa40   :  { %v1605_v14 = vsel %vm458_vm8, %v1561_v53, %v1604_v44 }
 0xa41   :  { %1547 = vrot.lane.b32.xlu1 %v4394_v58, %s3611_s8  ;;  %v4425_v28 = vpop.f32.mrf.mxu1 }
 0xa42   :  { %v1606_v8 = vrot.slane %v4425_v28, 2 }
 0xa43   :  { %v3505_v9 = vpop.f32.mrf.mxu1 }
 0xa44   :  { %v1607_v16 = vsel %vm458_vm8, %v1604_v44, %v1606_v8 }
 0xa45   :  { %1608 = vrot.lane.b32.xlu1 %v1605_v14, %s3610_s6  ;;  %1610 = vrot.lane.b32.xlu0 %v1607_v16, %s3610_s6  ;;  %v4432_v26 = vpop.f32.mrf.mxu1 }
 0xa46   :  { %v1646_v18 = vrot.slane %v4432_v26, 2 }
 0xa47   :  { %v3508_v60 = vpop.f32.mrf.mxu1 }
 0xa48   :  { %v1647_v19 = vsel %vm458_vm8, %v1606_v8, %v1646_v18 }
 0xa49   :  { %1612 = vrot.lane.b32.xlu1 %v1606_v8, %s3610_s6  ;;  %1650 = vrot.lane.b32.xlu0 %v1647_v19, %s3610_s6  ;;  %v4438_v21 = vpop.f32.mrf.mxu1 }
 0xa4a   :  { %v1648_v22 = vrot.slane %v4438_v21, 2 }
 0xa4b   :  { %v3509_v27 = vpop.f32.mrf.mxu1 }
 0xa4c   :  { %v1649_v63 = vsel %vm458_vm8, %v1646_v18, %v1648_v22 }
 0xa4d   :  { %1654 = vrot.lane.b32.xlu0 %v1648_v22, %s3610_s6  ;;  %1652 = vrot.lane.b32.xlu1 %v1649_v63, %s3610_s6  ;;  %v4444_v13 = vpop.f32.mrf.mxu1 }
 0xa4e   :  { %v1688_v31 = vrot.slane %v4444_v13, 2 }
 0xa4f   :  { %v3512_v29 = vpop.f32.mrf.mxu1 }
 0xa50   :  { %v1689_v46 = vsel %vm458_vm8, %v1648_v22, %v1688_v31 }
 0xa51   :  { %1592 = vrot.lane.b32.xlu0 %v4406_v62, %s3611_s8  ;;  %1590 = vrot.lane.b32.xlu1 %v4401_v51, %s3611_s8  ;;  %v4451_v42 = vpop.f32.mrf.mxu1 }
 0xa52   :  { %v1690_v43 = vrot.slane %v4451_v42, 2 }
 0xa53   :  { %v3513_v12 = vpop.f32.mrf.mxu1 }
 0xa54   :  { %v1691_v47 = vsel %vm458_vm8, %v1688_v31, %v1690_v43 }
 0xa55   :  { %1692 = vrot.lane.b32.xlu1 %v1689_v46, %s3610_s6  ;;  %1694 = vrot.lane.b32.xlu0 %v1691_v47, %s3610_s6 }
 0xa59   :  { %1696 = vrot.lane.b32.xlu1 %v1690_v43, %s3610_s6 }
 0xa80   :  { %v1410_v24 = vpop.permute.xlu0 %1409 }
 0xa81   :  { %1419 = vst.msk [vmem:[#allocation5] sm:$0xff] %vm1418_vm0, %v1410_v24 }
 0xa82   :  { %v4460_v30 = vpop.permute.xlu1 %1731 }
 0xa83   :  { %v1737_v19 = vadd.f32 %v4460_v30, %v4438_v21 }
 0xa86   :  { %v1412_v49 = vpop.permute.xlu1 %1411  ;;  %v4462_v32 = vpop.permute.xlu0 %1756 }
 0xa87   :  { %1420 = vst.msk [vmem:[#allocation5 + $0x8] sm:$0xff] %vm1418_vm0, %v1412_v49 }
 0xa8a   :  { %v4465_v50 = vpop.permute.xlu1 %1733  ;;  %v1414_v52 = vpop.permute.xlu0 %1413 }
 0xa8b   :  { %1422 = vst.msk [vmem:[#allocation5 + $0x10] sm:$0x3] %vm1421_vm13, %v1414_v52 }
 0xa8c   :  { %1464 = vst.msk [vmem:[#allocation5 + $0x22] sm:$0xfc] %vm1463_vm14, %v1414_v52 }
 0xa8e   :  { %v4469_v20 = vpop.permute.xlu0 %1758  ;;  %v1458_v0 = vpop.permute.xlu1 %1457  ;;  %v4556_v52 = vld [vmem:[#allocation5 + $0x8] sm:$0xff] }
 0xa8f   :  { %1465 = vst.msk [vmem:[#allocation5 + $0x2a] sm:$0xff] %vm1418_vm0, %v1458_v0  ;;  %v1763_v30 = vadd.f32 %v4469_v20, %v4451_v42 }
 0xa92   :  { %v1431_v35 = vpop.permute.xlu1 %1430 }
 0xa93   :  { %v1439_v23 = vadd.f32 %v1431_v35, %v4341_v1  ;;  %v1433_v45 = vpop.permute.xlu0 %1432 }
 0xa94   :  { %v1440_v59 = vadd.f32 %v1433_v45, %v4347_v15 }
 0xa95   :  { %1445 = vrot.lane.b32.xlu1 %v1439_v23, %s3609_s5 }
 0xa96   :  { %v1435_v55 = vpop.permute.xlu1 %1434 }
 0xa97   :  { %v1441_v41 = vadd.f32 %v1435_v55, %v4353_v11  ;;  %v1475_v57 = vpop.permute.xlu0 %1474 }
 0xa98   :  { %v1483_v1 = vadd.f32 %v1475_v57, %v4353_v11 }
 0xa99   :  { %1594 = vrot.lane.b32.xlu1 %v4413_v3, %s3611_s8  ;;  %1449 = vrot.lane.b32.xlu0 %v1441_v41, %s3609_s5 }
 0xa9b   :  { %v1479_v61 = vpop.permute.xlu0 %1478  ;;  %v1477_v48 = vpop.permute.xlu1 %1476 }
 0xa9c   :  { %v1484_v33 = vadd.f32 %v1477_v48, %v4360_v10  ;;  %v1485_v15 = vadd.f32 %v1479_v61, %v4367_v36 }
 0xa9d   :  { %1447 = vrot.lane.b32.xlu0 %v1440_v59, %s3609_s5 }
 0xa9e   :  { %1491 = vrot.lane.b32.xlu1 %v1484_v33, %s3609_s5 }
 0xa9f   :  { %v1504_v34 = vpop.permute.xlu0 %1503  ;;  %v1460_v38 = vpop.permute.xlu1 %1459 }
 0xaa0   :  { %1511 = vst.msk [vmem:[#allocation5 + $0x54] sm:$0x3f] %vm1510_vm15, %v1504_v34 }
 0xaa1   :  { %1552 = vst.msk [vmem:[#allocation5 + $0x66] sm:$0xc0] %vm1551_vm4, %v1504_v34  ;;  %1489 = vrot.lane.b32.xlu0 %v1483_v1, %s3609_s5  ;;  %v4586_v1 = vld [vmem:[#allocation5 + $0x28] sm:$0xff] }
 0xaa2   :  { %1467 = vst.msk [vmem:[#allocation5 + $0x32] sm:$0xf] %vm1466_vm5, %v1460_v38  ;;  %1635 = vrot.lane.b32.xlu1 %v4420_v7, %s3611_s8 }
 0xaa3   :  { %1508 = vst.msk [vmem:[#allocation5 + $0x44] sm:$0xf0] %vm1507_vm6, %v1460_v38  ;;  %v1519_v10 = vpop.permute.xlu1 %1518  ;;  %v1521_v40 = vpop.permute.xlu0 %1520 }
 0xaa4   :  { %v1527_v11 = vadd.f32 %v1519_v10, %v4367_v36  ;;  %v1528_v36 = vadd.f32 %v1521_v40, %v4375_v39  ;;  %v1821_v10 = vmul.f32 %v4586_v1, %v4586_v1 }
 0xaa5   :  { %1493 = vrot.lane.b32.xlu0 %v1485_v15, %s3609_s5 }
 0xaa6   :  { %1533 = vrot.lane.b32.xlu1 %v1527_v11, %s3609_s5 }
 0xaa7   :  { %v1523_v37 = vpop.permute.xlu1 %1522  ;;  %v1546_v53 = vpop.permute.xlu0 %1545 }
 0xaa8   :  { %v1529_v4 = vadd.f32 %v1523_v37, %v4381_v2  ;;  %1553 = vst.msk [vmem:[#allocation5 + $0x6e] sm:$0xff] %vm1418_vm0, %v1546_v53 }
 0xaa9   :  { %1637 = vrot.lane.b32.xlu0 %v4425_v28, %s3611_s8 }
 0xaaa   :  { %1537 = vrot.lane.b32.xlu1 %v1529_v4, %s3609_s5 }
 0xaab   :  { %v1502_v5 = vpop.permute.xlu1 %1501  ;;  %v1564_v6 = vpop.permute.xlu0 %1563 }
 0xaac   :  { %1509 = vst.msk [vmem:[#allocation5 + $0x4c] sm:$0xff] %vm1418_vm0, %v1502_v5  ;;  %v1572_v8 = vadd.f32 %v1564_v6, %v4381_v2 }
 0xaad   :  { %1677 = vrot.lane.b32.xlu0 %v4432_v26, %s3611_s8 }
 0xaae   :  { %1679 = vrot.lane.b32.xlu1 %v4438_v21, %s3611_s8 }
 0xaaf   :  { %v1566_v54 = vpop.permute.xlu1 %1565  ;;  %v1568_v9 = vpop.permute.xlu0 %1567 }
 0xab0   :  { %v1573_v44 = vadd.f32 %v1566_v54, %v4387_v56  ;;  %v1574_v2 = vadd.f32 %v1568_v9, %v4394_v58 }
 0xab1   :  { %1535 = vrot.lane.b32.xlu0 %v1528_v36, %s3609_s5 }
 0xab2   :  { %1580 = vrot.lane.b32.xlu1 %v1573_v44, %s3609_s5 }
 0xab3   :  { %v1548_v14 = vpop.permute.xlu1 %1547  ;;  %v4612_v36 = vld [vmem:[#allocation5 + $0x48] sm:$0xff]  ;;  %v4614_v54 = vld [vmem:[#allocation5 + $0x50] sm:$0xff] }
 0xab4   :  { %1554 = vst.msk [vmem:[#allocation5 + $0x76] sm:$0xff] %vm1418_vm0, %v1548_v14  ;;  %v1825_v9 = vmul.f32 %v4612_v36, %v4612_v36  ;;  %v1826_v14 = vmul.f32 %v4614_v54, %v4614_v54 }
 0xab5   :  { %1578 = vrot.lane.b32.xlu0 %v1572_v8, %s3609_s5 }
 0xab6   :  { %1719 = vrot.lane.b32.xlu1 %v4444_v13, %s3611_s8 }
 0xab7   :  { %v1609_v16 = vpop.permute.xlu1 %1608  ;;  %v1611_v39 = vpop.permute.xlu0 %1610 }
 0xab8   :  { %v1618_v18 = vadd.f32 %v1611_v39, %v4406_v62  ;;  %v1617_v22 = vadd.f32 %v1609_v16, %v4401_v51  ;;  %v1738_v51 = vadd.f32 %v4465_v50, %v4444_v13 }
 0xab9   :  { %1721 = vrot.lane.b32.xlu0 %v4451_v42, %s3611_s8 }
 0xaba   :  { %1625 = vrot.lane.b32.xlu1 %v1618_v18, %s3609_s5 }
 0xabb   :  { %v1613_v56 = vpop.permute.xlu1 %1612  ;;  %v1651_v60 = vpop.permute.xlu0 %1650 }
 0xabc   :  { %v1659_v63 = vadd.f32 %v1651_v60, %v4413_v3  ;;  %v1619_v58 = vadd.f32 %v1613_v56, %v4413_v3 }
 0xabd   :  { %1582 = vrot.lane.b32.xlu0 %v1574_v2, %s3609_s5 }
 0xabe   :  { %1741 = vrot.lane.b32.xlu1 %v1737_v19, %s3609_s5 }
 0xabf   :  { %v1655_v27 = vpop.permute.xlu0 %1654  ;;  %v1653_v62 = vpop.permute.xlu1 %1652 }
 0xac0   :  { %v1661_v43 = vadd.f32 %v1655_v27, %v4425_v28  ;;  %v1660_v47 = vadd.f32 %v1653_v62, %v4420_v7  ;;  %v4638_v27 = vld [vmem:[#allocation5 + $0x70] sm:$0xff] }
 0xac1   :  { %1623 = vrot.lane.b32.xlu0 %v1617_v22, %s3609_s5 }
 0xac2   :  { %1665 = vrot.lane.b32.xlu1 %v1659_v63, %s3609_s5 }
 0xac3   :  { %v1593_v29 = vpop.permute.xlu0 %1592  ;;  %v1591_v31 = vpop.permute.xlu1 %1590 }
 0xac4   :  { %1600 = vst.msk [vmem:[#allocation5 + $0x98] sm:$0xff] %vm1418_vm0, %v1593_v29  ;;  %1599 = vst.msk [vmem:[#allocation5 + $0x90] sm:$0xff] %vm1418_vm0, %v1591_v31  ;;  %v1830_v29 = vmul.f32 %v4638_v27, %v4638_v27 }
 0xac5   :  { %1627 = vrot.lane.b32.xlu0 %v1619_v58, %s3609_s5 }
 0xac6   :  { %1669 = vrot.lane.b32.xlu1 %v1661_v43, %s3609_s5 }
 0xac7   :  { %v1695_v12 = vpop.permute.xlu0 %1694  ;;  %v1693_v3 = vpop.permute.xlu1 %1692 }
 0xac8   :  { %v1702_v46 = vadd.f32 %v1695_v12, %v4432_v26  ;;  %v1701_v24 = vadd.f32 %v1693_v3, %v4425_v28  ;;  %v4545_v26 = vld [vmem:[#allocation5] sm:$0xff]  ;;  %v1762_v28 = vadd.f32 %v4462_v32, %v4444_v13 }
 0xac9   :  { %1743 = vrot.lane.b32.xlu0 %v1738_v51, %s3609_s5  ;;  %v1816_v7 = vmul.f32 %v4545_v26, %v4545_v26 }
 0xaca   :  { %1709 = vrot.lane.b32.xlu1 %v1702_v46, %s3609_s5 }
 0xacb   :  { %v1697_v49 = vpop.permute.xlu1 %1696 }
 0xacc   :  { %v1703_v50 = vadd.f32 %v1697_v49, %v4438_v21  ;;  %v1817_v21 = vmul.f32 %v4556_v52, %v4556_v52 }
 0xacd   :  { %1667 = vrot.lane.b32.xlu0 %v1660_v47, %s3609_s5 }
 0xace   :  { %1749 = vrot.lane.b32.xlu1 %v4444_v13, %s3609_s5 }
 0xad1   :  { %1707 = vrot.lane.b32.xlu0 %v1701_v24, %s3609_s5  ;;  %v4662_v24 = vld [vmem:[#allocation5 + $0x90] sm:$0xff] }
 0xad2   :  { %1768 = vrot.lane.b32.xlu1 %v1763_v30, %s3609_s5 }
 0xad5   :  { %1711 = vrot.lane.b32.xlu0 %v1703_v50, %s3609_s5 }
 0xad6   :  { %1888 = vrot.lane.b32.xlu1 %v1816_v7, %s3612_s9  ;;  %v1834_v7 = vmul.f32 %v4662_v24, %v4662_v24 }
 0xad9   :  { %1766 = vrot.lane.b32.xlu0 %v1762_v28, %s3609_s5 }
 0xadd   :  { %1776 = vrot.lane.b32.xlu0 %v4451_v42, %s3609_s5 }
 0xae1   :  { %1890 = vrot.lane.b32.xlu0 %v1817_v21, %s3612_s9  ;;  %v4674_v21 = vld [vmem:[#allocation5 + $0x98] sm:$0xff] }
 0xb07   :  { %v1446_v20 = vpop.permute.xlu1 %1445 }
 0xb08   :  { %1454 = vst.msk [vmem:[#allocation5 + $0x12] sm:$0xff] %vm1418_vm0, %v1446_v20 }
 0xb0b   :  { %v1595_v0 = vpop.permute.xlu1 %1594  ;;  %v1450_v35 = vpop.permute.xlu0 %1449 }
 0xb0c   :  { %1601 = vst.msk [vmem:[#allocation5 + $0xa0] sm:$0x3] %vm1421_vm13, %v1595_v0  ;;  %1456 = vst.msk [vmem:[#allocation5 + $0x22] sm:$0x3] %vm1421_vm13, %v1450_v35 }
 0xb0d   :  { %1641 = vst.msk [vmem:[#allocation5 + $0xb2] sm:$0xfc] %vm1463_vm14, %v1595_v0 }
 0xb0f   :  { %v1448_v13 = vpop.permute.xlu0 %1447  ;;  %v4567_v32 = vld [vmem:[#allocation5 + $0x10] sm:$0xff] }
 0xb10   :  { %1455 = vst.msk [vmem:[#allocation5 + $0x1a] sm:$0xff] %vm1418_vm0, %v1448_v13  ;;  %v1492_v42 = vpop.permute.xlu1 %1491  ;;  %v1818_v23 = vmul.f32 %v4567_v32, %v4567_v32  ;;  %v1835_v13 = vmul.f32 %v4674_v21, %v4674_v21 }
 0xb11   :  { %1499 = vst.msk [vmem:[#allocation5 + $0x3c] sm:$0xff] %vm1418_vm0, %v1492_v42 }
 0xb12   :  { %1892 = vrot.lane.b32.xlu1 %v1818_v23, %s3612_s9 }
 0xb13   :  { %v1490_v45 = vpop.permute.xlu0 %1489 }
 0xb14   :  { %1498 = vst.msk [vmem:[#allocation5 + $0x34] sm:$0xfc] %vm1463_vm14, %v1490_v45  ;;  %v1636_v55 = vpop.permute.xlu1 %1635 }
 0xb15   :  { %1642 = vst.msk [vmem:[#allocation5 + $0xba] sm:$0xff] %vm1418_vm0, %v1636_v55 }
 0xb17   :  { %v1494_v41 = vpop.permute.xlu0 %1493  ;;  %v4576_v57 = vld [vmem:[#allocation5 + $0x20] sm:$0xff]  ;;  %v4578_v59 = vld [vmem:[#allocation5 + $0x18] sm:$0xff] }
 0xb18   :  { %1500 = vst.msk [vmem:[#allocation5 + $0x44] sm:$0xf] %vm1466_vm5, %v1494_v41  ;;  %v1534_v61 = vpop.permute.xlu1 %1533  ;;  %v1820_v48 = vmul.f32 %v4576_v57, %v4576_v57  ;;  %v1819_v33 = vmul.f32 %v4578_v59, %v4578_v59 }
 0xb19   :  { %1542 = vst.msk [vmem:[#allocation5 + $0x56] sm:$0xf0] %vm1507_vm6, %v1534_v61 }
 0xb1a   :  { %1896 = vrot.lane.b32.xlu1 %v1820_v48, %s3612_s9  ;;  %1894 = vrot.lane.b32.xlu0 %v1819_v33, %s3612_s9 }
 0xb1b   :  { %v1638_v34 = vpop.permute.xlu0 %1637  ;;  %v4590_v38 = vld [vmem:[#allocation5 + $0x30] sm:$0xff]  ;;  %v4599_v11 = vld [vmem:[#allocation5 + $0x38] sm:$0xff] }
 0xb1c   :  { %1643 = vst.msk [vmem:[#allocation5 + $0xc2] sm:$0xf] %vm1466_vm5, %v1638_v34  ;;  %v1538_v15 = vpop.permute.xlu1 %1537  ;;  %v1822_v40 = vmul.f32 %v4590_v38, %v4590_v38  ;;  %v1823_v5 = vmul.f32 %v4599_v11, %v4599_v11  ;;  %v4697_v33 = vld [vmem:[#allocation5 + $0xb8] sm:$0xff] }
 0xb1d   :  { %1683 = vst.msk [vmem:[#allocation5 + $0xd4] sm:$0xf0] %vm1507_vm6, %v1638_v34 }
 0xb1e   :  { %1544 = vst.msk [vmem:[#allocation5 + $0x66] sm:$0x3f] %vm1510_vm15, %v1538_v15  ;;  %1898 = vrot.lane.b32.xlu0 %v1821_v10, %s3612_s9  ;;  %1900 = vrot.lane.b32.xlu1 %v1822_v40, %s3612_s9  ;;  %v1839_v40 = vmul.f32 %v4697_v33, %v4697_v33 }
 0xb1f   :  { %v1678_v37 = vpop.permute.xlu0 %1677  ;;  %v4603_v53 = vld [vmem:[#allocation5 + $0x40] sm:$0xff] }
 0xb20   :  { %1684 = vst.msk [vmem:[#allocation5 + $0xdc] sm:$0xff] %vm1418_vm0, %v1678_v37  ;;  %v1680_v4 = vpop.permute.xlu1 %1679  ;;  %v1824_v6 = vmul.f32 %v4603_v53, %v4603_v53 }
 0xb21   :  { %1685 = vst.msk [vmem:[#allocation5 + $0xe4] sm:$0x3f] %vm1510_vm15, %v1680_v4 }
 0xb22   :  { %1725 = vst.msk [vmem:[#allocation5 + $0xf6] sm:$0xc0] %vm1551_vm4, %v1680_v4  ;;  %1902 = vrot.lane.b32.xlu0 %v1823_v5, %s3612_s9  ;;  %1904 = vrot.lane.b32.xlu1 %v1824_v6, %s3612_s9 }
 0xb23   :  { %v1536_v44 = vpop.permute.xlu0 %1535 }
 0xb24   :  { %1543 = vst.msk [vmem:[#allocation5 + $0x5e] sm:$0xff] %vm1418_vm0, %v1536_v44  ;;  %v1581_v8 = vpop.permute.xlu1 %1580 }
 0xb25   :  { %1588 = vst.msk [vmem:[#allocation5 + $0x80] sm:$0xff] %vm1418_vm0, %v1581_v8  ;;  %v4640_v62 = vld [vmem:[#allocation5 + $0x68] sm:$0xff] }
 0xb26   :  { %1906 = vrot.lane.b32.xlu0 %v1825_v9, %s3612_s9  ;;  %1908 = vrot.lane.b32.xlu1 %v1826_v14, %s3612_s9  ;;  %v1829_v31 = vmul.f32 %v4640_v62, %v4640_v62 }
 0xb27   :  { %v1579_v16 = vpop.permute.xlu0 %1578  ;;  %v4721_v14 = vld [vmem:[#allocation5 + $0xd8] sm:$0xff] }
 0xb28   :  { %1587 = vst.msk [vmem:[#allocation5 + $0x78] sm:$0xc0] %vm1551_vm4, %v1579_v16  ;;  %v1720_v39 = vpop.permute.xlu1 %1719  ;;  %v4719_v9 = vld [vmem:[#allocation5 + $0xe0] sm:$0xff] }
 0xb29   :  { %1726 = vst.msk [vmem:[#allocation5 + $0xfe] sm:$0xff] %vm1418_vm0, %v1720_v39  ;;  %v1844_v39 = vmul.f32 %v4719_v9, %v4719_v9 }
 0xb2b   :  { %v1722_v18 = vpop.permute.xlu0 %1721  ;;  %v4628_v2 = vld [vmem:[#allocation5 + $0x60] sm:$0xff]  ;;  %v4630_v56 = vld [vmem:[#allocation5 + $0x58] sm:$0xff] }
 0xb2c   :  { %1727 = vst.msk [vmem:[#allocation5 + $0x106] sm:$0xff] %vm1418_vm0, %v1722_v18  ;;  %v1626_v60 = vpop.permute.xlu1 %1625  ;;  %v1828_v19 = vmul.f32 %v4628_v2, %v4628_v2  ;;  %v1827_v22 = vmul.f32 %v4630_v56, %v4630_v56  ;;  %v4650_v43 = vld [vmem:[#allocation5 + $0x80] sm:$0xff]  ;;  %v1843_v18 = vmul.f32 %v4721_v14, %v4721_v14 }
 0xb2d   :  { %1633 = vst.msk [vmem:[#allocation5 + $0xaa] sm:$0xff] %vm1418_vm0, %v1626_v60  ;;  %v1832_v3 = vmul.f32 %v4650_v43, %v4650_v43 }
 0xb2e   :  { %1912 = vrot.lane.b32.xlu1 %v1828_v19, %s3612_s9  ;;  %1910 = vrot.lane.b32.xlu0 %v1827_v22, %s3612_s9 }
 0xb2f   :  { %v1583_v63 = vpop.permute.xlu0 %1582  ;;  %v4652_v51 = vld [vmem:[#allocation5 + $0x78] sm:$0xff] }
 0xb30   :  { %1589 = vst.msk [vmem:[#allocation5 + $0x88] sm:$0xff] %vm1418_vm0, %v1583_v63  ;;  %v1742_v58 = vpop.permute.xlu1 %1741  ;;  %v1831_v47 = vmul.f32 %v4652_v51, %v4652_v51 }
 0xb31   :  { %1747 = vst.msk [vmem:[#allocation5 + $0x108] sm:$0xc0] %vm1551_vm4, %v1742_v58  ;;  %vm2636_vm4 = vcmask 779776  }
 0xb32   :  { %1916 = vrot.lane.b32.xlu1 %v1830_v29, %s3612_s9  ;;  %1914 = vrot.lane.b32.xlu0 %v1829_v31, %s3612_s9 }
 0xb33   :  { %v1624_v12 = vpop.permute.xlu0 %1623  ;;  %v4741_v31 = vld [vmem:[#allocation5 + $0x100] sm:$0xff] }
 0xb34   :  { %1632 = vst.msk [vmem:[#allocation5 + $0xa2] sm:$0xff] %vm1418_vm0, %v1624_v12  ;;  %v1666_v46 = vpop.permute.xlu1 %1665 }
 0xb35   :  { %1674 = vst.msk [vmem:[#allocation5 + $0xc4] sm:$0xfc] %vm1463_vm14, %v1666_v46  ;;  %v1848_v46 = vmul.f32 %v4741_v31, %v4741_v31  ;;  %vm2520_vm14 = vcmask 253952  }
 0xb36   :  { %1920 = vrot.lane.b32.xlu1 %v1832_v3, %s3612_s9  ;;  %1918 = vrot.lane.b32.xlu0 %v1831_v47, %s3612_s9 }
 0xb37   :  { %v1628_v30 = vpop.permute.xlu0 %1627  ;;  %v4666_v49 = vld [vmem:[#allocation5 + $0x88] sm:$0xff] }
 0xb38   :  { %1634 = vst.msk [vmem:[#allocation5 + $0xb2] sm:$0x3] %vm1421_vm13, %v1628_v30  ;;  %v1670_v50 = vpop.permute.xlu1 %1669  ;;  %v1833_v28 = vmul.f32 %v4666_v49, %v4666_v49  ;;  %vm1772_vm13 = vcmask 130055   ;;  %v4749_v3 = vld [vmem:[#allocation5 + $0x108] sm:$0xff] }
 0xb39   :  { %1676 = vst.msk [vmem:[#allocation5 + $0xd4] sm:$0xf] %vm1466_vm5, %v1670_v50  ;;  %v1849_v30 = vmul.f32 %v4749_v3, %v4749_v3  ;;  %vm2676_vm5 = vcmask 1042176  }
 0xb3a   :  { %1924 = vrot.lane.b32.xlu1 %v1834_v7, %s3612_s9  ;;  %1922 = vrot.lane.b32.xlu0 %v1833_v28, %s3612_s9 }
 0xb3b   :  { %v1744_v20 = vpop.permute.xlu0 %1743  ;;  %v4678_v0 = vld [vmem:[#allocation5 + $0xa0] sm:$0xff]  ;;  %v4686_v23 = vld [vmem:[#allocation5 + $0xa8] sm:$0xff] }
 0xb3c   :  { %1748 = vst.msk [vmem:[#allocation5 + $0x110] sm:$0x3f] %vm1510_vm15, %v1744_v20  ;;  %v1710_v35 = vpop.permute.xlu1 %1709  ;;  %v1836_v42 = vmul.f32 %v4678_v0, %v4678_v0  ;;  %v1837_v61 = vmul.f32 %v4686_v23, %v4686_v23  ;;  %v4699_v34 = vld [vmem:[#allocation5 + $0xc0] sm:$0xff] }
 0xb3d   :  { %1717 = vst.msk [vmem:[#allocation5 + $0xee] sm:$0xff] %vm1418_vm0, %v1710_v35  ;;  %v1840_v37 = vmul.f32 %v4699_v34, %v4699_v34 }
 0xb3e   :  { %1926 = vrot.lane.b32.xlu0 %v1835_v13, %s3612_s9  ;;  %1928 = vrot.lane.b32.xlu1 %v1836_v42, %s3612_s9 }
 0xb3f   :  { %v1668_v45 = vpop.permute.xlu0 %1667  ;;  %v4690_v55 = vld [vmem:[#allocation5 + $0xb0] sm:$0xff] }
 0xb40   :  { %1675 = vst.msk [vmem:[#allocation5 + $0xcc] sm:$0xff] %vm1418_vm0, %v1668_v45  ;;  %v1750_v41 = vpop.permute.xlu1 %1749  ;;  %v1838_v48 = vmul.f32 %v4690_v55, %v4690_v55 }
 0xb41   :  { %1753 = vst.msk [vmem:[#allocation5 + $0x110] sm:$0x40] %vm1752_vm9, %v1750_v41  ;;  %vm3204_vm9 = vcmask 188416  }
 0xb42   :  { %1930 = vrot.lane.b32.xlu0 %v1837_v61, %s3612_s9  ;;  %1932 = vrot.lane.b32.xlu1 %v1838_v48, %s3612_s9 }
 0xb43   :  { %v1708_v15 = vpop.permute.xlu0 %1707 }
 0xb44   :  { %1716 = vst.msk [vmem:[#allocation5 + $0xe6] sm:$0xf0] %vm1507_vm6, %v1708_v15  ;;  %v1769_v10 = vpop.permute.xlu1 %1768  ;;  %vm2673_vm6 = vcmask 1048320  }
 0xb45   :  { %1775 = vst.msk [vmem:[#allocation5 + $0x118] sm:$0x7f] %vm1774_vm12, %v1769_v10  ;;  %vm3215_vm12 = vcmask 189441  }
 0xb46   :  { %1934 = vrot.lane.b32.xlu0 %v1839_v40, %s3612_s9  ;;  %1936 = vrot.lane.b32.xlu1 %v1840_v37, %s3612_s9 }
 0xb47   :  { %v1712_v4 = vpop.permute.xlu0 %1711  ;;  %v4710_v5 = vld [vmem:[#allocation5 + $0xd0] sm:$0xff]  ;;  %v4712_v6 = vld [vmem:[#allocation5 + $0xc8] sm:$0xff] }
 0xb48   :  { %1718 = vst.msk [vmem:[#allocation5 + $0xf6] sm:$0x3f] %vm1510_vm15, %v1712_v4  ;;  %v1842_v44 = vmul.f32 %v4710_v5, %v4710_v5  ;;  %v1841_v8 = vmul.f32 %v4712_v6, %v4712_v6  ;;  %v1889_v20 = vpop.permute.xlu1 %1888  ;;  %vm2558_vm15 = vcmask 1041408  }
 0xb49   :  { %v1996_v45 = vsel %vm1418_vm0, %v4545_v26, %v1889_v20 }
 0xb4a   :  { %1940 = vrot.lane.b32.xlu1 %v1842_v44, %s3612_s9  ;;  %1938 = vrot.lane.b32.xlu0 %v1841_v8, %s3612_s9  ;;  %v2032_v48 = vsel %vm792_vm1, %v1996_v45, 0.0 }
 0xb4b   :  { %v1767_v16 = vpop.permute.xlu0 %1766  ;;  %v4729_v60 = vld [vmem:[#allocation5 + $0xe8] sm:$0xff] }
 0xb4c   :  { %1773 = vst.msk [vmem:[#allocation5 + $0x110] sm:$0x80] %vm1772_vm13, %v1767_v16  ;;  %v1845_v63 = vmul.f32 %v4729_v60, %v4729_v60 }
 0xb4e   :  { %1944 = vrot.lane.b32.xlu1 %v1844_v39, %s3612_s9  ;;  %1942 = vrot.lane.b32.xlu0 %v1843_v18, %s3612_s9 }
 0xb4f   :  { %v1777_v19 = vpop.permute.xlu0 %1776  ;;  %v4733_v22 = vld [vmem:[#allocation5 + $0xf0] sm:$0xff]  ;;  %v4739_v29 = vld [vmem:[#allocation5 + $0xf8] sm:$0xff] }
 0xb50   :  { %1779 = vst.msk [vmem:[#allocation5 + $0x118] sm:$0x80] %vm1772_vm13, %v1777_v19  ;;  %v1846_v58 = vmul.f32 %v4733_v22, %v4733_v22  ;;  %v1847_v12 = vmul.f32 %v4739_v29, %v4739_v29 }
 0xb52   :  { %1946 = vrot.lane.b32.xlu0 %v1845_v63, %s3612_s9  ;;  %1948 = vrot.lane.b32.xlu1 %v1846_v58, %s3612_s9 }
 0xb53   :  { %v4751_v47 = vld [vmem:[#allocation5 + $0x110] sm:$0xff]  ;;  %v1891_v35 = vpop.permute.xlu0 %1890 }
 0xb54   :  { %v1850_v50 = vmul.f32 %v4751_v47, %v4751_v47  ;;  %v1997_v42 = vsel %vm1418_vm0, %v4556_v52, %v1891_v35 }
 0xb55   :  { %v2033_v61 = vsel %vm792_vm1, %v1997_v42, 0.0 }
 0xb56   :  { %1950 = vrot.lane.b32.xlu0 %v1847_v12, %s3612_s9  ;;  %1952 = vrot.lane.b32.xlu1 %v1848_v46, %s3612_s9  ;;  %v2034_v10 = vadd.f32 %v2033_v61, %v2032_v48 }
 0xb57   :  { %v4759_v7 = vld [vmem:[#allocation5 + $0x118] sm:$0xff] }
 0xb58   :  { %v1851_v28 = vmul.f32 %v4759_v7, %v4759_v7 }
 0xb5a   :  { %1954 = vrot.lane.b32.xlu0 %v1849_v30, %s3612_s9  ;;  %1956 = vrot.lane.b32.xlu1 %v1850_v50, %s3612_s9 }
 0xb5e   :  { %1958 = vrot.lane.b32.xlu0 %v1851_v28, %s3612_s9 }
 0xb84   :  { %v1893_v13 = vpop.permute.xlu1 %1892 }
 0xb85   :  { %v1998_v41 = vsel %vm1418_vm0, %v4567_v32, %v1893_v13 }
 0xb86   :  { %v2035_v15 = vsel %vm792_vm1, %v1998_v41, 0.0 }
 0xb87   :  { %v2036_v4 = vadd.f32 %v2035_v15, %v2034_v10 }
 0xb8c   :  { %v1897_v40 = vpop.permute.xlu1 %1896  ;;  %v1895_v37 = vpop.permute.xlu0 %1894 }
 0xb8d   :  { %v2000_v44 = vsel %vm1418_vm0, %v4576_v57, %v1897_v40  ;;  %v1999_v8 = vsel %vm1418_vm0, %v4578_v59, %v1895_v37 }
 0xb8e   :  { %v2037_v16 = vsel %vm792_vm1, %v1999_v8, 0.0  ;;  %v2039_v18 = vsel %vm792_vm1, %v2000_v44, 0.0 }
 0xb8f   :  { %v2038_v39 = vadd.f32 %v2037_v16, %v2036_v4 }
 0xb90   :  { %v1901_v19 = vpop.permute.xlu1 %1900  ;;  %v1899_v63 = vpop.permute.xlu0 %1898 }
 0xb91   :  { %v2002_v58 = vsel %vm1418_vm0, %v4590_v38, %v1901_v19  ;;  %v2040_v12 = vadd.f32 %v2039_v18, %v2038_v39  ;;  %v2001_v46 = vsel %vm1418_vm0, %v4586_v1, %v1899_v63 }
 0xb92   :  { %v2041_v30 = vsel %vm792_vm1, %v2001_v46, 0.0  ;;  %v2043_v28 = vsel %vm792_vm1, %v2002_v58, 0.0 }
 0xb93   :  { %v2042_v50 = vadd.f32 %v2041_v30, %v2040_v12 }
 0xb94   :  { %v1905_v20 = vpop.permute.xlu1 %1904  ;;  %v1903_v35 = vpop.permute.xlu0 %1902 }
 0xb95   :  { %v2004_v13 = vsel %vm1418_vm0, %v4603_v53, %v1905_v20  ;;  %v2044_v42 = vadd.f32 %v2043_v28, %v2042_v50  ;;  %v2003_v45 = vsel %vm1418_vm0, %v4599_v11, %v1903_v35 }
 0xb96   :  { %v2045_v41 = vsel %vm792_vm1, %v2003_v45, 0.0  ;;  %v2047_v48 = vsel %vm792_vm1, %v2004_v13, 0.0 }
 0xb97   :  { %v2046_v61 = vadd.f32 %v2045_v41, %v2044_v42 }
 0xb98   :  { %v1907_v15 = vpop.permute.xlu0 %1906  ;;  %v1909_v37 = vpop.permute.xlu1 %1908 }
 0xb99   :  { %v2048_v10 = vadd.f32 %v2047_v48, %v2046_v61  ;;  %v2005_v40 = vsel %vm1418_vm0, %v4612_v36, %v1907_v15  ;;  %v2006_v44 = vsel %vm1418_vm0, %v4614_v54, %v1909_v37 }
 0xb9a   :  { %v2049_v4 = vsel %vm792_vm1, %v2005_v40, 0.0  ;;  %v2051_v16 = vsel %vm792_vm1, %v2006_v44, 0.0 }
 0xb9b   :  { %v2050_v8 = vadd.f32 %v2049_v4, %v2048_v10 }
 0xb9d   :  { %v2052_v63 = vadd.f32 %v2051_v16, %v2050_v8 }
 0xba0   :  { %v1913_v39 = vpop.permute.xlu1 %1912  ;;  %v1911_v18 = vpop.permute.xlu0 %1910 }
 0xba1   :  { %v2008_v19 = vsel %vm1418_vm0, %v4628_v2, %v1913_v39  ;;  %v2007_v58 = vsel %vm1418_vm0, %v4630_v56, %v1911_v18 }
 0xba2   :  { %v2053_v12 = vsel %vm792_vm1, %v2007_v58, 0.0  ;;  %v2055_v30 = vsel %vm792_vm1, %v2008_v19, 0.0 }
 0xba3   :  { %v2054_v46 = vadd.f32 %v2053_v12, %v2052_v63 }
 0xba4   :  { %v1917_v50 = vpop.permute.xlu1 %1916  ;;  %v1915_v28 = vpop.permute.xlu0 %1914 }
 0xba5   :  { %v2010_v20 = vsel %vm1418_vm0, %v4638_v27, %v1917_v50  ;;  %v2056_v35 = vadd.f32 %v2055_v30, %v2054_v46  ;;  %v2009_v13 = vsel %vm1418_vm0, %v4640_v62, %v1915_v28 }
 0xba6   :  { %v2057_v42 = vsel %vm792_vm1, %v2009_v13, 0.0  ;;  %v2059_v41 = vsel %vm792_vm1, %v2010_v20, 0.0 }
 0xba7   :  { %v2058_v45 = vadd.f32 %v2057_v42, %v2056_v35 }
 0xba8   :  { %v1921_v61 = vpop.permute.xlu1 %1920  ;;  %v1919_v48 = vpop.permute.xlu0 %1918 }
 0xba9   :  { %v2012_v15 = vsel %vm1418_vm0, %v4650_v43, %v1921_v61  ;;  %v2060_v10 = vadd.f32 %v2059_v41, %v2058_v45  ;;  %v2011_v40 = vsel %vm1418_vm0, %v4652_v51, %v1919_v48 }
 0xbaa   :  { %v2061_v37 = vsel %vm792_vm1, %v2011_v40, 0.0  ;;  %v2063_v44 = vsel %vm792_vm1, %v2012_v15, 0.0 }
 0xbab   :  { %v2062_v4 = vadd.f32 %v2061_v37, %v2060_v10 }
 0xbac   :  { %v1925_v8 = vpop.permute.xlu1 %1924  ;;  %v1923_v16 = vpop.permute.xlu0 %1922 }
 0xbad   :  { %v2014_v39 = vsel %vm1418_vm0, %v4662_v24, %v1925_v8  ;;  %v2064_v18 = vadd.f32 %v2063_v44, %v2062_v4  ;;  %v2013_v19 = vsel %vm1418_vm0, %v4666_v49, %v1923_v16 }
 0xbae   :  { %v2065_v63 = vsel %vm792_vm1, %v2013_v19, 0.0  ;;  %v2067_v12 = vsel %vm792_vm1, %v2014_v39, 0.0 }
 0xbaf   :  { %v2066_v58 = vadd.f32 %v2065_v63, %v2064_v18 }
 0xbb0   :  { %v1929_v46 = vpop.permute.xlu1 %1928  ;;  %v1927_v30 = vpop.permute.xlu0 %1926 }
 0xbb1   :  { %v2016_v50 = vsel %vm1418_vm0, %v4678_v0, %v1929_v46  ;;  %v2068_v28 = vadd.f32 %v2067_v12, %v2066_v58  ;;  %v2015_v20 = vsel %vm1418_vm0, %v4674_v21, %v1927_v30 }
 0xbb2   :  { %v2069_v35 = vsel %vm792_vm1, %v2015_v20, 0.0  ;;  %v2071_v42 = vsel %vm792_vm1, %v2016_v50, 0.0 }
 0xbb3   :  { %v2070_v13 = vadd.f32 %v2069_v35, %v2068_v28 }
 0xbb4   :  { %v1933_v45 = vpop.permute.xlu1 %1932  ;;  %v1931_v41 = vpop.permute.xlu0 %1930 }
 0xbb5   :  { %v2018_v61 = vsel %vm1418_vm0, %v4690_v55, %v1933_v45  ;;  %v2072_v48 = vadd.f32 %v2071_v42, %v2070_v13  ;;  %v2017_v15 = vsel %vm1418_vm0, %v4686_v23, %v1931_v41 }
 0xbb6   :  { %v2073_v10 = vsel %vm792_vm1, %v2017_v15, 0.0  ;;  %v2075_v37 = vsel %vm792_vm1, %v2018_v61, 0.0 }
 0xbb7   :  { %v2074_v40 = vadd.f32 %v2073_v10, %v2072_v48 }
 0xbb8   :  { %v1937_v4 = vpop.permute.xlu1 %1936  ;;  %v1935_v44 = vpop.permute.xlu0 %1934 }
 0xbb9   :  { %v2020_v8 = vsel %vm1418_vm0, %v4699_v34, %v1937_v4  ;;  %v2076_v16 = vadd.f32 %v2075_v37, %v2074_v40  ;;  %v2019_v39 = vsel %vm1418_vm0, %v4697_v33, %v1935_v44 }
 0xbba   :  { %v2077_v18 = vsel %vm792_vm1, %v2019_v39, 0.0  ;;  %v2079_v63 = vsel %vm792_vm1, %v2020_v8, 0.0 }
 0xbbb   :  { %v2078_v19 = vadd.f32 %v2077_v18, %v2076_v16 }
 0xbbc   :  { %v1941_v58 = vpop.permute.xlu1 %1940  ;;  %v1939_v12 = vpop.permute.xlu0 %1938 }
 0xbbd   :  { %v2022_v46 = vsel %vm1418_vm0, %v4710_v5, %v1941_v58  ;;  %v2080_v30 = vadd.f32 %v2079_v63, %v2078_v19  ;;  %v2021_v50 = vsel %vm1418_vm0, %v4712_v6, %v1939_v12 }
 0xbbe   :  { %v2081_v28 = vsel %vm792_vm1, %v2021_v50, 0.0  ;;  %v2083_v35 = vsel %vm792_vm1, %v2022_v46, 0.0 }
 0xbbf   :  { %v2082_v20 = vadd.f32 %v2081_v28, %v2080_v30 }
 0xbc0   :  { %v1945_v13 = vpop.permute.xlu1 %1944  ;;  %v1943_v42 = vpop.permute.xlu0 %1942 }
 0xbc1   :  { %v2024_v45 = vsel %vm1418_vm0, %v4719_v9, %v1945_v13  ;;  %v2084_v41 = vadd.f32 %v2083_v35, %v2082_v20  ;;  %v2023_v61 = vsel %vm1418_vm0, %v4721_v14, %v1943_v42 }
 0xbc2   :  { %v2085_v48 = vsel %vm792_vm1, %v2023_v61, 0.0  ;;  %v2087_v10 = vsel %vm792_vm1, %v2024_v45, 0.0 }
 0xbc3   :  { %v2086_v15 = vadd.f32 %v2085_v48, %v2084_v41 }
 0xbc4   :  { %v1949_v40 = vpop.permute.xlu1 %1948  ;;  %v1947_v37 = vpop.permute.xlu0 %1946 }
 0xbc5   :  { %v2026_v4 = vsel %vm1418_vm0, %v4733_v22, %v1949_v40  ;;  %v2088_v44 = vadd.f32 %v2087_v10, %v2086_v15  ;;  %v2025_v8 = vsel %vm1418_vm0, %v4729_v60, %v1947_v37 }
 0xbc6   :  { %v2089_v16 = vsel %vm792_vm1, %v2025_v8, 0.0  ;;  %v2091_v18 = vsel %vm792_vm1, %v2026_v4, 0.0 }
 0xbc7   :  { %v2090_v39 = vadd.f32 %v2089_v16, %v2088_v44 }
 0xbc8   :  { %v1953_v19 = vpop.permute.xlu1 %1952  ;;  %v1951_v63 = vpop.permute.xlu0 %1950 }
 0xbc9   :  { %v2028_v58 = vsel %vm1418_vm0, %v4741_v31, %v1953_v19  ;;  %v2092_v12 = vadd.f32 %v2091_v18, %v2090_v39  ;;  %v2027_v46 = vsel %vm1418_vm0, %v4739_v29, %v1951_v63 }
 0xbca   :  { %v2093_v30 = vsel %vm792_vm1, %v2027_v46, 0.0  ;;  %v2095_v28 = vsel %vm792_vm1, %v2028_v58, 0.0 }
 0xbcb   :  { %v2094_v50 = vadd.f32 %v2093_v30, %v2092_v12  ;;  %v3593_v12 = vld [vmem:[%s5730_s13] sm:$0xff]  }
 0xbcc   :  { %v1957_v20 = vpop.permute.xlu1 %1956  ;;  %v1955_v35 = vpop.permute.xlu0 %1954  ;;  %3514 = vmatprep.subr.bf16.mxu0 %v3593_v12 }
 0xbcd   :  { %v2030_v13 = vsel %vm1418_vm0, %v4751_v47, %v1957_v20  ;;  %v2096_v42 = vadd.f32 %v2095_v28, %v2094_v50  ;;  %v2029_v45 = vsel %vm1418_vm0, %v4749_v3, %v1955_v35  ;;  %3515 = vmatpush3.bf16.msra.mxu0 %v3593_v12 }
 0xbce   :  { %v2097_v41 = vsel %vm792_vm1, %v2029_v45, 0.0  ;;  %v2099_v48 = vsel %vm792_vm1, %v2030_v13, 0.0 }
 0xbcf   :  { %v2098_v61 = vadd.f32 %v2097_v41, %v2096_v42  ;;  %v2118_v42 = vld [vmem:[%s5731_s11] sm:$0x1] }
 0xbd0   :  { %v1959_v15 = vpop.permute.xlu0 %1958 }
 0xbd1   :  { %v2100_v10 = vadd.f32 %v2099_v48, %v2098_v61  ;;  %v2031_v40 = vsel %vm1418_vm0, %v4759_v7, %v1959_v15  ;;  %v2140_v61 = vld [vmem:[%s5732_s12] sm:$0x1] }
 0xbd2   :  { %v2101_v37 = vsel %vm792_vm1, %v2031_v40, 0.0 }
 0xbd3   :  { %v2102_v4 = vadd.f32 %v2101_v37, %v2100_v10 }
 0xbd5   :  { %v2103_v44 = vrot.slane %v2102_v4, 4 }
 0xbd7   :  { %v2104_v8 = vadd.f32 %v2103_v44, %v2102_v4 }
 0xbd9   :  { %v2105_v16 = vrot.slane %v2104_v8, 2 }
 0xbdb   :  { %v2106_v39 = vadd.f32 %v2105_v16, %v2104_v8 }
 0xbdd   :  { %v2107_v18 = vrot.slane %v2106_v39, 1 }
 0xbdf   :  { %v2108_v19 = vadd.f32 %v2107_v18, %v2106_v39 }
 0xbe1   :  { %v2110_v63 = vmul.f32 0.0034722222, %v2108_v19 }
 0xbe3   :  { %v2111_v58 = vmul.f32 %v2110_v63, %v2110_v63 }
 0xbe5   :  { %2113 = vrot.lane.b32.xlu1 %v2111_v58, %s3612_s9 }
 0xc57   :  { %v2114_v46 = vpop.permute.xlu1 %2113 }
 0xc58   :  { %v2116_v30 = vsub.f32 %v2110_v63, %v2114_v46 }
 0xc5a   :  { %v2117_v50 = vmax.f32 %v2116_v30, 0.0 }
 0xc5c   :  { %v2119_v28 = vadd.f32 1e-05, %v2117_v50 }
 0xc5e   :  { %3600 = vrsqrt.f32 %v2119_v28 }
 0xc6b   :  { %v3601_v20 = vpop.eup %3600 }
 0xc6c   :  { %v2128_v35 = vrot.slane %v3601_v20, %v3806_v17 }
 0xc6e   :  { %v2135_v13 = vrot.slane %v2128_v35, %v3806_v17 }
 0xc70   :  { %2136 = vrot.lane.b32.xlu0 %v2135_v13, %s3611_s8 }
 0xce2   :  { %v2137_v45 = vpop.permute.xlu0 %2136 }
 0xce3   :  { %v2139_v41 = vmul.f32 %v2137_v45, %v2118_v42 }
 0xce5   :  { %v2141_v48 = vmul.f32 %v2139_v41, %v2110_v63  ;;  %v4888_v15 = vrot.slane %v2139_v41, %v3823_v25 }
 0xce7   :  { %v2142_v10 = vsub.f32 %v2140_v61, %v2141_v48  ;;  %v2151_v17 = vmul.f32 %v4888_v15, %v4567_v32  ;;  %v2152_v37 = vmul.f32 %v4888_v15, %v4578_v59  ;;  %v2149_v4 = vmul.f32 %v4888_v15, %v4545_v26 }
 0xce8   :  { %v2150_v44 = vmul.f32 %v4888_v15, %v4556_v52  ;;  %v2153_v8 = vmul.f32 %v4888_v15, %v4576_v57  ;;  %v2154_v16 = vmul.f32 %v4888_v15, %v4586_v1  ;;  %v2155_v1 = vmul.f32 %v4888_v15, %v4590_v38 }
 0xce9   :  { %v4893_v40 = vrot.slane %v2142_v10, %v3823_v25  ;;  %v2156_v30 = vmul.f32 %v4888_v15, %v4599_v11  ;;  %v2157_v20 = vmul.f32 %v4888_v15, %v4603_v53  ;;  %v2158_v35 = vmul.f32 %v4888_v15, %v4612_v36 }
 0xcea   :  { %v2159_v36 = vmul.f32 %v4888_v15, %v4614_v54  ;;  %v2160_v10 = vmul.f32 %v4888_v15, %v4630_v56 }
 0xceb   :  { %v2191_v32 = vadd.f32 %v4893_v40, %v2149_v4  ;;  %v2192_v39 = vadd.f32 %v4893_v40, %v2150_v44  ;;  %v2193_v18 = vadd.f32 %v4893_v40, %v2151_v17  ;;  %v2194_v59 = vadd.f32 %v4893_v40, %v2152_v37 }
 0xcec   :  { %v2195_v19 = vadd.f32 %v4893_v40, %v2153_v8  ;;  %v2196_v26 = vadd.f32 %v4893_v40, %v2154_v16  ;;  %v2197_v13 = vadd.f32 %v4893_v40, %v2155_v1  ;;  %v2198_v42 = vadd.f32 %v4893_v40, %v2156_v30 }
 0xced   :  { %v2227_v63 = vmax.f32 %v2191_v32, 0.0  ;;  %v2228_v52 = vmax.f32 %v2192_v39, 0.0  ;;  %v2229_v58 = vmax.f32 %v2193_v18, 0.0  ;;  %v2230_v12 = vmax.f32 %v2194_v59, 0.0 }
 0xcee   :  { %v2231_v57 = vmax.f32 %v2195_v19, 0.0  ;;  %v2232_v46 = vmax.f32 %v2196_v26, 0.0  ;;  %v2199_v38 = vadd.f32 %v4893_v40, %v2157_v20  ;;  %v2200_v41 = vadd.f32 %v4893_v40, %v2158_v35 }
 0xcef   :  { %v2263_v50 = vpack.c.bf16 %v2228_v52, %v2227_v63  ;;  %v2264_v28 = vpack.c.bf16 %v2230_v12, %v2229_v58  ;;  %v2233_v11 = vmax.f32 %v2197_v13, 0.0  ;;  %v2234_v53 = vmax.f32 %v2198_v42, 0.0 }
 0xcf0   :  { %v2265_v45 = vpack.c.bf16 %v2232_v46, %v2231_v57  ;;  %v2235_v61 = vmax.f32 %v2199_v38, 0.0  ;;  %v2236_v48 = vmax.f32 %v2200_v41, 0.0  ;;  %v2161_v17 = vmul.f32 %v4888_v15, %v4628_v2 }
 0xcf1   :  { %3516 = vmatprep.mubr.msk.bf16.mxu0 %vm1418_vm0, %v2263_v50  ;;  %v2162_v37 = vmul.f32 %v4888_v15, %v4640_v62  ;;  %v2266_v4 = vpack.c.bf16 %v2234_v53, %v2233_v11  ;;  %v2201_v44 = vadd.f32 %v4893_v40, %v2159_v36  ;;  %v2202_v8 = vadd.f32 %v4893_v40, %v2160_v10 }
 0xcf2   :  { %3517 = vmatmul.mubr.msk.bf16.vlgmr.msra.gmra.mxu0 %vm1418_vm0, %v2264_v28  ;;  %v2267_v16 = vpack.c.bf16 %v2236_v48, %v2235_v61  ;;  %v2203_v32 = vadd.f32 %v4893_v40, %v2161_v17  ;;  %v2163_v62 = vmul.f32 %v4888_v15, %v4638_v27  ;;  %v2164_v59 = vmul.f32 %v4888_v15, %v4652_v51 }
 0xcf3   :  { %3520 = vmatprep.mubr.msk.bf16.mxu0 %vm1418_vm0, %v2265_v45  ;;  %v2204_v39 = vadd.f32 %v4893_v40, %v2162_v37  ;;  %v2237_v54 = vmax.f32 %v2201_v44, 0.0  ;;  %v2238_v56 = vmax.f32 %v2202_v8, 0.0  ;;  %v2165_v19 = vmul.f32 %v4888_v15, %v4650_v43 }
 0xcf4   :  { %v2239_v2 = vmax.f32 %v2203_v32, 0.0  ;;  %v2166_v26 = vmul.f32 %v4888_v15, %v4666_v49  ;;  %v2205_v52 = vadd.f32 %v4893_v40, %v2163_v62  ;;  %v2206_v58 = vadd.f32 %v4893_v40, %v2164_v59 }
 0xcf5   :  { %v2240_v18 = vmax.f32 %v2204_v39, 0.0  ;;  %v2268_v63 = vpack.c.bf16 %v2238_v56, %v2237_v54  ;;  %v2207_v57 = vadd.f32 %v4893_v40, %v2165_v19  ;;  %v2183_v27 = vmul.f32 %v4888_v15, %v4751_v47 }
 0xcf6   :  { %v2208_v46 = vadd.f32 %v4893_v40, %v2166_v26  ;;  %v2184_v43 = vmul.f32 %v4888_v15, %v4759_v7  ;;  %v2241_v51 = vmax.f32 %v2205_v52, 0.0  ;;  %v2242_v49 = vmax.f32 %v2206_v58, 0.0 }
 0xcf7   :  { %v2269_v12 = vpack.c.bf16 %v2240_v18, %v2239_v2  ;;  %v2243_v1 = vmax.f32 %v2207_v57, 0.0  ;;  %v2225_v50 = vadd.f32 %v4893_v40, %v2183_v27  ;;  %v2167_v20 = vmul.f32 %v4888_v15, %v4662_v24 }
 0xcf8   :  { %v2244_v30 = vmax.f32 %v2208_v46, 0.0  ;;  %v2226_v28 = vadd.f32 %v4893_v40, %v2184_v43  ;;  %v2168_v35 = vmul.f32 %v4888_v15, %v4674_v21  ;;  %v2169_v47 = vmul.f32 %v4888_v15, %v4678_v0 }
 0xcf9   :  { %v2170_v7 = vmul.f32 %v4888_v15, %v4686_v23  ;;  %v2261_v13 = vmax.f32 %v2225_v50, 0.0  ;;  %v2270_v45 = vpack.c.bf16 %v2242_v49, %v2241_v51  ;;  %v2209_v38 = vadd.f32 %v4893_v40, %v2167_v20 }
 0xcfa   :  { %3521 = vmatmul.mubr.msk.bf16.gmra.mxu0 %vm1418_vm0, %v2266_v4  ;;  %v2262_v42 = vmax.f32 %v2226_v28, 0.0  ;;  %v2210_v41 = vadd.f32 %v4893_v40, %v2168_v35  ;;  %v2271_v11 = vpack.c.bf16 %v2244_v30, %v2243_v1  ;;  %v2211_v53 = vadd.f32 %v4893_v40, %v2169_v47 }
 0xcfb   :  { %3524 = vmatprep.mubr.msk.bf16.mxu0 %vm1418_vm0, %v2267_v16  ;;  %v2212_v24 = vadd.f32 %v4893_v40, %v2170_v7  ;;  %v2245_v21 = vmax.f32 %v2209_v38, 0.0  ;;  %v2171_v36 = vmul.f32 %v4888_v15, %v4690_v55  ;;  %v2172_v10 = vmul.f32 %v4888_v15, %v4697_v33 }
 0xcfc   :  { %v2280_v61 = vpack.c.bf16 %v2262_v42, %v2261_v13  ;;  %v2246_v0 = vmax.f32 %v2210_v41, 0.0  ;;  %v2247_v23 = vmax.f32 %v2211_v53, 0.0  ;;  %v2173_v17 = vmul.f32 %v4888_v15, %v4699_v34 }
 0xcfd   :  { %v2248_v48 = vmax.f32 %v2212_v24, 0.0  ;;  %v2174_v37 = vmul.f32 %v4888_v15, %v4712_v6  ;;  %v2213_v44 = vadd.f32 %v4893_v40, %v2171_v36  ;;  %v2214_v8 = vadd.f32 %v4893_v40, %v2172_v10 }
 0xcfe   :  { %v2272_v4 = vpack.c.bf16 %v2246_v0, %v2245_v21  ;;  %v2215_v32 = vadd.f32 %v4893_v40, %v2173_v17  ;;  %v2175_v6 = vmul.f32 %v4888_v15, %v4710_v5  ;;  %v2176_v56 = vmul.f32 %v4888_v15, %v4721_v14 }
 0xcff   :  { %v2273_v16 = vpack.c.bf16 %v2248_v48, %v2247_v23  ;;  %v2216_v39 = vadd.f32 %v4893_v40, %v2174_v37  ;;  %v2249_v55 = vmax.f32 %v2213_v44, 0.0  ;;  %v2250_v33 = vmax.f32 %v2214_v8, 0.0 }
 0xd00   :  { %v2251_v34 = vmax.f32 %v2215_v32, 0.0  ;;  %v2177_v2 = vmul.f32 %v4888_v15, %v4719_v9  ;;  %v2178_v18 = vmul.f32 %v4888_v15, %v4729_v60  ;;  %v2217_v59 = vadd.f32 %v4893_v40, %v2175_v6 }
 0xd01   :  { %v2252_v54 = vmax.f32 %v2216_v39, 0.0  ;;  %v2274_v62 = vpack.c.bf16 %v2250_v33, %v2249_v55  ;;  %v2218_v19 = vadd.f32 %v4893_v40, %v2176_v56  ;;  %v2179_v60 = vmul.f32 %v4888_v15, %v4733_v22 }
 0xd02   :  { %3525 = vmatmul.mubr.msk.bf16.gmra.mxu0 %vm1418_vm0, %v2268_v63  ;;  %v2219_v63 = vadd.f32 %v4893_v40, %v2177_v2  ;;  %v2220_v52 = vadd.f32 %v4893_v40, %v2178_v18  ;;  %v2253_v5 = vmax.f32 %v2217_v59, 0.0  ;;  %v2181_v57 = vmul.f32 %v4888_v15, %v4741_v31 }
 0xd03   :  { %3528 = vmatprep.mubr.msk.bf16.mxu0 %vm1418_vm0, %v2269_v12  ;;  %v2275_v26 = vpack.c.bf16 %v2252_v54, %v2251_v34  ;;  %v2254_v14 = vmax.f32 %v2218_v19, 0.0  ;;  %v2180_v12 = vmul.f32 %v4888_v15, %v4739_v29  ;;  %v2182_v46 = vmul.f32 %v4888_v15, %v4749_v3 }
 0xd04   :  { %v2255_v9 = vmax.f32 %v2219_v63, 0.0  ;;  %v2256_v58 = vmax.f32 %v2220_v52, 0.0  ;;  %v2221_v43 = vadd.f32 %v4893_v40, %v2179_v60  ;;  %v2223_v1 = vadd.f32 %v4893_v40, %v2181_v57 }
 0xd05   :  { %v2276_v27 = vpack.c.bf16 %v2254_v14, %v2253_v5  ;;  %v2222_v51 = vadd.f32 %v4893_v40, %v2180_v12  ;;  %v2224_v30 = vadd.f32 %v4893_v40, %v2182_v46 }
 0xd06   :  { %v2277_v49 = vpack.c.bf16 %v2256_v58, %v2255_v9  ;;  %v2257_v22 = vmax.f32 %v2221_v43, 0.0  ;;  %v2259_v31 = vmax.f32 %v2223_v1, 0.0 }
 0xd07   :  { %v2258_v29 = vmax.f32 %v2222_v51, 0.0  ;;  %v2260_v50 = vmax.f32 %v2224_v30, 0.0 }
 0xd09   :  { %v2278_v28 = vpack.c.bf16 %v2258_v29, %v2257_v22  ;;  %v2279_v3 = vpack.c.bf16 %v2260_v50, %v2259_v31 }
 0xd0a   :  { %3529 = vmatmul.mubr.msk.bf16.gmra.mxu0 %vm1418_vm0, %v2270_v45 }
 0xd0b   :  { %3532 = vmatprep.mubr.msk.bf16.mxu0 %vm1418_vm0, %v2271_v11 }
 0xd12   :  { %3533 = vmatmul.mubr.msk.bf16.gmra.mxu0 %vm1418_vm0, %v2272_v4 }
 0xd13   :  { %3536 = vmatprep.mubr.msk.bf16.mxu0 %vm1418_vm0, %v2273_v16 }
 0xd1a   :  { %3537 = vmatmul.mubr.msk.bf16.gmra.mxu0 %vm1418_vm0, %v2274_v62 }
 0xd1b   :  { %3540 = vmatprep.mubr.msk.bf16.mxu0 %vm1418_vm0, %v2275_v26 }
 0xd22   :  { %3541 = vmatmul.mubr.msk.bf16.gmra.mxu0 %vm1418_vm0, %v2276_v27 }
 0xd23   :  { %3544 = vmatprep.mubr.msk.bf16.mxu0 %vm1418_vm0, %v2277_v49 }
 0xd2a   :  { %3545 = vmatmul.mubr.msk.bf16.gmra.mxu0 %vm1418_vm0, %v2278_v28 }
 0xd2b   :  { %3548 = vmatprep.mubr.msk.bf16.mxu0 %vm1418_vm0, %v2279_v3 }
 0xd32   :  { %3549 = vmatmul.mubr.msk.bf16.gmra.mxu0 %vm1418_vm0, %v2280_v61  ;;  %vm2524_vm0 = vcmask 1042432  }
 0xdb2   :  { %v5019_v15 = vpop.f32.mrf.mxu0 }
 0xdb3   :  { %v2562_v40 = vrot.slane %v5019_v15, 6 }
 0xdb4   :  { %v5022_v20 = vpop.f32.mrf.mxu0 }
 0xdb5   :  { %2521 = vst.msk [vmem:[%s5733_s16] sm:$0x1] %vm2520_vm14, %v5022_v20  ;;  %2604 = vrot.lane.b32.xlu1 %v2562_v40, %s3609_s5  ;;  %v2559_v47 = vrot.slane %v5022_v20, 6 }
 0xdb6   :  { %v5030_v35 = vpop.f32.mrf.mxu0 }
 0xdb7   :  { %v2600_v7 = vrot.slane %v5030_v35, 6 }
 0xdb8   :  { %v5034_v13 = vpop.f32.mrf.mxu0 }
 0xdb9   :  { %v2540_v42 = vrot.slane %v5034_v13, 1  ;;  %v2560_v45 = vrot.slane %v5034_v13, 6  ;;  %2564 = vrot.lane.b32.xlu1 %v2559_v47, %s3609_s5  ;;  %v2601_v38 = vsel %vm2558_vm15, %v2562_v40, %v2600_v7 }
 0xdba   :  { %2606 = vrot.lane.b32.xlu0 %v2601_v38, %s3609_s5  ;;  %v5041_v41 = vpop.f32.mrf.mxu0 }
 0xdbb   :  { %2542 = vst.msk [vmem:[%s5733_s16 + $0x21] sm:$0x1] %vm2520_vm14, %v2540_v42  ;;  %v2563_v11 = vsel %vm2558_vm15, %v2560_v45, %v2562_v40  ;;  %v2561_v24 = vsel %vm2558_vm15, %v2559_v47, %v2560_v45  ;;  %v2642_v21 = vrot.slane %v5041_v41, 6 }
 0xdbc   :  { %v5048_v53 = vpop.f32.mrf.mxu0 }
 0xdbd   :  { %2568 = vrot.lane.b32.xlu1 %v2563_v11, %s3609_s5  ;;  %v2602_v0 = vrot.slane %v5048_v53, 6 }
 0xdbe   :  { %2566 = vrot.lane.b32.xlu0 %v2561_v24, %s3609_s5  ;;  %v5053_v61 = vpop.f32.mrf.mxu0 }
 0xdbf   :  { %v2680_v23 = vrot.slane %v5053_v61, 6  ;;  %v2603_v4 = vsel %vm2558_vm15, %v2600_v7, %v2602_v0 }
 0xdc0   :  { %v5058_v48 = vpop.f32.mrf.mxu0 }
 0xdc1   :  { %v2640_v36 = vrot.slane %v5058_v48, 6  ;;  %2644 = vrot.lane.b32.xlu1 %v2602_v0, %s3609_s5  ;;  %v2681_v10 = vsel %vm2558_vm15, %v2642_v21, %v2680_v23 }
 0xdc2   :  { %2684 = vrot.lane.b32.xlu0 %v2681_v10, %s3609_s5  ;;  %v5064_v17 = vpop.f32.mrf.mxu0 }
 0xdc3   :  { %v2641_v44 = vsel %vm2558_vm15, %v2602_v0, %v2640_v36  ;;  %v2643_v39 = vsel %vm2558_vm15, %v2640_v36, %v2642_v21  ;;  %v2703_v33 = vrot.slane %v5064_v17, 6 }
 0xdc4   :  { %v5066_v37 = vpop.f32.mrf.mxu0 }
 0xdc5   :  { %2608 = vrot.lane.b32.xlu1 %v2603_v4, %s3609_s5  ;;  %v2682_v34 = vrot.slane %v5066_v37, 6 }
 0xdc6   :  { %2646 = vrot.lane.b32.xlu0 %v2641_v44, %s3609_s5  ;;  %v5072_v8 = vpop.f32.mrf.mxu0 }
 0xdc7   :  { %v2705_v16 = vrot.slane %v5072_v8, 6  ;;  %v2683_v62 = vsel %vm2558_vm15, %v2680_v23, %v2682_v34 }
 0xdc8   :  { %v5075_v32 = vpop.f32.mrf.mxu0 }
 0xdc9   :  { %2648 = vrot.lane.b32.xlu1 %v2643_v39, %s3609_s5  ;;  %v2706_v6 = vsel %vm2558_vm15, %v2703_v33, %v2705_v16  ;;  %v2702_v2 = vrot.slane %v5075_v32, 6 }
 0xdca   :  { %2745 = vrot.lane.b32.xlu0 %v2705_v16, %s3609_s5  ;;  %v5080_v55 = vpop.f32.mrf.mxu0 }
 0xdcb   :  { %v2779_v26 = vrot.slane %v5080_v55, 6  ;;  %v2704_v5 = vsel %vm2558_vm15, %v2702_v2, %v2703_v33 }
 0xdcc   :  { %v5084_v54 = vpop.f32.mrf.mxu0 }
 0xdcd   :  { %2688 = vrot.lane.b32.xlu1 %v2682_v34, %s3609_s5  ;;  %v2741_v63 = vrot.slane %v5084_v54, 6 }
 0xdce   :  { %2711 = vrot.lane.b32.xlu0 %v2706_v6, %s3609_s5  ;;  %v5089_v56 = vpop.f32.mrf.mxu0 }
 0xdcf   :  { %v2781_v59 = vrot.slane %v5089_v56, 6  ;;  %v2742_v12 = vsel %vm2558_vm15, %v2705_v16, %v2741_v63 }
 0xdd0   :  { %v5092_v18 = vpop.f32.mrf.mxu0 }
 0xdd1   :  { %2686 = vrot.lane.b32.xlu1 %v2683_v62, %s3609_s5  ;;  %v2782_v14 = vsel %vm2558_vm15, %v2779_v26, %v2781_v59  ;;  %v2743_v58 = vrot.slane %v5092_v18, 6 }
 0xdd2   :  { %2707 = vrot.lane.b32.xlu0 %v2702_v2, %s3609_s5  ;;  %v5098_v19 = vpop.f32.mrf.mxu0 }
 0xdd3   :  { %v2780_v27 = vsel %vm2558_vm15, %v2743_v58, %v2779_v26  ;;  %v2744_v51 = vsel %vm2558_vm15, %v2741_v63, %v2743_v58  ;;  %v2839_v1 = vrot.slane %v5098_v19, 6 }
 0xdd4   :  { %v5102_v52 = vpop.f32.mrf.mxu0 }
 0xdd5   :  { %2709 = vrot.lane.b32.xlu1 %v2704_v5, %s3609_s5  ;;  %v2817_v43 = vrot.slane %v5102_v52, 6 }
 0xdd6   :  { %2787 = vrot.lane.b32.xlu0 %v2782_v14, %s3609_s5  ;;  %v5108_v9 = vpop.f32.mrf.mxu0 }
 0xdd7   :  { %v2840_v29 = vrot.slane %v5108_v9, 6  ;;  %v2818_v31 = vsel %vm2558_vm15, %v2781_v59, %v2817_v43 }
 0xdd8   :  { %v5111_v60 = vpop.f32.mrf.mxu0 }
 0xdd9   :  { %2747 = vrot.lane.b32.xlu1 %v2742_v12, %s3609_s5  ;;  %v2819_v30 = vrot.slane %v5111_v60, 6  ;;  %v2841_v40 = vsel %vm2558_vm15, %v2839_v1, %v2840_v29 }
 0xdda   :  { %2783 = vrot.lane.b32.xlu0 %v2743_v58, %s3609_s5  ;;  %v5116_v57 = vpop.f32.mrf.mxu0 }
 0xddb   :  { %v2820_v28 = vsel %vm2558_vm15, %v2817_v43, %v2819_v30  ;;  %v2880_v47 = vrot.slane %v5116_v57, 6 }
 0xddc   :  { %v5118_v46 = vpop.f32.mrf.mxu0 }
 0xddd   :  { %2785 = vrot.lane.b32.xlu1 %v2780_v27, %s3609_s5  ;;  %v2842_v7 = vrot.slane %v5118_v46, 6 }
 0xdde   :  { %2749 = vrot.lane.b32.xlu0 %v2744_v51, %s3609_s5  ;;  %v5125_v49 = vpop.f32.mrf.mxu0 }
 0xddf   :  { %v2843_v38 = vsel %vm2558_vm15, %v2840_v29, %v2842_v7  ;;  %v2916_v11 = vrot.slane %v5125_v49, 6 }
 0xde0   :  { %v5129_v22 = vpop.f32.mrf.mxu0 }
 0xde1   :  { %2844 = vrot.lane.b32.xlu1 %v2839_v1, %s3609_s5  ;;  %v2878_v45 = vrot.slane %v5129_v22, 6  ;;  %v2917_v23 = vsel %vm2558_vm15, %v2880_v47, %v2916_v11 }
 0xde2   :  { %2821 = vrot.lane.b32.xlu0 %v2818_v31, %s3609_s5  ;;  %v5135_v50 = vpop.f32.mrf.mxu0 }
 0xde3   :  { %v2879_v21 = vsel %vm2558_vm15, %v2842_v7, %v2878_v45  ;;  %v2956_v36 = vrot.slane %v5135_v50, 6  ;;  %v2881_v44 = vsel %vm2558_vm15, %v2878_v45, %v2880_v47 }
 0xde4   :  { %v5138_v3 = vpop.f32.mrf.mxu0 }
 0xde5   :  { %2823 = vrot.lane.b32.xlu1 %v2820_v28, %s3609_s5  ;;  %v2918_v10 = vrot.slane %v5138_v3, 6 }
 0xde6   :  { %2846 = vrot.lane.b32.xlu0 %v2841_v40, %s3609_s5  ;;  %v5145_v42 = vpop.f32.mrf.mxu0 }
 0xde7   :  { %v2976_v16 = vrot.slane %v5145_v42, 6  ;;  %v2919_v33 = vsel %vm2558_vm15, %v2916_v11, %v2918_v10 }
 0xde8   :  { %v5152_v24 = vpop.f32.mrf.mxu0 }
 0xde9   :  { %2920 = vrot.lane.b32.xlu1 %v2880_v47, %s3609_s5  ;;  %v2954_v39 = vrot.slane %v5152_v24, 6 }
 0xdea   :  { %2825 = vrot.lane.b32.xlu0 %v2819_v30, %s3609_s5  ;;  %v5157_v0 = vpop.f32.mrf.mxu0 }
 0xdeb   :  { %v2955_v2 = vsel %vm2558_vm15, %v2918_v10, %v2954_v39  ;;  %v2957_v59 = vsel %vm2558_vm15, %v2954_v39, %v2956_v36  ;;  %v3015_v58 = vrot.slane %v5157_v0, 6 }
 0xdec   :  { %v5164_v4 = vpop.f32.mrf.mxu0 }
 0xded   :  { %2848 = vrot.lane.b32.xlu1 %v2843_v38, %s3609_s5  ;;  %v2977_v6 = vrot.slane %v5164_v4, 6 }
 0xdee   :  { %2882 = vrot.lane.b32.xlu0 %v2842_v7, %s3609_s5  ;;  %v5172_v34 = vpop.f32.mrf.mxu0 }
 0xdef   :  { %v3017_v26 = vrot.slane %v5172_v34, 6  ;;  %v2978_v63 = vsel %vm2558_vm15, %v2976_v16, %v2977_v6 }
 0xdf0   :  { %v5178_v62 = vpop.f32.mrf.mxu0 }
 0xdf1   :  { %2884 = vrot.lane.b32.xlu1 %v2879_v21, %s3609_s5  ;;  %v2979_v5 = vrot.slane %v5178_v62, 6  ;;  %v3018_v12 = vsel %vm2558_vm15, %v3015_v58, %v3017_v26 }
 0xdf2   :  { %2922 = vrot.lane.b32.xlu0 %v2917_v23, %s3609_s5  ;;  %v5186_v14 = vpop.f32.mrf.mxu0 }
 0xdf3   :  { %v2980_v43 = vsel %vm2558_vm15, %v2977_v6, %v2979_v5  ;;  %v3016_v30 = vsel %vm2558_vm15, %v2979_v5, %v3015_v58  ;;  %v2526_v29 = vrot.slane %v5186_v14, 5 }
 0xdf4   :  { %v5192_v27 = vpop.f32.mrf.mxu0 }
 0xdf5   :  { %2962 = vrot.lane.b32.xlu1 %v2956_v36, %s3609_s5  ;;  %v3052_v51 = vrot.slane %v5192_v27, 6 }
 0xdf6   :  { %2886 = vrot.lane.b32.xlu0 %v2881_v44, %s3609_s5  ;;  %v5198_v1 = vpop.f32.mrf.mxu0 }
 0xdf7   :  { %v2544_v31 = vrot.slane %v5198_v1, 5  ;;  %v3053_v28 = vsel %vm2558_vm15, %v3017_v26, %v3052_v51 }
 0xdf8   :  { %v5206_v40 = vpop.f32.mrf.mxu0 }
 0xdf9   :  { %2924 = vrot.lane.b32.xlu1 %v2919_v33, %s3609_s5  ;;  %v2525_v47 = vrot.slane %v5206_v40, 5  ;;  %v2545_v7 = vsel %vm2524_vm0, %v2526_v29, %v2544_v31  ;;  %v3054_v45 = vrot.slane %v5206_v40, 6 }
 0xdfa   :  { %2981 = vrot.lane.b32.xlu0 %v2976_v16, %s3609_s5 }
 0xdfb   :  { %v2527_v38 = vsel %vm2524_vm0, %v2525_v47, %v2526_v29  ;;  %v3055_v11 = vsel %vm2558_vm15, %v3052_v51, %v3054_v45 }
 0xdfd   :  { %2958 = vrot.lane.b32.xlu1 %v2955_v2, %s3609_s5 }
 0xdfe   :  { %2960 = vrot.lane.b32.xlu0 %v2957_v59, %s3609_s5 }
 0xe01   :  { %2983 = vrot.lane.b32.xlu1 %v2978_v63, %s3609_s5 }
 0xe02   :  { %3056 = vrot.lane.b32.xlu0 %v3017_v26, %s3609_s5 }
 0xe05   :  { %3023 = vrot.lane.b32.xlu1 %v3018_v12, %s3609_s5 }
 0xe06   :  { %2985 = vrot.lane.b32.xlu0 %v2980_v43, %s3609_s5 }
 0xe09   :  { %3019 = vrot.lane.b32.xlu1 %v2979_v5, %s3609_s5 }
 0xe0a   :  { %3021 = vrot.lane.b32.xlu0 %v3016_v30, %s3609_s5 }
 0xe0d   :  { %3058 = vrot.lane.b32.xlu1 %v3053_v28, %s3609_s5 }
 0xe0e   :  { %2530 = vrot.lane.b32.xlu0 %v2526_v29, %s3609_s5 }
 0xe11   :  { %2546 = vrot.lane.b32.xlu1 %v2545_v7, %s3609_s5 }
 0xe12   :  { %2548 = vrot.lane.b32.xlu0 %v2544_v31, %s3609_s5 }
 0xe15   :  { %2528 = vrot.lane.b32.xlu1 %v2527_v38, %s3609_s5 }
 0xe16   :  { %3060 = vrot.lane.b32.xlu0 %v3055_v11, %s3609_s5 }
 0xe27   :  { %v2605_v21 = vpop.permute.xlu1 %2604 }
 0xe28   :  { %v2613_v23 = vadd.f32 %v2605_v21, %v5048_v53 }
 0xe2a   :  { %v2619_v16 = vrot.slane %v2613_v23, 4 }
 0xe2b   :  { %v2565_v36 = vpop.permute.xlu1 %2564 }
 0xe2c   :  { %v2607_v10 = vpop.permute.xlu0 %2606  ;;  %v2573_v39 = vadd.f32 %v5019_v15, %v2565_v36 }
 0xe2d   :  { %v2614_v44 = vadd.f32 %v2607_v10, %v5058_v48 }
 0xe2e   :  { %v2579_v58 = vrot.slane %v2573_v39, 2 }
 0xe2f   :  { %v2620_v33 = vrot.slane %v2614_v44, 4  ;;  %v2569_v6 = vpop.permute.xlu1 %2568 }
 0xe30   :  { %v2575_v2 = vadd.f32 %v2569_v6, %v5048_v53  ;;  %v2567_v59 = vpop.permute.xlu0 %2566 }
 0xe31   :  { %v2574_v26 = vadd.f32 %v5030_v35, %v2567_v59  ;;  %v2621_v63 = vsel %vm250_vm7, %v2619_v16, %v2620_v33 }
 0xe32   :  { %v2582_v5 = vrot.slane %v2575_v2, 2  ;;  %2624 = vrot.lane.b32.xlu0 %v2621_v63, %s3605_s26 }
 0xe33   :  { %v2580_v12 = vrot.slane %v2574_v26, 2  ;;  %v2645_v43 = vpop.permute.xlu1 %2644 }
 0xe34   :  { %v2685_v51 = vpop.permute.xlu0 %2684  ;;  %2588 = vrot.lane.b32.xlu1 %v2582_v5, %s3610_s6  ;;  %v2653_v38 = vadd.f32 %v5041_v41, %v2645_v43 }
 0xe35   :  { %v2693_v48 = vadd.f32 %v2685_v51, %v5075_v32  ;;  %v2581_v30 = vsel %vm458_vm8, %v2579_v58, %v2580_v12  ;;  %v2583_v53 = vsel %vm458_vm8, %v2580_v12, %v2582_v5 }
 0xe36   :  { %2584 = vrot.lane.b32.xlu0 %v2581_v30, %s3610_s6 }
 0xe37   :  { %2696 = vst.msk [vmem:[%s5733_s16 + $0x8] sm:$0xff] %vm792_vm1, %v2693_v48  ;;  %v2609_v35 = vpop.permute.xlu1 %2608 }
 0xe38   :  { %v2615_v29 = vadd.f32 %v5041_v41, %v2609_v35  ;;  %v2647_v31 = vpop.permute.xlu0 %2646  ;;  %2586 = vrot.lane.b32.xlu1 %v2583_v53, %s3610_s6 }
 0xe39   :  { %v2654_v32 = vadd.f32 %v5053_v61, %v2647_v31  ;;  %v2659_v61 = vrot.slane %v2653_v38, 6 }
 0xe3a   :  { %v2622_v28 = vrot.slane %v2615_v29, 4 }
 0xe3b   :  { %v2649_v47 = vpop.permute.xlu1 %2648  ;;  %v2660_v21 = vrot.slane %v2654_v32, 6 }
 0xe3c   :  { %v2655_v7 = vadd.f32 %v2649_v47, %v5066_v37  ;;  %v2746_v45 = vpop.permute.xlu0 %2745  ;;  %2628 = vrot.lane.b32.xlu1 %v2622_v28, %s3605_s26  ;;  %v2623_v36 = vsel %vm250_vm7, %v2620_v33, %v2622_v28 }
 0xe3d   :  { %v2661_v16 = vsel %vm2558_vm15, %v2659_v61, %v2660_v21 }
 0xe3e   :  { %v2662_v11 = vrot.slane %v2655_v7, 6 }
 0xe3f   :  { %v2689_v23 = vpop.permute.xlu1 %2688 }
 0xe40   :  { %v2695_v10 = vadd.f32 %v5072_v8, %v2689_v23  ;;  %v2712_v44 = vpop.permute.xlu0 %2711  ;;  %2668 = vrot.lane.b32.xlu0 %v2662_v11, %s3609_s5  ;;  %2626 = vrot.lane.b32.xlu1 %v2623_v36, %s3605_s26  ;;  %v2663_v39 = vsel %vm2558_vm15, %v2660_v21, %v2662_v11 }
 0xe41   :  { %v2718_v41 = vadd.f32 %v2712_v44, %v5092_v18 }
 0xe42   :  { %2698 = vst.msk [vmem:[%s5733_s16 + $0x48] sm:$0x3] %vm795_vm2, %v2695_v10 }
 0xe43   :  { %v2687_v37 = vpop.permute.xlu1 %2686  ;;  %v2725_v2 = vrot.slane %v2718_v41, 2 }
 0xe44   :  { %v2694_v33 = vadd.f32 %v5064_v17, %v2687_v37  ;;  %v2708_v6 = vpop.permute.xlu0 %2707  ;;  %2664 = vrot.lane.b32.xlu0 %v2661_v16, %s3609_s5  ;;  %2666 = vrot.lane.b32.xlu1 %v2663_v39, %s3609_s5  ;;  %v2754_v17 = vadd.f32 %v2746_v45, %v5092_v18 }
 0xe45   :  { %v2716_v59 = vadd.f32 %v5072_v8, %v2708_v6 }
 0xe46   :  { %2697 = vst.msk [vmem:[%s5733_s16 + $0x28] sm:$0xff] %vm792_vm1, %v2694_v33  ;;  %v2760_v8 = vrot.slane %v2754_v17, 4 }
 0xe47   :  { %v2710_v26 = vpop.permute.xlu1 %2709  ;;  %v2722_v58 = vrot.slane %v2716_v59, 2 }
 0xe48   :  { %v2717_v63 = vadd.f32 %v2710_v26, %v5084_v54  ;;  %v2788_v5 = vpop.permute.xlu0 %2787  ;;  %2731 = vrot.lane.b32.xlu0 %v2725_v2, %s3610_s6 }
 0xe49   :  { %v2794_v53 = vadd.f32 %v2788_v5, %v5111_v60 }
 0xe4a   :  { %v2723_v12 = vrot.slane %v2717_v63, 2 }
 0xe4b   :  { %v2748_v43 = vpop.permute.xlu1 %2747  ;;  %v2801_v47 = vrot.slane %v2794_v53, 6 }
 0xe4c   :  { %v2755_v51 = vadd.f32 %v5080_v55, %v2748_v43  ;;  %v2784_v48 = vpop.permute.xlu0 %2783  ;;  %v2724_v30 = vsel %vm458_vm8, %v2722_v58, %v2723_v12  ;;  %v2726_v35 = vsel %vm458_vm8, %v2723_v12, %v2725_v2 }
 0xe4d   :  { %2727 = vrot.lane.b32.xlu0 %v2724_v30, %s3610_s6  ;;  %2729 = vrot.lane.b32.xlu1 %v2726_v35, %s3610_s6  ;;  %v2792_v32 = vadd.f32 %v5089_v56, %v2784_v48 }
 0xe4e   :  { %v2761_v54 = vrot.slane %v2755_v51, 4 }
 0xe4f   :  { %v2786_v29 = vpop.permute.xlu1 %2785 }
 0xe50   :  { %v2793_v18 = vadd.f32 %v2786_v29, %v5102_v52  ;;  %v2750_v31 = vpop.permute.xlu0 %2749  ;;  %v2762_v28 = vsel %vm250_vm7, %v2760_v8, %v2761_v54  ;;  %v2798_v52 = vrot.slane %v2792_v32, 6 }
 0xe51   :  { %v2756_v55 = vadd.f32 %v5089_v56, %v2750_v31  ;;  %2765 = vrot.lane.b32.xlu1 %v2762_v28, %s3605_s26 }
 0xe52   :  { %v2799_v38 = vrot.slane %v2793_v18, 6 }
 0xe53   :  { %v2763_v7 = vrot.slane %v2756_v55, 4  ;;  %v2845_v45 = vpop.permute.xlu1 %2844 }
 0xe54   :  { %v2822_v11 = vpop.permute.xlu0 %2821  ;;  %v2853_v60 = vadd.f32 %v2845_v45, %v5118_v46  ;;  %v2802_v16 = vsel %vm2558_vm15, %v2799_v38, %v2801_v47 }
 0xe55   :  { %v2830_v21 = vadd.f32 %v5098_v19, %v2822_v11  ;;  %2769 = vrot.lane.b32.xlu0 %v2763_v7, %s3605_s26  ;;  %2807 = vrot.lane.b32.xlu1 %v2801_v47, %s3609_s5  ;;  %v2764_v10 = vsel %vm250_vm7, %v2761_v54, %v2763_v7  ;;  %v2800_v19 = vsel %vm2558_vm15, %v2798_v52, %v2799_v38 }
 0xe56   :  { %v2859_v61 = vrot.slane %v2853_v60, 2 }
 0xe57   :  { %2833 = vst.msk [vmem:[%s5733_s16 + $0x10] sm:$0xff] %vm792_vm1, %v2830_v21  ;;  %v2824_v56 = vpop.permute.xlu1 %2823 }
 0xe58   :  { %v2831_v23 = vadd.f32 %v5108_v9, %v2824_v56  ;;  %v2847_v36 = vpop.permute.xlu0 %2846 }
 0xe59   :  { %v2854_v44 = vadd.f32 %v2847_v36, %v5129_v22  ;;  %2767 = vrot.lane.b32.xlu0 %v2764_v10, %s3605_s26  ;;  %2803 = vrot.lane.b32.xlu1 %v2800_v19, %s3609_s5 }
 0xe5a   :  { %2834 = vst.msk [vmem:[%s5733_s16 + $0x30] sm:$0xff] %vm792_vm1, %v2831_v23 }
 0xe5b   :  { %v2860_v41 = vrot.slane %v2854_v44, 2  ;;  %v2921_v37 = vpop.permute.xlu1 %2920 }
 0xe5c   :  { %v2826_v9 = vpop.permute.xlu0 %2825 }
 0xe5d   :  { %v2832_v39 = vadd.f32 %v2826_v9, %v5118_v46  ;;  %2805 = vrot.lane.b32.xlu0 %v2802_v16, %s3609_s5  ;;  %v2861_v22 = vsel %vm458_vm8, %v2859_v61, %v2860_v41  ;;  %v2929_v46 = vadd.f32 %v2921_v37, %v5138_v3 }
 0xe5e   :  { %2864 = vrot.lane.b32.xlu1 %v2861_v22, %s3610_s6 }
 0xe5f   :  { %2835 = vst.msk [vmem:[%s5733_s16 + $0x50] sm:$0x3] %vm795_vm2, %v2832_v39  ;;  %v2849_v33 = vpop.permute.xlu1 %2848  ;;  %v2935_v30 = vrot.slane %v2929_v46, 6 }
 0xe60   :  { %v2855_v6 = vadd.f32 %v5116_v57, %v2849_v33  ;;  %v2883_v2 = vpop.permute.xlu0 %2882 }
 0xe61   :  { %v2891_v8 = vadd.f32 %v5116_v57, %v2883_v2 }
 0xe62   :  { %v2862_v59 = vrot.slane %v2855_v6, 2 }
 0xe63   :  { %v2885_v26 = vpop.permute.xlu1 %2884 }
 0xe64   :  { %v2923_v63 = vpop.permute.xlu0 %2922  ;;  %2868 = vrot.lane.b32.xlu0 %v2862_v59, %s3610_s6  ;;  %v2863_v12 = vsel %vm458_vm8, %v2860_v41, %v2862_v59  ;;  %v2892_v43 = vadd.f32 %v5125_v49, %v2885_v26 }
 0xe65   :  { %v2930_v5 = vadd.f32 %v2923_v63, %v5152_v24 }
 0xe66   :  { %v2898_v49 = vrot.slane %v2892_v43, 4 }
 0xe67   :  { %v2936_v17 = vrot.slane %v2930_v5, 6  ;;  %v2963_v58 = vpop.permute.xlu1 %2962 }
 0xe68   :  { %v2969_v51 = vadd.f32 %v2963_v58, %v5178_v62  ;;  %v2887_v48 = vpop.permute.xlu0 %2886  ;;  %2866 = vrot.lane.b32.xlu0 %v2863_v12, %s3610_s6 }
 0xe69   :  { %v2893_v35 = vadd.f32 %v2887_v48, %v5138_v3  ;;  %v2937_v53 = vsel %vm2558_vm15, %v2935_v30, %v2936_v17  ;;  %v2897_v3 = vrot.slane %v2891_v8, 4 }
 0xe6a   :  { %2972 = vst.msk [vmem:[%s5733_s16 + $0x58] sm:$0x3] %vm795_vm2, %v2969_v51 }
 0xe6b   :  { %v2900_v24 = vrot.slane %v2893_v35, 4  ;;  %v2925_v54 = vpop.permute.xlu1 %2924  ;;  %v2899_v47 = vsel %vm250_vm7, %v2897_v3, %v2898_v49 }
 0xe6c   :  { %v2931_v29 = vadd.f32 %v5135_v50, %v2925_v54  ;;  %v2982_v18 = vpop.permute.xlu0 %2981  ;;  %2940 = vrot.lane.b32.xlu0 %v2937_v53, %s3609_s5 }
 0xe6d   :  { %2906 = vrot.lane.b32.xlu1 %v2900_v24, %s3605_s26  ;;  %v2901_v57 = vsel %vm250_vm7, %v2898_v49, %v2900_v24  ;;  %v2990_v50 = vadd.f32 %v2982_v18, %v5178_v62 }
 0xe6e   :  { %v2938_v28 = vrot.slane %v2931_v29, 6 }
 0xe6f   :  { %v2959_v31 = vpop.permute.xlu1 %2958  ;;  %v2996_v62 = vrot.slane %v2990_v50, 2 }
 0xe70   :  { %v2967_v55 = vadd.f32 %v5145_v42, %v2959_v31  ;;  %v2961_v32 = vpop.permute.xlu0 %2960  ;;  %2904 = vrot.lane.b32.xlu0 %v2901_v57, %s3605_s26 }
 0xe71   :  { %v2968_v7 = vadd.f32 %v2961_v32, %v5164_v4  ;;  %2902 = vrot.lane.b32.xlu1 %v2899_v47, %s3605_s26  ;;  %v2939_v4 = vsel %vm2558_vm15, %v2936_v17, %v2938_v28 }
 0xe72   :  { %2970 = vst.msk [vmem:[%s5733_s16 + $0x18] sm:$0xff] %vm792_vm1, %v2967_v55 }
 0xe73   :  { %2971 = vst.msk [vmem:[%s5733_s16 + $0x38] sm:$0xff] %vm792_vm1, %v2968_v7  ;;  %v2984_v42 = vpop.permute.xlu1 %2983  ;;  %vm2593_vm1 = vcmask 523520  }
 0xe74   :  { %v2991_v45 = vadd.f32 %v5157_v0, %v2984_v42  ;;  %v3057_v38 = vpop.permute.xlu0 %3056  ;;  %2944 = vrot.lane.b32.xlu0 %v2938_v28, %s3609_s5 }
 0xe75   :  { %2942 = vrot.lane.b32.xlu1 %v2939_v4, %s3609_s5 }
 0xe76   :  { %v2997_v11 = vrot.slane %v2991_v45, 2 }
 0xe77   :  { %v3024_v21 = vpop.permute.xlu1 %3023 }
 0xe78   :  { %v3030_v52 = vadd.f32 %v3024_v21, %v5206_v40  ;;  %v2986_v60 = vpop.permute.xlu0 %2985  ;;  %v2998_v56 = vsel %vm458_vm8, %v2996_v62, %v2997_v11 }
 0xe79   :  { %v2992_v23 = vadd.f32 %v5172_v34, %v2986_v60  ;;  %3001 = vrot.lane.b32.xlu0 %v2998_v56, %s3610_s6 }
 0xe7a   :  { %v3037_v0 = vrot.slane %v3030_v52, 4 }
 0xe7b   :  { %v2999_v36 = vrot.slane %v2992_v23, 2  ;;  %v3020_v10 = vpop.permute.xlu1 %3019 }
 0xe7c   :  { %v3028_v19 = vadd.f32 %v5172_v34, %v3020_v10  ;;  %v3022_v44 = vpop.permute.xlu0 %3021 }
 0xe7d   :  { %v3029_v61 = vadd.f32 %v3022_v44, %v5192_v27  ;;  %3043 = vrot.lane.b32.xlu0 %v3037_v0, %s3605_s26  ;;  %3005 = vrot.lane.b32.xlu1 %v2999_v36, %s3610_s6  ;;  %v3000_v22 = vsel %vm458_vm8, %v2997_v11, %v2999_v36  ;;  %v3065_v27 = vadd.f32 %v3057_v38, %v5206_v40  ;;  %vm2536_vm8 = vcmask 261121  }
 0xe7e   :  { %v3034_v41 = vrot.slane %v3028_v19, 4 }
 0xe7f   :  { %v3035_v37 = vrot.slane %v3029_v61, 4  ;;  %v3059_v9 = vpop.permute.xlu1 %3058  ;;  %v3071_v5 = vrot.slane %v3065_v27, 6 }
 0xe80   :  { %v3066_v16 = vadd.f32 %v5186_v14, %v3059_v9  ;;  %v2531_v39 = vpop.permute.xlu0 %2530 }
 0xe81   :  { %v2535_v33 = vadd.f32 %v2531_v39, %v5034_v13  ;;  %3003 = vrot.lane.b32.xlu1 %v3000_v22, %s3610_s6  ;;  %v3036_v34 = vsel %vm250_vm7, %v3034_v41, %v3035_v37  ;;  %v3038_v63 = vsel %vm250_vm7, %v3035_v37, %v3037_v0  ;;  %vm2596_vm7 = vcmask 517376  }
 0xe82   :  { %3039 = vrot.lane.b32.xlu0 %v3036_v34, %s3605_s26  ;;  %v3072_v2 = vrot.slane %v3066_v16, 6 }
 0xe83   :  { %2538 = vst.msk [vmem:[%s5733_s16 + $0x20] sm:$0x1] %vm2520_vm14, %v2535_v33  ;;  %v2547_v6 = vpop.permute.xlu1 %2546 }
 0xe84   :  { %v2552_v59 = vadd.f32 %v2547_v6, %v5034_v13  ;;  %v2549_v26 = vpop.permute.xlu0 %2548 }
 0xe85   :  { %v2553_v46 = vadd.f32 %v5019_v15, %v2549_v26  ;;  %3041 = vrot.lane.b32.xlu1 %v3038_v63, %s3605_s26  ;;  %v3073_v15 = vsel %vm2558_vm15, %v3071_v5, %v3072_v2 }
 0xe86   :  { %2554 = vst.msk [vmem:[%s5733_s16 + $0x20] sm:$0xfc] %vm837_vm3, %v2552_v59  ;;  %vm2633_vm3 = vcmask 785920  }
 0xe87   :  { %2555 = vst.msk [vmem:[%s5733_s16 + $0x40] sm:$0x3] %vm795_vm2, %v2553_v46  ;;  %v2529_v13 = vpop.permute.xlu1 %2528 }
 0xe88   :  { %v2534_v40 = vadd.f32 %v2529_v13, %v5022_v20  ;;  %v3061_v17 = vpop.permute.xlu0 %3060 }
 0xe89   :  { %v3067_v58 = vadd.f32 %v5198_v1, %v3061_v17  ;;  %3076 = vrot.lane.b32.xlu1 %v3073_v15, %s3609_s5 }
 0xe8a   :  { %2537 = vst.msk [vmem:[%s5733_s16] sm:$0xfe] %vm2536_vm8, %v2534_v40 }
 0xe8b   :  { %v3074_v12 = vrot.slane %v3067_v58, 6 }
 0xe8d   :  { %3080 = vrot.lane.b32.xlu1 %v3074_v12, %s3609_s5  ;;  %v3075_v43 = vsel %vm2558_vm15, %v3072_v2, %v3074_v12 }
 0xe8e   :  { %3078 = vrot.lane.b32.xlu0 %v3075_v43, %s3609_s5 }
 0xe91   :  { %3092 = vrot.lane.b32.xlu1 %v5198_v1, %s3609_s5 }
 0xe92   :  { %3088 = vrot.lane.b32.xlu0 %v5186_v14, %s3609_s5 }
 0xea4   :  { %v2625_v20 = vpop.permute.xlu0 %2624 }
 0xea6   :  { %v2589_v51 = vpop.permute.xlu1 %2588 }
 0xea7   :  { %2597 = vst.msk [vmem:[%s5733_s16 + $0x40] sm:$0x3] %vm2596_vm7, %v2589_v51 }
 0xea8   :  { %v2585_v48 = vpop.permute.xlu0 %2584 }
 0xea9   :  { %2594 = vst.msk [vmem:[%s5733_s16] sm:$0xff] %vm2593_vm1, %v2585_v48 }
 0xeaa   :  { %v2587_v1 = vpop.permute.xlu1 %2586  ;;  %2634 = vst.msk [vmem:[%s5733_s16] sm:$0xff] %vm2633_vm3, %v2625_v20 }
 0xeab   :  { %2595 = vst.msk [vmem:[%s5733_s16 + $0x20] sm:$0xff] %vm2593_vm1, %v2587_v1 }
 0xeae   :  { %v2629_v14 = vpop.permute.xlu1 %2628 }
 0xeaf   :  { %2637 = vst.msk [vmem:[%s5733_s16 + $0x40] sm:$0x3] %vm2636_vm4, %v2629_v14 }
 0xeb2   :  { %v2669_v30 = vpop.permute.xlu0 %2668  ;;  %v2627_v35 = vpop.permute.xlu1 %2626 }
 0xeb3   :  { %2677 = vst.msk [vmem:[%s5733_s16 + $0x40] sm:$0x3] %vm2676_vm5, %v2669_v30 }
 0xeb4   :  { %2635 = vst.msk [vmem:[%s5733_s16 + $0x20] sm:$0xff] %vm2633_vm3, %v2627_v35 }
 0xeb6   :  { %v2665_v8 = vpop.permute.xlu0 %2664  ;;  %v2667_v24 = vpop.permute.xlu1 %2666 }
 0xeb7   :  { %2674 = vst.msk [vmem:[%s5733_s16] sm:$0xff] %vm2673_vm6, %v2665_v8  ;;  %2675 = vst.msk [vmem:[%s5733_s16 + $0x20] sm:$0xff] %vm2673_vm6, %v2667_v24 }
 0xeba   :  { %v2732_v54 = vpop.permute.xlu0 %2731  ;;  %v5565_v6 = vld [vmem:[%s5733_s16 + $0x40] sm:$0x3] }
 0xebb   :  { %2738 = vst.msk [vmem:[%s5733_s16 + $0x48] sm:$0x3] %vm2596_vm7, %v2732_v54  ;;  %v3158_v15 = vmul.f32 %v5565_v6, %v5565_v6  ;;  %v3110_v58 = vsel %vm2558_vm15, %v5565_v6, 0.0 }
 0xebd   :  { %v3163_v24 = vsel %vm2558_vm15, %v3158_v15, 0.0 }
 0xebe   :  { %v5424_v53 = vld [vmem:[%s5733_s16] sm:$0xff] }
 0xebf   :  { %v5429_v49 = vld [vmem:[%s5733_s16 + $0x20] sm:$0xff]  ;;  %v2728_v29 = vpop.permute.xlu0 %2727  ;;  %v2730_v18 = vpop.permute.xlu1 %2729  ;;  %v3205_v3 = vsel %vm3204_vm9, %v5424_v53, 0.0  ;;  %v3150_v57 = vmul.f32 %v5424_v53, %v5424_v53 }
 0xec0   :  { %v3216_v31 = vsel %vm3215_vm12, %v5429_v49, 0.0  ;;  %2736 = vst.msk [vmem:[%s5733_s16 + $0x8] sm:$0xff] %vm2593_vm1, %v2728_v29  ;;  %2737 = vst.msk [vmem:[%s5733_s16 + $0x28] sm:$0xff] %vm2593_vm1, %v2730_v18  ;;  %3206 = vadd.xlane.f32.xlu1 %v3205_v3  ;;  %v3154_v28 = vmul.f32 %v5429_v49, %v5429_v49  ;;  %v3109_v27 = vadd.f32 %v5429_v49, %v5424_v53 }
 0xec1   :  { %3217 = vadd.xlane.f32.xlu0 %v3216_v31  ;;  %v3210_v47 = vsel %vm3204_vm9, %v3150_v57, 0.0 }
 0xec2   :  { %v5447_v55 = vadd.f32 %v3154_v28, %v3150_v57  ;;  %v3224_v7 = vsel %vm3215_vm12, %v3154_v28, 0.0  ;;  %v3111_v20 = vadd.f32 %v3110_v58, %v3109_v27 }
 0xec3   :  { %v2766_v32 = vpop.permute.xlu1 %2765 }
 0xec4   :  { %2774 = vst.msk [vmem:[%s5733_s16 + $0x8] sm:$0xff] %vm2633_vm3, %v2766_v32  ;;  %3211 = vadd.xlane.f32.xlu1 %v3210_v47  ;;  %v3164_v54 = vadd.f32 %v3163_v24, %v5447_v55  ;;  %v3112_v29 = vrot.slane %v3111_v20, 4 }
 0xec5   :  { %3225 = vadd.xlane.f32.xlu0 %v3224_v7 }
 0xec6   :  { %v3165_v55 = vrot.slane %v3164_v54, 4  ;;  %v3113_v7 = vadd.f32 %v3112_v29, %v3111_v20 }
 0xec7   :  { %v2770_v50 = vpop.permute.xlu0 %2769  ;;  %v2808_v42 = vpop.permute.xlu1 %2807 }
 0xec8   :  { %2776 = vst.msk [vmem:[%s5733_s16 + $0x48] sm:$0x3] %vm2636_vm4, %v2770_v50 }
 0xec9   :  { %2814 = vst.msk [vmem:[%s5733_s16 + $0x48] sm:$0x3] %vm2676_vm5, %v2808_v42 }
 0xecb   :  { %v2768_v45 = vpop.permute.xlu0 %2767  ;;  %v2804_v38 = vpop.permute.xlu1 %2803 }
 0xecc   :  { %2775 = vst.msk [vmem:[%s5733_s16 + $0x28] sm:$0xff] %vm2633_vm3, %v2768_v45 }
 0xecd   :  { %2812 = vst.msk [vmem:[%s5733_s16 + $0x8] sm:$0xff] %vm2673_vm6, %v2804_v38 }
 0xecf   :  { %v2806_v4 = vpop.permute.xlu0 %2805 }
 0xed0   :  { %2813 = vst.msk [vmem:[%s5733_s16 + $0x28] sm:$0xff] %vm2673_vm6, %v2806_v4  ;;  %v2865_v62 = vpop.permute.xlu1 %2864  ;;  %v5545_v39 = vld [vmem:[%s5733_s16 + $0x48] sm:$0x3] }
 0xed1   :  { %2873 = vst.msk [vmem:[%s5733_s16 + $0x10] sm:$0xff] %vm2593_vm1, %v2865_v62  ;;  %v3119_v46 = vsel %vm2558_vm15, %v5545_v39, 0.0  ;;  %v3159_v13 = vmul.f32 %v5545_v39, %v5545_v39 }
 0xed3   :  { %v3172_v14 = vsel %vm2558_vm15, %v3159_v13, 0.0 }
 0xed4   :  { %v5531_v37 = vld [vmem:[%s5733_s16 + $0x8] sm:$0xff] }
 0xed5   :  { %v3151_v26 = vmul.f32 %v5531_v37, %v5531_v37 }
 0xed6   :  { %v2869_v11 = vpop.permute.xlu0 %2868 }
 0xed7   :  { %2875 = vst.msk [vmem:[%s5733_s16 + $0x50] sm:$0x3] %vm2596_vm7, %v2869_v11  ;;  %v5526_v61 = vld [vmem:[%s5733_s16 + $0x28] sm:$0xff]  ;;  %v3166_v11 = vadd.f32 %v3165_v55, %v3164_v54 }
 0xed8   :  { %v3118_v22 = vadd.f32 %v5526_v61, %v5531_v37  ;;  %v3155_v33 = vmul.f32 %v5526_v61, %v5526_v61 }
 0xeda   :  { %v2867_v21 = vpop.permute.xlu0 %2866  ;;  %v3120_v40 = vadd.f32 %v3119_v46, %v3118_v22  ;;  %v3171_v17 = vadd.f32 %v3155_v33, %v3151_v26  ;;  %v3167_v22 = vrot.slane %v3166_v11, 2 }
 0xedb   :  { %2874 = vst.msk [vmem:[%s5733_s16 + $0x30] sm:$0xff] %vm2593_vm1, %v2867_v21 }
 0xedc   :  { %v3121_v35 = vrot.slane %v3120_v40, 4  ;;  %v3173_v8 = vadd.f32 %v3172_v14, %v3171_v17  ;;  %v3168_v20 = vadd.f32 %v3167_v22, %v3166_v11 }
 0xede   :  { %v2941_v52 = vpop.permute.xlu0 %2940  ;;  %v3122_v32 = vadd.f32 %v3121_v35, %v3120_v40  ;;  %v3174_v47 = vrot.slane %v3173_v8, 4 }
 0xedf   :  { %v2907_v60 = vpop.permute.xlu1 %2906 }
 0xee0   :  { %2913 = vst.msk [vmem:[%s5733_s16 + $0x50] sm:$0x3] %vm2636_vm4, %v2907_v60  ;;  %v3123_v4 = vrot.slane %v3122_v32, 2  ;;  %v3175_v62 = vadd.f32 %v3174_v47, %v3173_v8 }
 0xee2   :  { %v2905_v56 = vpop.permute.xlu0 %2904 }
 0xee3   :  { %2912 = vst.msk [vmem:[%s5733_s16 + $0x30] sm:$0xff] %vm2633_vm3, %v2905_v56  ;;  %v2903_v23 = vpop.permute.xlu1 %2902 }
 0xee4   :  { %2911 = vst.msk [vmem:[%s5733_s16 + $0x10] sm:$0xff] %vm2633_vm3, %v2903_v23 }
 0xee5   :  { %2949 = vst.msk [vmem:[%s5733_s16 + $0x10] sm:$0xff] %vm2673_vm6, %v2941_v52  ;;  %v3114_v52 = vrot.slane %v3113_v7, 2 }
 0xee6   :  { %v2945_v0 = vpop.permute.xlu0 %2944 }
 0xee7   :  { %2951 = vst.msk [vmem:[%s5733_s16 + $0x50] sm:$0x3] %vm2676_vm5, %v2945_v0  ;;  %v2943_v36 = vpop.permute.xlu1 %2942  ;;  %v3115_v33 = vadd.f32 %v3114_v52, %v3113_v7 }
 0xee8   :  { %2950 = vst.msk [vmem:[%s5733_s16 + $0x30] sm:$0xff] %vm2673_vm6, %v2943_v36  ;;  %v3124_v36 = vadd.f32 %v3123_v4, %v3122_v32  ;;  %v3169_v32 = vrot.slane %v3168_v20, 1 }
 0xeeb   :  { %v3002_v10 = vpop.permute.xlu0 %3001 }
 0xeec   :  { %3010 = vst.msk [vmem:[%s5733_s16 + $0x18] sm:$0xff] %vm2593_vm1, %v3002_v10  ;;  %v5558_v34 = vld [vmem:[%s5733_s16 + $0x10] sm:$0xff] }
 0xeed   :  { %v3152_v43 = vmul.f32 %v5558_v34, %v5558_v34 }
 0xeee   :  { %v5570_v2 = vld [vmem:[%s5733_s16 + $0x50] sm:$0x3] }
 0xeef   :  { %v3044_v19 = vpop.permute.xlu0 %3043  ;;  %v3006_v44 = vpop.permute.xlu1 %3005  ;;  %v5536_v9 = vld [vmem:[%s5733_s16 + $0x30] sm:$0xff]  ;;  %v3128_v12 = vsel %vm2558_vm15, %v5570_v2, 0.0  ;;  %v3160_v48 = vmul.f32 %v5570_v2, %v5570_v2 }
 0xef0   :  { %3012 = vst.msk [vmem:[%s5733_s16 + $0x58] sm:$0x3] %vm2596_vm7, %v3006_v44  ;;  %v3127_v59 = vadd.f32 %v5536_v9, %v5558_v34  ;;  %v3156_v5 = vmul.f32 %v5536_v9, %v5536_v9 }
 0xef1   :  { %3050 = vst.msk [vmem:[%s5733_s16 + $0x58] sm:$0x3] %vm2636_vm4, %v3044_v19  ;;  %v3181_v3 = vsel %vm2558_vm15, %v3160_v48, 0.0  ;;  %v3176_v19 = vrot.slane %v3175_v62, 2 }
 0xef2   :  { %v3129_v51 = vadd.f32 %v3128_v12, %v3127_v59  ;;  %v3180_v30 = vadd.f32 %v3156_v5, %v3152_v43  ;;  %v3125_v5 = vrot.slane %v3124_v36, 1 }
 0xef3   :  { %v3004_v41 = vpop.permute.xlu1 %3003  ;;  %v3177_v40 = vadd.f32 %v3176_v19, %v3175_v62 }
 0xef4   :  { %3011 = vst.msk [vmem:[%s5733_s16 + $0x38] sm:$0xff] %vm2593_vm1, %v3004_v41  ;;  %v3040_v16 = vpop.permute.xlu0 %3039  ;;  %v3130_v18 = vrot.slane %v3129_v51, 4  ;;  %v3182_v57 = vadd.f32 %v3181_v3, %v3180_v30  ;;  %v3126_v29 = vadd.f32 %v3125_v5, %v3124_v36 }
 0xef5   :  { %3048 = vst.msk [vmem:[%s5733_s16 + $0x18] sm:$0xff] %vm2633_vm3, %v3040_v16  ;;  %v3178_v3 = vrot.slane %v3177_v40, 1 }
 0xef6   :  { %v3131_v50 = vadd.f32 %v3130_v18, %v3129_v51  ;;  %v3183_v45 = vrot.slane %v3182_v57, 4  ;;  %v3116_v51 = vrot.slane %v3115_v33, 1 }
 0xef7   :  { %v3042_v63 = vpop.permute.xlu1 %3041  ;;  %v3179_v11 = vadd.f32 %v3178_v3, %v3177_v40 }
 0xef8   :  { %3049 = vst.msk [vmem:[%s5733_s16 + $0x38] sm:$0xff] %vm2633_vm3, %v3042_v63  ;;  %v3132_v60 = vrot.slane %v3131_v50, 2  ;;  %v3184_v23 = vadd.f32 %v3183_v45, %v3182_v57  ;;  %v3117_v57 = vadd.f32 %v3116_v51, %v3115_v33 }
 0xefa   :  { %v3133_v27 = vadd.f32 %v3132_v60, %v3131_v50  ;;  %v3185_v63 = vrot.slane %v3184_v23, 2  ;;  %v3145_v62 = vadd.f32 %v3126_v29, %v3117_v57 }
 0xefb   :  { %v3077_v1 = vpop.permute.xlu1 %3076 }
 0xefc   :  { %3085 = vst.msk [vmem:[%s5733_s16 + $0x18] sm:$0xff] %vm2673_vm6, %v3077_v1  ;;  %v3134_v48 = vrot.slane %v3133_v27, 1  ;;  %v3186_v30 = vadd.f32 %v3185_v63, %v3184_v23  ;;  %v3170_v23 = vadd.f32 %v3169_v32, %v3168_v20 }
 0xefe   :  { %v3135_v55 = vadd.f32 %v3134_v48, %v3133_v27  ;;  %v3187_v50 = vrot.slane %v3186_v30, 1  ;;  %v3198_v27 = vadd.f32 %v3179_v11, %v3170_v23 }
 0xeff   :  { %v3081_v31 = vpop.permute.xlu1 %3080 }
 0xf00   :  { %3087 = vst.msk [vmem:[%s5733_s16 + $0x58] sm:$0x3] %vm2676_vm5, %v3081_v31  ;;  %v3079_v28 = vpop.permute.xlu0 %3078  ;;  %v3146_v19 = vadd.f32 %v3145_v62, %v3135_v55 }
 0xf01   :  { %3086 = vst.msk [vmem:[%s5733_s16 + $0x38] sm:$0xff] %vm2673_vm6, %v3079_v28 }
 0xf03   :  { %v3093_v42 = vpop.permute.xlu1 %3092  ;;  %v5623_v21 = vld [vmem:[%s5733_s16 + $0x18] sm:$0xff] }
 0xf04   :  { %3095 = vst.msk [vmem:[%s5734_s17 - $0x6] sm:$0x80] %vm974_vm10, %v3093_v42  ;;  %v3089_v38 = vpop.permute.xlu0 %3088  ;;  %vm3231_vm10 = vcmask 189440   ;;  %v3153_v41 = vmul.f32 %v5623_v21, %v5623_v21 }
 0xf05   :  { %3091 = vst.msk [vmem:[%s5734_s17 - $0x6] sm:$0x40] %vm954_vm11, %v3089_v38  ;;  %vm3239_vm11 = vcmask 195584  }
 0xf07   :  { %v5628_v56 = vld [vmem:[%s5733_s16 + $0x58] sm:$0x3] }
 0xf08   :  { %v5633_v0 = vld [vmem:[%s5733_s16 + $0x38] sm:$0xff]  ;;  %v3161_v10 = vmul.f32 %v5628_v56, %v5628_v56  ;;  %v3137_v59 = vsel %vm2558_vm15, %v5628_v56, 0.0 }
 0xf09   :  { %v3136_v44 = vadd.f32 %v5633_v0, %v5623_v21  ;;  %v3157_v16 = vmul.f32 %v5633_v0, %v5633_v0 }
 0xf0a   :  { %v3190_v17 = vsel %vm2558_vm15, %v3161_v10, 0.0 }
 0xf0b   :  { %v3138_v26 = vadd.f32 %v3137_v59, %v3136_v44  ;;  %v3189_v46 = vadd.f32 %v3157_v16, %v3153_v41  ;;  %v3188_v44 = vadd.f32 %v3187_v50, %v3186_v30 }
 0xf0c   :  { %v5648_v13 = vld [vmem:[%s5734_s17] sm:$0x3] }
 0xf0d   :  { %v3139_v15 = vrot.slane %v3138_v26, 4  ;;  %v3232_v58 = vsel %vm3231_vm10, %v5648_v13, 0.0  ;;  %v3191_v12 = vadd.f32 %v3190_v17, %v3189_v46  ;;  %v3244_v43 = vmul.f32 %v5648_v13, %v5648_v13 }
 0xf0e   :  { %v3233_v1 = vrot.slane %v3232_v58, 4  ;;  %v3199_v63 = vadd.f32 %v3198_v27, %v3188_v44  ;;  %v23_v17 = vstv %s5735_s14 }
 0xf0f   :  { %v3140_v14 = vadd.f32 %v3139_v15, %v3138_v26  ;;  %v3192_v35 = vrot.slane %v3191_v12, 4  ;;  %v3245_v8 = vsel %vm3231_vm10, %v3244_v43, 0.0  ;;  %24 = vst [vmem:[#allocation6] sm:$0x1] %v23_v17  ;;  %v25_v15 = vstv %s5736_s15 }
 0xf10   :  { %v3234_v24 = vadd.f32 %v3233_v1, %v3232_v58  ;;  %v3246_v54 = vrot.slane %v3245_v8, 4  ;;  %26 = vst [vmem:[#allocation7] sm:$0x1] %v25_v15 }
 0xf11   :  { %v3141_v18 = vrot.slane %v3140_v14, 2  ;;  %v3193_v31 = vadd.f32 %v3192_v35, %v3191_v12 }
 0xf12   :  { %v3235_v28 = vrot.slane %v3234_v24, 2  ;;  %v3247_v47 = vadd.f32 %v3246_v54, %v3245_v8 }
 0xf13   :  { %v3142_v7 = vadd.f32 %v3141_v18, %v3140_v14  ;;  %v3194_v42 = vrot.slane %v3193_v31, 2 }
 0xf14   :  { %v3236_v45 = vadd.f32 %v3235_v28, %v3234_v24  ;;  %v3248_v38 = vrot.slane %v3247_v47, 2 }
 0xf15   :  { %v3143_v4 = vrot.slane %v3142_v7, 1  ;;  %v3195_v52 = vadd.f32 %v3194_v42, %v3193_v31 }
 0xf16   :  { %v3237_v60 = vrot.slane %v3236_v45, 1  ;;  %v3249_v36 = vadd.f32 %v3248_v38, %v3247_v47 }
 0xf17   :  { %v3144_v10 = vadd.f32 %v3143_v4, %v3142_v7  ;;  %v3196_v41 = vrot.slane %v3195_v52, 1  ;;  %v3262_v7 = vld [vmem:[#allocation6] sm:$0x1] }
 0xf18   :  { %v3238_v16 = vadd.f32 %v3237_v60, %v3236_v45  ;;  %v3250_v26 = vrot.slane %v3249_v36, 1  ;;  %v3266_v45 = vld [vmem:[#allocation7] sm:$0x1] }
 0xf19   :  { %v3147_v22 = vadd.f32 %v3146_v19, %v3144_v10  ;;  %v3197_v33 = vadd.f32 %v3196_v41, %v3195_v52 }
 0xf1a   :  { %v3240_v59 = vsel %vm3239_vm11, %v3238_v16, 0.0  ;;  %v3251_v5 = vadd.f32 %v3250_v26, %v3249_v36 }
 0xf1b   :  { %3148 = vadd.xlane.f32.xlu0 %v3147_v22  ;;  %3241 = vadd.xlane.f32.xlu1 %v3240_v59  ;;  %v3200_v46 = vadd.f32 %v3199_v63, %v3197_v33 }
 0xf1c   :  { %v3252_v40 = vsel %vm3239_vm11, %v3251_v5, 0.0 }
 0xf1f   :  { %3201 = vadd.xlane.f32.xlu0 %v3200_v46 }
 0xf23   :  { %3253 = vadd.xlane.f32.xlu0 %v3252_v40 }
 0xf49   :  { %v3207_v12 = vpop.xlane.xlu1 %3206 }
 0xf4a   :  { %v3218_v58 = vpop.xlane.xlu0 %3217 }
 0xf4b   :  { %v3220_v48 = vrot.slane %v3218_v58, 1 }
 0xf4d   :  { %v3212_v20 = vpop.xlane.xlu1 %3211 }
 0xf4e   :  { %v3226_v43 = vpop.xlane.xlu0 %3225 }
 0xf4f   :  { %v3228_v8 = vrot.slane %v3226_v43, 1 }
 0xfa4   :  { %v3149_v51 = vpop.xlane.xlu0 %3148  ;;  %v3242_v30 = vpop.xlane.xlu1 %3241 }
 0xfa5   :  { %v3208_v1 = vsub.f32 %v3149_v51, %v3207_v12 }
 0xfa7   :  { %v3222_v14 = vsub.f32 %v3208_v1, %v3220_v48 }
 0xfa8   :  { %v3202_v35 = vpop.xlane.xlu0 %3201 }
 0xfa9   :  { %v3243_v24 = vadd.f32 %v3242_v30, %v3222_v14  ;;  %v3213_v54 = vsub.f32 %v3202_v35, %v3212_v20 }
 0xfab   :  { %v3257_v29 = vmul.f32 0.000108506945, %v3243_v24  ;;  %v3230_v18 = vsub.f32 %v3213_v54, %v3228_v8 }
 0xfac   :  { %v3254_v3 = vpop.xlane.xlu0 %3253 }
 0xfad   :  { %v3255_v31 = vadd.f32 %v3254_v3, %v3230_v18  ;;  %v3259_v57 = vmul.f32 %v3257_v29, %v3257_v29 }
 0xfaf   :  { %v3258_v28 = vmul.f32 0.000108506945, %v3255_v31 }
 0xfb1   :  { %v3260_v32 = vsub.f32 %v3258_v28, %v3259_v57 }
 0xfb3   :  { %v3261_v47 = vmax.f32 %v3260_v32, 0.0 }
 0xfb5   :  { %v3263_v55 = vadd.f32 1e-05, %v3261_v47 }
 0xfb7   :  { %3602 = vrsqrt.f32 %v3263_v55 }
 0xfc4   :  { %v3603_v50 = vpop.eup %3602 }
 0xfc5   :  { %v3265_v42 = vmul.f32 %v3603_v50, %v3262_v7 }
 0xfc7   :  { %v3273_v38 = vrot.slane %v3265_v42, %v3823_v25  ;;  %v3267_v4 = vmul.f32 %v3265_v42, %v3257_v29 }
 0xfc9   :  { %3275 = vperm.xlu1 %3561, %v3273_v38   ;;  %v3268_v62 = vsub.f32 %v3266_v45, %v3267_v4 }
 0xfcb   :  { %v3294_v11 = vrot.slane %v3268_v62, %v3823_v25 }
 0xfcd   :  { %3296 = vperm.xlu0 %3562, %v3294_v11  }
0x1044   :  { %v3276_v52 = vpop.permute.xlu1 %3275 }
0x1045   :  { %v3278_v60 = vmul.f32 %v3276_v52, %v5424_v53  ;;  %v3279_v23 = vmul.f32 %v3276_v52, %v5531_v37  ;;  %v3280_v36 = vmul.f32 %v3276_v52, %v5558_v34  ;;  %v3281_v10 = vmul.f32 %v3276_v52, %v5623_v21 }
0x1046   :  { %v3282_v19 = vmul.f32 %v3276_v52, %v5429_v49  ;;  %v3283_v44 = vmul.f32 %v3276_v52, %v5526_v61  ;;  %v3284_v41 = vmul.f32 %v3276_v52, %v5536_v9  ;;  %v3285_v16 = vmul.f32 %v3276_v52, %v5633_v0 }
0x1047   :  { %v3286_v25 = vmul.f32 %v3276_v52, %v5565_v6  ;;  %v3287_v22 = vmul.f32 %v3276_v52, %v5545_v39  ;;  %v3288_v53 = vmul.f32 %v3276_v52, %v5570_v2  ;;  %v3289_v37 = vmul.f32 %v3276_v52, %v5628_v56 }
0x1048   :  { %v3335_v34 = vmul.f32 %v3276_v52, %v5648_v13  ;;  %v3297_v33 = vpop.permute.xlu0 %3296 }
0x1049   :  { %v3299_v21 = vadd.f32 %v3297_v33, %v3278_v60  ;;  %v3300_v27 = vadd.f32 %v3297_v33, %v3279_v23  ;;  %v3301_v49 = vadd.f32 %v3297_v33, %v3280_v36  ;;  %v3302_v59 = vadd.f32 %v3297_v33, %v3281_v10 }
0x104a   :  { %v3303_v61 = vadd.f32 %v3297_v33, %v3282_v19  ;;  %v3304_v26 = vadd.f32 %v3297_v33, %v3283_v44  ;;  %v3305_v9 = vadd.f32 %v3297_v33, %v3284_v41  ;;  %v3306_v63 = vadd.f32 %v3297_v33, %v3285_v16 }
0x104b   :  { %v3307_v0 = vadd.f32 %v3297_v33, %v3286_v25  ;;  %v3308_v46 = vadd.f32 %v3297_v33, %v3287_v22  ;;  %v3309_v6 = vadd.f32 %v3297_v33, %v3288_v53  ;;  %v3310_v5 = vadd.f32 %v3297_v33, %v3289_v37 }
0x104c   :  { %v3311_v39 = vmax.f32 %v3299_v21, 0.0  ;;  %v3312_v40 = vmax.f32 %v3300_v27, 0.0  ;;  %v3313_v2 = vmax.f32 %v3301_v49, 0.0  ;;  %v3314_v17 = vmax.f32 %v3302_v59, 0.0 }
0x104d   :  { %v3315_v56 = vmax.f32 %v3303_v61, 0.0  ;;  %v3316_v15 = vmax.f32 %v3304_v26, 0.0  ;;  %v3317_v13 = vmax.f32 %v3305_v9, 0.0  ;;  %v3318_v58 = vmax.f32 %v3306_v63, 0.0 }
0x104e   :  { %v3319_v12 = vmax.f32 %v3307_v0, 0.0  ;;  %v3320_v43 = vmax.f32 %v3308_v46, 0.0  ;;  %v3321_v20 = vmax.f32 %v3309_v6, 0.0  ;;  %v3322_v51 = vmax.f32 %v3310_v5, 0.0  ;;  %3323 = vst [vmem:[%s5733_s16] sm:$0xff] %v3311_v39  ;;  %3324 = vst [vmem:[%s5733_s16 + $0x8] sm:$0xff] %v3312_v40 }
0x104f   :  { %3325 = vst [vmem:[%s5733_s16 + $0x10] sm:$0xff] %v3313_v2  ;;  %3326 = vst [vmem:[%s5733_s16 + $0x18] sm:$0xff] %v3314_v17  ;;  %v3336_v48 = vadd.f32 %v3335_v34, %v3297_v33 }
0x1050   :  { %3327 = vst [vmem:[%s5733_s16 + $0x20] sm:$0xff] %v3315_v56  ;;  %3328 = vst [vmem:[%s5733_s16 + $0x28] sm:$0xff] %v3316_v15 }
0x1051   :  { %3329 = vst [vmem:[%s5733_s16 + $0x30] sm:$0xff] %v3317_v13  ;;  %3330 = vst [vmem:[%s5733_s16 + $0x38] sm:$0xff] %v3318_v58  ;;  %v3337_v1 = vmax.f32 %v3336_v48, 0.0 }
0x1052   :  { %3331 = vst [vmem:[%s5733_s16 + $0x40] sm:$0x3] %v3319_v12  ;;  %3332 = vst [vmem:[%s5733_s16 + $0x48] sm:$0x3] %v3320_v43 }
0x1053   :  { %3333 = vst [vmem:[%s5733_s16 + $0x50] sm:$0x3] %v3321_v20  ;;  %3334 = vst [vmem:[%s5733_s16 + $0x58] sm:$0x3] %v3322_v51 }
0x1054   :  { %3338 = vst.msk [vmem:[%s5734_s17] sm:$0x3] %vm795_vm2, %v3337_v1 }

</bundles_post_ra>
